<compile_context>
chip_gen: v7x
topology: tpu7x:2x2x1
jax: 0.10.0
libtpu: 0.0.40
codegen_flags: <defaults>
</compile_context>

<pallas_src>
import functools
import math

import jax
import jax.numpy as jnp
from jax.experimental import pallas as pl
from jax.experimental.pallas import tpu as pltpu


def _round_up(x, m):
    return (x + m - 1) // m * m


def _ffn_row_chunk(nbs, cap=512):
    """Largest multiple-of-8 divisor of nbs that is <= cap (nbs is a mult of 8)."""
    if nbs <= cap:
        return nbs
    for r in range(cap - cap % 8, 7, -8):
        if nbs % r == 0:
            return r
    return 8


# -----------------------------------------------------------------------------
# In-kernel helpers (element-wise math kept in f32)
# -----------------------------------------------------------------------------
def _layer_norm_masked(x, g, b, true_h, eps=1e-12):
    """BertLayerNorm over the last axis, ignoring zero-padded lanes >= true_h.

    Relies on the invariant that padded columns of `x` are exactly zero
    (maintained by zero-padded weights / biases / gammas everywhere)."""
    lane = jax.lax.broadcasted_iota(jnp.int32, x.shape, x.ndim - 1)
    valid = lane < true_h
    inv_h = 1.0 / float(true_h)
    mu = jnp.sum(x, axis=-1, keepdims=True) * inv_h          # pad cols are 0
    diff = jnp.where(valid, x - mu, 0.0)
    var = jnp.sum(diff * diff, axis=-1, keepdims=True) * inv_h
    # padded lanes: diff=0, g=0, b=0  ->  output stays exactly 0
    return diff * jax.lax.rsqrt(var + eps) * g + b


def _gelu_erf(x):
    # pytorch-pretrained-bert gelu: x * 0.5 * (1 + erf(x / sqrt(2)))
    return 0.5 * x * (1.0 + jax.lax.erf(x * (1.0 / math.sqrt(2.0))))


# -----------------------------------------------------------------------------
# Fused Extractor kernel: one (visit-block, layer) grid step
# -----------------------------------------------------------------------------
def _extractor_kernel(x_ref, bias_ref,
                      wqkv_ref, bqkv_ref, wao_ref, bao_ref, lg1_ref, lb1_ref,
                      wi_ref, bi_ref, wfo_ref, bfo_ref, lg2_ref, lb2_ref,
                      pw_ref, pb_ref,
                      o_ref,
                      x2_s, qkv_s, ctx_s,
                      *, num_heads, head_dim, true_h, ffn_chunk):
    NB, S, HP = x_ref.shape
    NBS = NB * S
    l = pl.program_id(1)

    # -- layer 0: load this block's activations into the resident residual
    #    stream; zero the (never re-written) padded lanes of the ctx scratch
    #    so the dense output projection cannot pick up stale VMEM bits.
    @pl.when(l == 0)
    def _init():
        x2_s[...] = x_ref[...].reshape(NBS, HP).astype(jnp.float32)
        ctx_s[...] = jnp.zeros_like(ctx_s)

    x2 = x2_s[...]                               # (NBS, HP) f32 residual
    bias = bias_ref[...]                         # (NB, 1, S) additive key mask

    # -- fused QKV projection: ONE lane-dense (NBS,HP) x (HP,3*HP) matmul
    #    (softmax scale already folded into the Q columns at pack time).
    qkv = jnp.dot(x2.astype(jnp.bfloat16), wqkv_ref[...],
                  preferred_element_type=jnp.float32) + bqkv_ref[...]
    qkv_s[...] = qkv.astype(jnp.bfloat16)        # bound live range; bf16 reuse

    # -- per-head attention (scores/softmax/context are intrinsically per
    #    head); each head's context goes straight into its lane slice of the
    #    bf16 scratch so no value stays live across head iterations.
    for h in range(num_heads):
        q3 = qkv_s[:, h * head_dim:(h + 1) * head_dim].reshape(NB, S, head_dim)
        k3 = qkv_s[:, HP + h * head_dim:HP + (h + 1) * head_dim].reshape(NB, S, head_dim)
        v3 = qkv_s[:, 2 * HP + h * head_dim:2 * HP + (h + 1) * head_dim].reshape(NB, S, head_dim)
        s = jnp.einsum('bqd,bkd->bqk', q3, k3,
                       preferred_element_type=jnp.float32) + bias
        s = s - jnp.max(s, axis=-1, keepdims=True)        # f32 softmax
        p = jnp.exp(s)
        p = p * pl.reciprocal(jnp.sum(p, axis=-1, keepdims=True), approx=True)
        ctx = jnp.einsum('bqk,bkd->bqd', p.astype(jnp.bfloat16), v3,
                         preferred_element_type=jnp.float32)
        ctx_s[:, h * head_dim:(h + 1) * head_dim] = (
            ctx.reshape(NBS, head_dim).astype(jnp.bfloat16))

    # -- attention output projection: ONE dense HP-contraction matmul
    attn = jnp.dot(ctx_s[...], wao_ref[...],
                   preferred_element_type=jnp.float32) + bao_ref[...]
    h1 = _layer_norm_masked(attn + x2, lg1_ref[...], lb1_ref[...], true_h)
    x2_s[...] = h1                               # carry h1 into the chunked FFN

    # -- FFN, row-chunked so the f32 (rows, IP) intermediate stays bounded
    for c in range(NBS // ffn_chunk):
        r0 = c * ffn_chunk
        h1_c = x2_s[r0:r0 + ffn_chunk, :]
        inter = jnp.dot(h1_c.astype(jnp.bfloat16), wi_ref[...],
                        preferred_element_type=jnp.float32) + bi_ref[...]
        inter = _gelu_erf(inter)
        ffn = jnp.dot(inter.astype(jnp.bfloat16), wfo_ref[...],
                      preferred_element_type=jnp.float32) + bfo_ref[...]
        x2_s[r0:r0 + ffn_chunk, :] = _layer_norm_masked(
            ffn + h1_c, lg2_ref[...], lb2_ref[...], true_h)

    # -- last layer: BertPooler (CLS token of each visit -> dense + tanh)
    @pl.when(l == pl.num_programs(1) - 1)
    def _pool():
        cls = x2_s[...].reshape(NB, S, HP)[:, 0, :]          # (NB, HP)
        o_ref[...] = jnp.tanh(
            jnp.dot(cls.astype(jnp.bfloat16), pw_ref[...],
                    preferred_element_type=jnp.float32) + pb_ref[...])


# -----------------------------------------------------------------------------
# Host wrapper
# -----------------------------------------------------------------------------
_LAYER_KEYS = ('wqkv', 'bqkv', 'wao', 'bao', 'lg1', 'lb1',
               'wi', 'bi', 'wfo', 'bfo', 'lg2', 'lb2')
_POOLER_KEYS = ('pw', 'pb')


def extractor_forward(packed, hidden_state, mask, cfg, *, visits_per_block=None):
    """Extractor.forward.  hidden_state: (B,V,S,H) float; mask: (B,V,S) {0,1}.

    Returns encode_visit: (B, V, H) float32."""
    B, V, S, H = hidden_state.shape
    nh = cfg['num_attention_heads']
    L = cfg['extractor_num_layer']
    hd = H // nh
    HP = _round_up(H, 128)

    # Generation-aware VMEM budget / block size (128 MiB v5e/v6e, 64 MiB v7x).
    try:
        vmem_cap = int(pltpu.get_tpu_info().vmem_capacity_bytes)
    except Exception:
        vmem_cap = 64 * 1024 * 1024
    vmem_limit = min(int(vmem_cap * 0.85), 112 * 1024 * 1024)
    if visits_per_block is None:
        visits_per_block = 64 if vmem_cap >= 96 * 1024 * 1024 else 32

    N = B * V
    NB = min(_round_up(visits_per_block, 8), _round_up(N, 8))
    Np = _round_up(N, NB)
    NBS = NB * S
    ffn_chunk = _ffn_row_chunk(NBS)

    # Activations DMA'd as bf16, zero-padded so every lane/sublane is dense.
    x = hidden_state.astype(jnp.bfloat16).reshape(N, S, H)
    x = jnp.pad(x, ((0, Np - N), (0, 0), (0, HP - H)))
    bias = ((1.0 - mask.astype(jnp.float32)) * -10000.0).reshape(N, 1, S)
    bias = jnp.pad(bias, ((0, Np - N), (0, 0), (0, 0)), constant_values=-10000.0)

    layer_ws = [packed[k] for k in _LAYER_KEYS]       # stacked over L, streamed
    pooler_ws = [packed[k] for k in _POOLER_KEYS]     # grid-invariant

    def layer_spec(a):                                # fetch only layer l
        return pl.BlockSpec((None,) + a.shape[1:], lambda i, l: (l, 0, 0))

    def const_spec(a):                                # grid-invariant weight
        nd = a.ndim
        idx = lambda i, l, _nd=nd: (0,) * _nd
        buffered = getattr(pl, 'Buffered', None)
        if buffered is not None:
            try:                                      # single buffer halves VMEM
                return pl.BlockSpec(a.shape, idx, pipeline_mode=buffered(1))
            except TypeError:
                pass
        return pl.BlockSpec(a.shape, idx)

    kernel = functools.partial(_extractor_kernel, num_heads=nh, head_dim=hd,
                               true_h=H, ffn_chunk=ffn_chunk)
    out = pl.pallas_call(
        kernel,
        grid=(Np // NB, L),
        in_specs=[pl.BlockSpec((NB, S, HP), lambda i, l: (i, 0, 0)),
                  pl.BlockSpec((NB, 1, S), lambda i, l: (i, 0, 0))]
                 + [layer_spec(w) for w in layer_ws]
                 + [const_spec(w) for w in pooler_ws],
        out_specs=pl.BlockSpec((NB, HP), lambda i, l: (i, 0)),
        out_shape=jax.ShapeDtypeStruct((Np, HP), jnp.float32),
        scratch_shapes=[pltpu.VMEM((NBS, HP), jnp.float32),       # residual x2
                        pltpu.VMEM((NBS, 3 * HP), jnp.bfloat16),  # fused QKV
                        pltpu.VMEM((NBS, HP), jnp.bfloat16)],     # head contexts
        compiler_params=pltpu.CompilerParams(
            # visit blocks are independent ("parallel" -> 2-TC sharding on v7x);
            # the layer axis carries the residual scratch ("arbitrary").
            dimension_semantics=("parallel", "arbitrary"),
            vmem_limit_bytes=vmem_limit),
    )(x, bias, *layer_ws, *pooler_ws)
    return out[:N, :H].reshape(B, V, H)


# -----------------------------------------------------------------------------
# Parameter init (torch-equivalent, unpadded) and packing (padded / stacked)
# -----------------------------------------------------------------------------
def init_extractor_params(key, cfg):
    """Unpadded params; linear weights stored as (in, out) = torch weight.T."""
    H, I = cfg['hidden_size'], cfg['intermediate_size']
    L = cfg['extractor_num_layer']
    keys = iter(jax.random.split(key, 16 * L + 4))

    def w(shape):
        return (0.02 * jax.random.normal(next(keys), shape)).astype(jnp.float32)

    layers = [dict(
        wq=w((H, H)), bq=w((H,)), wk=w((H, H)), bk=w((H,)),
        wv=w((H, H)), bv=w((H,)), wao=w((H, H)), bao=w((H,)),
        lg1=jnp.ones((H,), jnp.float32), lb1=w((H,)),
        wi=w((H, I)), bi=w((I,)), wfo=w((I, H)), bfo=w((H,)),
        lg2=jnp.ones((H,), jnp.float32), lb2=w((H,)),
    ) for _ in range(L)]
    return dict(layers=layers, pooler_w=w((H, H)), pooler_b=w((H,)))


def pack_extractor_params(params, cfg):
    """Zero-pad H/I to multiples of 128 (exact zeros -> masked-LayerNorm
    invariant), fuse Q/K/V into one (HP, 3*HP) weight with the 1/sqrt(head_dim)
    scale folded into the Q columns, stack layers along a leading axis
    (streamed per layer by the kernel), cast matmul weights to bf16."""
    H, I = cfg['hidden_size'], cfg['intermediate_size']
    nh = cfg['num_attention_heads']
    hd = H // nh
    HP, IP = _round_up(H, 128), _round_up(I, 128)
    scale = 1.0 / math.sqrt(hd)

    def pad2(a, r, c):
        return jnp.pad(a, ((0, r - a.shape[0]), (0, c - a.shape[1])))

    def vec(a, c):                         # (n,) -> (1, c) f32, zero padded
        return jnp.pad(a, (0, c - a.shape[0])).reshape(1, c).astype(jnp.float32)

    Ls = params['layers']
    return dict(
        wqkv=jnp.stack([jnp.concatenate(
            [pad2(l['wq'] * scale, HP, HP), pad2(l['wk'], HP, HP),
             pad2(l['wv'], HP, HP)], axis=1) for l in Ls]).astype(jnp.bfloat16),
        bqkv=jnp.stack([jnp.concatenate(
            [vec(l['bq'] * scale, HP), vec(l['bk'], HP), vec(l['bv'], HP)],
            axis=1) for l in Ls]),
        wao=jnp.stack([pad2(l['wao'], HP, HP) for l in Ls]).astype(jnp.bfloat16),
        bao=jnp.stack([vec(l['bao'], HP) for l in Ls]),
        lg1=jnp.stack([vec(l['lg1'], HP) for l in Ls]),
        lb1=jnp.stack([vec(l['lb1'], HP) for l in Ls]),
        wi=jnp.stack([pad2(l['wi'], HP, IP) for l in Ls]).astype(jnp.bfloat16),
        bi=jnp.stack([vec(l['bi'], IP) for l in Ls]),
        wfo=jnp.stack([pad2(l['wfo'], IP, HP) for l in Ls]).astype(jnp.bfloat16),
        bfo=jnp.stack([vec(l['bfo'], HP) for l in Ls]),
        lg2=jnp.stack([vec(l['lg2'], HP) for l in Ls]),
        lb2=jnp.stack([vec(l['lb2'], HP) for l in Ls]),
        pw=pad2(params['pooler_w'], HP, HP).astype(jnp.bfloat16),
        pb=vec(params['pooler_b'], HP),
    )


# -----------------------------------------------------------------------------
if __name__ == "__main__":
    cfg = dict(hidden_size=32, intermediate_size=64, num_attention_heads=2,
               extractor_num_layer=2)
    B, V, S = 2, 4, 8
    H = cfg['hidden_size']

    root = jax.random.PRNGKey(0)
    pkey, dkey = jax.random.split(root)
    params = init_extractor_params(pkey, cfg)
    packed = pack_extractor_params(params, cfg)

    k1, k2 = jax.random.split(dkey)
    hidden_state = jax.random.normal(k1, (B, V, S, H), jnp.float32)
    mask = (jax.random.uniform(k2, (B, V, S)) < 0.85).astype(jnp.int32)
    mask = mask.at[..., 0].set(1)              # CLS token always visible

    encode_visit = extractor_forward(packed, hidden_state, mask, cfg)
    jax.block_until_ready(encode_visit)
    assert encode_visit.shape == (B, V, H)
    assert bool(jnp.all(jnp.isfinite(encode_visit)))
    print("KERNEL_OK")
</pallas_src>

<mosaic_0001>
module attributes {stable_mosaic.version = 11 : i64} {
  func.func @_extractor_kernel(%arg0: i32, %arg1: i32, %arg2: memref<8x8x128xbf16, #tpu.memory_space<vmem>>, %arg3: memref<8x1x8xf32, #tpu.memory_space<vmem>>, %arg4: memref<1x128x384xbf16, #tpu.memory_space<vmem>>, %arg5: memref<1x1x384xf32, #tpu.memory_space<vmem>>, %arg6: memref<1x128x128xbf16, #tpu.memory_space<vmem>>, %arg7: memref<1x1x128xf32, #tpu.memory_space<vmem>>, %arg8: memref<1x1x128xf32, #tpu.memory_space<vmem>>, %arg9: memref<1x1x128xf32, #tpu.memory_space<vmem>>, %arg10: memref<1x128x128xbf16, #tpu.memory_space<vmem>>, %arg11: memref<1x1x128xf32, #tpu.memory_space<vmem>>, %arg12: memref<1x128x128xbf16, #tpu.memory_space<vmem>>, %arg13: memref<1x1x128xf32, #tpu.memory_space<vmem>>, %arg14: memref<1x1x128xf32, #tpu.memory_space<vmem>>, %arg15: memref<1x1x128xf32, #tpu.memory_space<vmem>>, %arg16: memref<128x128xbf16, #tpu.memory_space<vmem>>, %arg17: memref<1x128xf32, #tpu.memory_space<vmem>>, %arg18: memref<8x128xf32, #tpu.memory_space<vmem>>, %arg19: memref<64x128xf32, #tpu.memory_space<vmem>>, %arg20: memref<64x384xbf16, #tpu.memory_space<vmem>>, %arg21: memref<64x128xbf16, #tpu.memory_space<vmem>>) attributes {dimension_semantics = [#tpu.dimension_semantics<parallel>, #tpu.dimension_semantics<arbitrary>], iteration_bounds = array<i64: 1, 2>, scalar_prefetch = 0 : i64, scratch_operands = 3 : i64, tpu.core_type = #tpu.core_type<tc>, window_params = [{transform_indices = @transform_0, window_bounds = array<i64: 8, 8, 128>}, {transform_indices = @transform_1, window_bounds = array<i64: 8, 1, 8>}, {transform_indices = @transform_2, window_bounds = array<i64: 1, 128, 384>}, {transform_indices = @transform_3, window_bounds = array<i64: 1, 1, 384>}, {transform_indices = @transform_4, window_bounds = array<i64: 1, 128, 128>}, {transform_indices = @transform_5, window_bounds = array<i64: 1, 1, 128>}, {transform_indices = @transform_6, window_bounds = array<i64: 1, 1, 128>}, {transform_indices = @transform_7, window_bounds = array<i64: 1, 1, 128>}, {transform_indices = @transform_8, window_bounds = array<i64: 1, 128, 128>}, {transform_indices = @transform_9, window_bounds = array<i64: 1, 1, 128>}, {transform_indices = @transform_10, window_bounds = array<i64: 1, 128, 128>}, {transform_indices = @transform_11, window_bounds = array<i64: 1, 1, 128>}, {transform_indices = @transform_12, window_bounds = array<i64: 1, 1, 128>}, {transform_indices = @transform_13, window_bounds = array<i64: 1, 1, 128>}, {pipeline_mode = #tpu.pipeline_mode<synchronous>, transform_indices = @transform_14, window_bounds = array<i64: 128, 128>}, {pipeline_mode = #tpu.pipeline_mode<synchronous>, transform_indices = @transform_15, window_bounds = array<i64: 1, 128>}, {transform_indices = @transform_16, window_bounds = array<i64: 8, 128>}]} {
    %c0_i32 = arith.constant 0 : i32
    %0 = arith.cmpi eq, %arg1, %c0_i32 : i32
    %1 = arith.extui %0 : i1 to i32
    %c0_i32_0 = arith.constant 0 : i32
    %2 = arith.cmpi ne, %1, %c0_i32_0 : i32
    scf.if %2 {
      %c0_90 = arith.constant 0 : index
      %c0_91 = arith.constant 0 : index
      %c0_92 = arith.constant 0 : index
      %161 = vector.load %arg2[%c0_90, %c0_91, %c0_92] : memref<8x8x128xbf16, #tpu.memory_space<vmem>>, vector<8x8x128xbf16>
      %162 = vector.shape_cast %161 : vector<8x8x128xbf16> to vector<64x128xbf16>
      %163 = arith.extf %162 : vector<64x128xbf16> to vector<64x128xf32>
      %c0_93 = arith.constant 0 : index
      %c0_94 = arith.constant 0 : index
      %164 = vector.load %arg19[%c0_93, %c0_94] : memref<64x128xf32, #tpu.memory_space<vmem>>, vector<64x128xf32>
      tpu.vector_store %arg19[%c0_93, %c0_94], %163 {strides = array<i32>} : memref<64x128xf32, #tpu.memory_space<vmem>>, vector<64x128xf32>,
      %cst_95 = arith.constant 0.000000e+00 : bf16
      %165 = vector.broadcast %cst_95 : bf16 to vector<64x128xbf16>
      %c0_96 = arith.constant 0 : index
      %c0_97 = arith.constant 0 : index
      %166 = vector.load %arg21[%c0_96, %c0_97] : memref<64x128xbf16, #tpu.memory_space<vmem>>, vector<64x128xbf16>
      tpu.vector_store %arg21[%c0_96, %c0_97], %165 {strides = array<i32>} : memref<64x128xbf16, #tpu.memory_space<vmem>>, vector<64x128xbf16>,
    } else {
    }
    %c0 = arith.constant 0 : index
    %c0_1 = arith.constant 0 : index
    %3 = vector.load %arg19[%c0, %c0_1] : memref<64x128xf32, #tpu.memory_space<vmem>>, vector<64x128xf32>
    %c0_2 = arith.constant 0 : index
    %c0_3 = arith.constant 0 : index
    %c0_4 = arith.constant 0 : index
    %4 = vector.load %arg3[%c0_2, %c0_3, %c0_4] : memref<8x1x8xf32, #tpu.memory_space<vmem>>, vector<8x1x8xf32>
    %5 = arith.truncf %3 : vector<64x128xf32> to vector<64x128xbf16>
    %c0_5 = arith.constant 0 : index
    %c0_6 = arith.constant 0 : index
    %c0_7 = arith.constant 0 : index
    %6 = vector.load %arg4[%c0_5, %c0_6, %c0_7] : memref<1x128x384xbf16, #tpu.memory_space<vmem>>, vector<1x128x384xbf16>
    %7 = vector.shape_cast %6 : vector<1x128x384xbf16> to vector<128x384xbf16>
    %cst = arith.constant dense<0.000000e+00> : vector<64x384xf32>
    %8 = tpu.matmul %5, %7, %cst {dimension_numbers = #tpu.dot_dimension_numbers<[1], [0], [0], [1], [0, 0, 1, 1], [], []>} : vector<64x128xbf16>, vector<128x384xbf16>, vector<64x384xf32> -> vector<64x384xf32>
    %c0_8 = arith.constant 0 : index
    %c0_9 = arith.constant 0 : index
    %c0_10 = arith.constant 0 : index
    %9 = vector.load %arg5[%c0_8, %c0_9, %c0_10] : memref<1x1x384xf32, #tpu.memory_space<vmem>>, vector<1x1x384xf32>
    %10 = vector.shape_cast %9 : vector<1x1x384xf32> to vector<1x384xf32>
    %11 = vector.broadcast %10 : vector<1x384xf32> to vector<64x384xf32>
    %12 = arith.addf %8, %11 : vector<64x384xf32>
    %13 = arith.truncf %12 : vector<64x384xf32> to vector<64x384xbf16>
    %c0_11 = arith.constant 0 : index
    %c0_12 = arith.constant 0 : index
    %14 = vector.load %arg20[%c0_11, %c0_12] : memref<64x384xbf16, #tpu.memory_space<vmem>>, vector<64x384xbf16>
    tpu.vector_store %arg20[%c0_11, %c0_12], %13 {strides = array<i32>} : memref<64x384xbf16, #tpu.memory_space<vmem>>, vector<64x384xbf16>,
    %c0_13 = arith.constant 0 : index
    %c0_14 = arith.constant 0 : index
    %15 = vector.load %arg20[%c0_13, %c0_14] : memref<64x384xbf16, #tpu.memory_space<vmem>>, vector<64x16xbf16>
    %16 = vector.shape_cast %15 : vector<64x16xbf16> to vector<8x8x16xbf16>
    %c0_15 = arith.constant 0 : index
    %c128 = arith.constant 128 : index
    %17 = vector.load %arg20[%c0_15, %c128] : memref<64x384xbf16, #tpu.memory_space<vmem>>, vector<64x16xbf16>
    %18 = vector.shape_cast %17 : vector<64x16xbf16> to vector<8x8x16xbf16>
    %c0_16 = arith.constant 0 : index
    %c256 = arith.constant 256 : index
    %19 = vector.load %arg20[%c0_16, %c256] : memref<64x384xbf16, #tpu.memory_space<vmem>>, vector<64x16xbf16>
    %20 = vector.shape_cast %19 : vector<64x16xbf16> to vector<8x8x16xbf16>
    "tpu.trace_start"() <{level = 10 : i32, message = "bqd,bkd->bqk"}> : () -> ()
    %cst_17 = arith.constant dense<0.000000e+00> : vector<8x8x8xf32>
    %21 = tpu.matmul %16, %18, %cst_17 {dimension_numbers = #tpu.dot_dimension_numbers<[2], [2], [1], [1], [0, 0, 0, 1, 1, 1], [0], [0]>} : vector<8x8x16xbf16>, vector<8x8x16xbf16>, vector<8x8x8xf32> -> vector<8x8x8xf32>
    "tpu.trace_stop"() : () -> ()
    %22 = vector.broadcast %4 : vector<8x1x8xf32> to vector<8x8x8xf32>
    %23 = arith.addf %21, %22 : vector<8x8x8xf32>
    %cst_18 = arith.constant dense<0xFF800000> : vector<8x8xf32>
    %24 = vector.multi_reduction <maximumf>, %23, %cst_18 [2] : vector<8x8x8xf32> to vector<8x8xf32>
    %25 = vector.shape_cast %24 : vector<8x8xf32> to vector<8x8x1xf32>
    %26 = vector.broadcast %25 : vector<8x8x1xf32> to vector<8x8x8xf32>
    %27 = arith.subf %23, %26 : vector<8x8x8xf32>
    %28 = math.exp %27 : vector<8x8x8xf32>
    %cst_19 = arith.constant dense<0.000000e+00> : vector<8x8xf32>
    %29 = vector.multi_reduction <add>, %28, %cst_19 [2] : vector<8x8x8xf32> to vector<8x8xf32>
    %30 = vector.shape_cast %29 : vector<8x8xf32> to vector<8x8x1xf32>
    %31 = tpu.reciprocal %30 {approx = true} : vector<8x8x1xf32> -> vector<8x8x1xf32>
    %32 = vector.broadcast %31 : vector<8x8x1xf32> to vector<8x8x8xf32>
    %33 = arith.mulf %28, %32 : vector<8x8x8xf32>
    %34 = arith.truncf %33 : vector<8x8x8xf32> to vector<8x8x8xbf16>
    "tpu.trace_start"() <{level = 10 : i32, message = "bqk,bkd->bqd"}> : () -> ()
    %cst_20 = arith.constant dense<0.000000e+00> : vector<8x8x16xf32>
    %35 = tpu.matmul %34, %20, %cst_20 {dimension_numbers = #tpu.dot_dimension_numbers<[2], [1], [1], [2], [0, 0, 0, 1, 1, 2], [0], [0]>} : vector<8x8x8xbf16>, vector<8x8x16xbf16>, vector<8x8x16xf32> -> vector<8x8x16xf32>
    "tpu.trace_stop"() : () -> ()
    %36 = vector.shape_cast %35 : vector<8x8x16xf32> to vector<64x16xf32>
    %37 = arith.truncf %36 : vector<64x16xf32> to vector<64x16xbf16>
    %c0_21 = arith.constant 0 : index
    %c0_22 = arith.constant 0 : index
    %38 = vector.load %arg21[%c0_21, %c0_22] : memref<64x128xbf16, #tpu.memory_space<vmem>>, vector<64x16xbf16>
    tpu.vector_store %arg21[%c0_21, %c0_22], %37 {strides = array<i32>} : memref<64x128xbf16, #tpu.memory_space<vmem>>, vector<64x16xbf16>,
    %c0_23 = arith.constant 0 : index
    %c16 = arith.constant 16 : index
    %39 = vector.load %arg20[%c0_23, %c16] : memref<64x384xbf16, #tpu.memory_space<vmem>>, vector<64x16xbf16>
    %40 = vector.shape_cast %39 : vector<64x16xbf16> to vector<8x8x16xbf16>
    %c0_24 = arith.constant 0 : index
    %c144 = arith.constant 144 : index
    %41 = vector.load %arg20[%c0_24, %c144] : memref<64x384xbf16, #tpu.memory_space<vmem>>, vector<64x16xbf16>
    %42 = vector.shape_cast %41 : vector<64x16xbf16> to vector<8x8x16xbf16>
    %c0_25 = arith.constant 0 : index
    %c272 = arith.constant 272 : index
    %43 = vector.load %arg20[%c0_25, %c272] : memref<64x384xbf16, #tpu.memory_space<vmem>>, vector<64x16xbf16>
    %44 = vector.shape_cast %43 : vector<64x16xbf16> to vector<8x8x16xbf16>
    "tpu.trace_start"() <{level = 10 : i32, message = "bqd,bkd->bqk"}> : () -> ()
    %cst_26 = arith.constant dense<0.000000e+00> : vector<8x8x8xf32>
    %45 = tpu.matmul %40, %42, %cst_26 {dimension_numbers = #tpu.dot_dimension_numbers<[2], [2], [1], [1], [0, 0, 0, 1, 1, 1], [0], [0]>} : vector<8x8x16xbf16>, vector<8x8x16xbf16>, vector<8x8x8xf32> -> vector<8x8x8xf32>
    "tpu.trace_stop"() : () -> ()
    %46 = vector.broadcast %4 : vector<8x1x8xf32> to vector<8x8x8xf32>
    %47 = arith.addf %45, %46 : vector<8x8x8xf32>
    %cst_27 = arith.constant dense<0xFF800000> : vector<8x8xf32>
    %48 = vector.multi_reduction <maximumf>, %47, %cst_27 [2] : vector<8x8x8xf32> to vector<8x8xf32>
    %49 = vector.shape_cast %48 : vector<8x8xf32> to vector<8x8x1xf32>
    %50 = vector.broadcast %49 : vector<8x8x1xf32> to vector<8x8x8xf32>
    %51 = arith.subf %47, %50 : vector<8x8x8xf32>
    %52 = math.exp %51 : vector<8x8x8xf32>
    %cst_28 = arith.constant dense<0.000000e+00> : vector<8x8xf32>
    %53 = vector.multi_reduction <add>, %52, %cst_28 [2] : vector<8x8x8xf32> to vector<8x8xf32>
    %54 = vector.shape_cast %53 : vector<8x8xf32> to vector<8x8x1xf32>
    %55 = tpu.reciprocal %54 {approx = true} : vector<8x8x1xf32> -> vector<8x8x1xf32>
    %56 = vector.broadcast %55 : vector<8x8x1xf32> to vector<8x8x8xf32>
    %57 = arith.mulf %52, %56 : vector<8x8x8xf32>
    %58 = arith.truncf %57 : vector<8x8x8xf32> to vector<8x8x8xbf16>
    "tpu.trace_start"() <{level = 10 : i32, message = "bqk,bkd->bqd"}> : () -> ()
    %cst_29 = arith.constant dense<0.000000e+00> : vector<8x8x16xf32>
    %59 = tpu.matmul %58, %44, %cst_29 {dimension_numbers = #tpu.dot_dimension_numbers<[2], [1], [1], [2], [0, 0, 0, 1, 1, 2], [0], [0]>} : vector<8x8x8xbf16>, vector<8x8x16xbf16>, vector<8x8x16xf32> -> vector<8x8x16xf32>
    "tpu.trace_stop"() : () -> ()
    %60 = vector.shape_cast %59 : vector<8x8x16xf32> to vector<64x16xf32>
    %61 = arith.truncf %60 : vector<64x16xf32> to vector<64x16xbf16>
    %c0_30 = arith.constant 0 : index
    %c16_31 = arith.constant 16 : index
    %62 = vector.load %arg21[%c0_30, %c16_31] : memref<64x128xbf16, #tpu.memory_space<vmem>>, vector<64x16xbf16>
    tpu.vector_store %arg21[%c0_30, %c16_31], %61 {strides = array<i32>} : memref<64x128xbf16, #tpu.memory_space<vmem>>, vector<64x16xbf16>,
    %c0_32 = arith.constant 0 : index
    %c0_33 = arith.constant 0 : index
    %63 = vector.load %arg21[%c0_32, %c0_33] : memref<64x128xbf16, #tpu.memory_space<vmem>>, vector<64x128xbf16>
    %c0_34 = arith.constant 0 : index
    %c0_35 = arith.constant 0 : index
    %c0_36 = arith.constant 0 : index
    %64 = vector.load %arg6[%c0_34, %c0_35, %c0_36] : memref<1x128x128xbf16, #tpu.memory_space<vmem>>, vector<1x128x128xbf16>
    %65 = vector.shape_cast %64 : vector<1x128x128xbf16> to vector<128x128xbf16>
    %cst_37 = arith.constant dense<0.000000e+00> : vector<64x128xf32>
    %66 = tpu.matmul %63, %65, %cst_37 {dimension_numbers = #tpu.dot_dimension_numbers<[1], [0], [0], [1], [0, 0, 1, 1], [], []>} : vector<64x128xbf16>, vector<128x128xbf16>, vector<64x128xf32> -> vector<64x128xf32>
    %c0_38 = arith.constant 0 : index
    %c0_39 = arith.constant 0 : index
    %c0_40 = arith.constant 0 : index
    %67 = vector.load %arg7[%c0_38, %c0_39, %c0_40] : memref<1x1x128xf32, #tpu.memory_space<vmem>>, vector<1x1x128xf32>
    %68 = vector.shape_cast %67 : vector<1x1x128xf32> to vector<1x128xf32>
    %69 = vector.broadcast %68 : vector<1x128xf32> to vector<64x128xf32>
    %70 = arith.addf %66, %69 : vector<64x128xf32>
    %71 = arith.addf %70, %3 : vector<64x128xf32>
    %c0_41 = arith.constant 0 : index
    %c0_42 = arith.constant 0 : index
    %c0_43 = arith.constant 0 : index
    %72 = vector.load %arg8[%c0_41, %c0_42, %c0_43] : memref<1x1x128xf32, #tpu.memory_space<vmem>>, vector<1x1x128xf32>
    %73 = vector.shape_cast %72 : vector<1x1x128xf32> to vector<1x128xf32>
    %c0_44 = arith.constant 0 : index
    %c0_45 = arith.constant 0 : index
    %c0_46 = arith.constant 0 : index
    %74 = vector.load %arg9[%c0_44, %c0_45, %c0_46] : memref<1x1x128xf32, #tpu.memory_space<vmem>>, vector<1x1x128xf32>
    %75 = vector.shape_cast %74 : vector<1x1x128xf32> to vector<1x128xf32>
    %76 = tpu.iota {dimensions = array<i32: 1>} : vector<64x128xi32>
    %c32_i32 = arith.constant 32 : i32
    %77 = vector.broadcast %c32_i32 : i32 to vector<64x128xi32>
    %78 = arith.cmpi slt, %76, %77 : vector<64x128xi32>
    %cst_47 = arith.constant dense<0.000000e+00> : vector<64xf32>
    %79 = vector.multi_reduction <add>, %71, %cst_47 [1] : vector<64x128xf32> to vector<64xf32>
    %80 = vector.shape_cast %79 : vector<64xf32> to vector<64x1xf32>
    %cst_48 = arith.constant 3.125000e-02 : f32
    %81 = vector.broadcast %cst_48 : f32 to vector<64x1xf32>
    %82 = arith.mulf %80, %81 : vector<64x1xf32>
    %83 = vector.broadcast %82 : vector<64x1xf32> to vector<64x128xf32>
    %84 = arith.subf %71, %83 : vector<64x128xf32>
    %cst_49 = arith.constant 0.000000e+00 : f32
    %85 = vector.broadcast %cst_49 : f32 to vector<64x128xf32>
    %86 = arith.select %78, %84, %85 : vector<64x128xi1>, vector<64x128xf32>
    %87 = arith.mulf %86, %86 : vector<64x128xf32>
    %cst_50 = arith.constant dense<0.000000e+00> : vector<64xf32>
    %88 = vector.multi_reduction <add>, %87, %cst_50 [1] : vector<64x128xf32> to vector<64xf32>
    %89 = vector.shape_cast %88 : vector<64xf32> to vector<64x1xf32>
    %cst_51 = arith.constant 3.125000e-02 : f32
    %90 = vector.broadcast %cst_51 : f32 to vector<64x1xf32>
    %91 = arith.mulf %89, %90 : vector<64x1xf32>
    %cst_52 = arith.constant 9.99999996E-13 : f32
    %92 = vector.broadcast %cst_52 : f32 to vector<64x1xf32>
    %93 = arith.addf %91, %92 : vector<64x1xf32>
    %94 = math.rsqrt %93 : vector<64x1xf32>
    %95 = vector.broadcast %94 : vector<64x1xf32> to vector<64x128xf32>
    %96 = arith.mulf %86, %95 : vector<64x128xf32>
    %97 = vector.broadcast %73 : vector<1x128xf32> to vector<64x128xf32>
    %98 = arith.mulf %96, %97 : vector<64x128xf32>
    %99 = vector.broadcast %75 : vector<1x128xf32> to vector<64x128xf32>
    %100 = arith.addf %98, %99 : vector<64x128xf32>
    %c0_53 = arith.constant 0 : index
    %c0_54 = arith.constant 0 : index
    %101 = vector.load %arg19[%c0_53, %c0_54] : memref<64x128xf32, #tpu.memory_space<vmem>>, vector<64x128xf32>
    tpu.vector_store %arg19[%c0_53, %c0_54], %100 {strides = array<i32>} : memref<64x128xf32, #tpu.memory_space<vmem>>, vector<64x128xf32>,
    %c0_55 = arith.constant 0 : index
    %c0_56 = arith.constant 0 : index
    %102 = vector.load %arg19[%c0_55, %c0_56] : memref<64x128xf32, #tpu.memory_space<vmem>>, vector<64x128xf32>
    %103 = arith.truncf %102 : vector<64x128xf32> to vector<64x128xbf16>
    %c0_57 = arith.constant 0 : index
    %c0_58 = arith.constant 0 : index
    %c0_59 = arith.constant 0 : index
    %104 = vector.load %arg10[%c0_57, %c0_58, %c0_59] : memref<1x128x128xbf16, #tpu.memory_space<vmem>>, vector<1x128x128xbf16>
    %105 = vector.shape_cast %104 : vector<1x128x128xbf16> to vector<128x128xbf16>
    %cst_60 = arith.constant dense<0.000000e+00> : vector<64x128xf32>
    %106 = tpu.matmul %103, %105, %cst_60 {dimension_numbers = #tpu.dot_dimension_numbers<[1], [0], [0], [1], [0, 0, 1, 1], [], []>} : vector<64x128xbf16>, vector<128x128xbf16>, vector<64x128xf32> -> vector<64x128xf32>
    %c0_61 = arith.constant 0 : index
    %c0_62 = arith.constant 0 : index
    %c0_63 = arith.constant 0 : index
    %107 = vector.load %arg11[%c0_61, %c0_62, %c0_63] : memref<1x1x128xf32, #tpu.memory_space<vmem>>, vector<1x1x128xf32>
    %108 = vector.shape_cast %107 : vector<1x1x128xf32> to vector<1x128xf32>
    %109 = vector.broadcast %108 : vector<1x128xf32> to vector<64x128xf32>
    %110 = arith.addf %106, %109 : vector<64x128xf32>
    %cst_64 = arith.constant 5.000000e-01 : f32
    %111 = vector.broadcast %cst_64 : f32 to vector<64x128xf32>
    %112 = arith.mulf %111, %110 : vector<64x128xf32>
    %cst_65 = arith.constant 0.707106769 : f32
    %113 = vector.broadcast %cst_65 : f32 to vector<64x128xf32>
    %114 = arith.mulf %110, %113 : vector<64x128xf32>
    %115 = math.erf %114 : vector<64x128xf32>
    %cst_66 = arith.constant 1.000000e+00 : f32
    %116 = vector.broadcast %cst_66 : f32 to vector<64x128xf32>
    %117 = arith.addf %116, %115 : vector<64x128xf32>
    %118 = arith.mulf %112, %117 : vector<64x128xf32>
    %119 = arith.truncf %118 : vector<64x128xf32> to vector<64x128xbf16>
    %c0_67 = arith.constant 0 : index
    %c0_68 = arith.constant 0 : index
    %c0_69 = arith.constant 0 : index
    %120 = vector.load %arg12[%c0_67, %c0_68, %c0_69] : memref<1x128x128xbf16, #tpu.memory_space<vmem>>, vector<1x128x128xbf16>
    %121 = vector.shape_cast %120 : vector<1x128x128xbf16> to vector<128x128xbf16>
    %cst_70 = arith.constant dense<0.000000e+00> : vector<64x128xf32>
    %122 = tpu.matmul %119, %121, %cst_70 {dimension_numbers = #tpu.dot_dimension_numbers<[1], [0], [0], [1], [0, 0, 1, 1], [], []>} : vector<64x128xbf16>, vector<128x128xbf16>, vector<64x128xf32> -> vector<64x128xf32>
    %c0_71 = arith.constant 0 : index
    %c0_72 = arith.constant 0 : index
    %c0_73 = arith.constant 0 : index
    %123 = vector.load %arg13[%c0_71, %c0_72, %c0_73] : memref<1x1x128xf32, #tpu.memory_space<vmem>>, vector<1x1x128xf32>
    %124 = vector.shape_cast %123 : vector<1x1x128xf32> to vector<1x128xf32>
    %125 = vector.broadcast %124 : vector<1x128xf32> to vector<64x128xf32>
    %126 = arith.addf %122, %125 : vector<64x128xf32>
    %127 = arith.addf %126, %102 : vector<64x128xf32>
    %c0_74 = arith.constant 0 : index
    %c0_75 = arith.constant 0 : index
    %c0_76 = arith.constant 0 : index
    %128 = vector.load %arg14[%c0_74, %c0_75, %c0_76] : memref<1x1x128xf32, #tpu.memory_space<vmem>>, vector<1x1x128xf32>
    %129 = vector.shape_cast %128 : vector<1x1x128xf32> to vector<1x128xf32>
    %c0_77 = arith.constant 0 : index
    %c0_78 = arith.constant 0 : index
    %c0_79 = arith.constant 0 : index
    %130 = vector.load %arg15[%c0_77, %c0_78, %c0_79] : memref<1x1x128xf32, #tpu.memory_space<vmem>>, vector<1x1x128xf32>
    %131 = vector.shape_cast %130 : vector<1x1x128xf32> to vector<1x128xf32>
    %132 = tpu.iota {dimensions = array<i32: 1>} : vector<64x128xi32>
    %c32_i32_80 = arith.constant 32 : i32
    %133 = vector.broadcast %c32_i32_80 : i32 to vector<64x128xi32>
    %134 = arith.cmpi slt, %132, %133 : vector<64x128xi32>
    %cst_81 = arith.constant dense<0.000000e+00> : vector<64xf32>
    %135 = vector.multi_reduction <add>, %127, %cst_81 [1] : vector<64x128xf32> to vector<64xf32>
    %136 = vector.shape_cast %135 : vector<64xf32> to vector<64x1xf32>
    %cst_82 = arith.constant 3.125000e-02 : f32
    %137 = vector.broadcast %cst_82 : f32 to vector<64x1xf32>
    %138 = arith.mulf %136, %137 : vector<64x1xf32>
    %139 = vector.broadcast %138 : vector<64x1xf32> to vector<64x128xf32>
    %140 = arith.subf %127, %139 : vector<64x128xf32>
    %cst_83 = arith.constant 0.000000e+00 : f32
    %141 = vector.broadcast %cst_83 : f32 to vector<64x128xf32>
    %142 = arith.select %134, %140, %141 : vector<64x128xi1>, vector<64x128xf32>
    %143 = arith.mulf %142, %142 : vector<64x128xf32>
    %cst_84 = arith.constant dense<0.000000e+00> : vector<64xf32>
    %144 = vector.multi_reduction <add>, %143, %cst_84 [1] : vector<64x128xf32> to vector<64xf32>
    %145 = vector.shape_cast %144 : vector<64xf32> to vector<64x1xf32>
    %cst_85 = arith.constant 3.125000e-02 : f32
    %146 = vector.broadcast %cst_85 : f32 to vector<64x1xf32>
    %147 = arith.mulf %145, %146 : vector<64x1xf32>
    %cst_86 = arith.constant 9.99999996E-13 : f32
    %148 = vector.broadcast %cst_86 : f32 to vector<64x1xf32>
    %149 = arith.addf %147, %148 : vector<64x1xf32>
    %150 = math.rsqrt %149 : vector<64x1xf32>
    %151 = vector.broadcast %150 : vector<64x1xf32> to vector<64x128xf32>
    %152 = arith.mulf %142, %151 : vector<64x128xf32>
    %153 = vector.broadcast %129 : vector<1x128xf32> to vector<64x128xf32>
    %154 = arith.mulf %152, %153 : vector<64x128xf32>
    %155 = vector.broadcast %131 : vector<1x128xf32> to vector<64x128xf32>
    %156 = arith.addf %154, %155 : vector<64x128xf32>
    %c0_87 = arith.constant 0 : index
    %c0_88 = arith.constant 0 : index
    %157 = vector.load %arg19[%c0_87, %c0_88] : memref<64x128xf32, #tpu.memory_space<vmem>>, vector<64x128xf32>
    tpu.vector_store %arg19[%c0_87, %c0_88], %156 {strides = array<i32>} : memref<64x128xf32, #tpu.memory_space<vmem>>, vector<64x128xf32>,
    %c1_i32 = arith.constant 1 : i32
    %158 = arith.cmpi eq, %arg1, %c1_i32 : i32
    %159 = arith.extui %158 : i1 to i32
    %c0_i32_89 = arith.constant 0 : i32
    %160 = arith.cmpi ne, %159, %c0_i32_89 : i32
    scf.if %160 {
      %c0_90 = arith.constant 0 : index
      %c0_91 = arith.constant 0 : index
      %161 = vector.load %arg19[%c0_90, %c0_91] : memref<64x128xf32, #tpu.memory_space<vmem>>, vector<64x128xf32>
      %162 = vector.shape_cast %161 : vector<64x128xf32> to vector<8x8x128xf32>
      %163 = vector.extract_strided_slice %162 {offsets = [0, 0, 0], sizes = [8, 1, 128], strides = [1, 1, 1]} : vector<8x8x128xf32> to vector<8x1x128xf32>
      %164 = vector.shape_cast %163 : vector<8x1x128xf32> to vector<8x128xf32>
      %165 = arith.truncf %164 : vector<8x128xf32> to vector<8x128xbf16>
      %c0_92 = arith.constant 0 : index
      %c0_93 = arith.constant 0 : index
      %166 = vector.load %arg16[%c0_92, %c0_93] : memref<128x128xbf16, #tpu.memory_space<vmem>>, vector<128x128xbf16>
      %cst_94 = arith.constant dense<0.000000e+00> : vector<8x128xf32>
      %167 = tpu.matmul %165, %166, %cst_94 {dimension_numbers = #tpu.dot_dimension_numbers<[1], [0], [0], [1], [0, 0, 1, 1], [], []>} : vector<8x128xbf16>, vector<128x128xbf16>, vector<8x128xf32> -> vector<8x128xf32>
      %c0_95 = arith.constant 0 : index
      %c0_96 = arith.constant 0 : index
      %168 = vector.load %arg17[%c0_95, %c0_96] : memref<1x128xf32, #tpu.memory_space<vmem>>, vector<1x128xf32>
      %169 = vector.broadcast %168 : vector<1x128xf32> to vector<8x128xf32>
      %170 = arith.addf %167, %169 : vector<8x128xf32>
      %171 = math.tanh %170 : vector<8x128xf32>
      %c0_97 = arith.constant 0 : index
      %c0_98 = arith.constant 0 : index
      %172 = vector.load %arg18[%c0_97, %c0_98] : memref<8x128xf32, #tpu.memory_space<vmem>>, vector<8x128xf32>
      tpu.vector_store %arg18[%c0_97, %c0_98], %171 {strides = array<i32>} : memref<8x128xf32, #tpu.memory_space<vmem>>, vector<8x128xf32>,
    } else {
    }
    return
  }
  func.func @transform_0(%arg0: i32, %arg1: i32) -> (i32, i32, i32) {
    %c0_i32 = arith.constant 0 : i32
    %c0_i32_0 = arith.constant 0 : i32
    %c0_i32_1 = arith.constant 0 : i32
    return %arg0, %c0_i32, %c0_i32_0 : i32, i32, i32
  }
  func.func @transform_1(%arg0: i32, %arg1: i32) -> (i32, i32, i32) {
    %c0_i32 = arith.constant 0 : i32
    %c0_i32_0 = arith.constant 0 : i32
    %c0_i32_1 = arith.constant 0 : i32
    return %arg0, %c0_i32, %c0_i32_0 : i32, i32, i32
  }
  func.func @transform_2(%arg0: i32, %arg1: i32) -> (i32, i32, i32) {
    %c0_i32 = arith.constant 0 : i32
    %c0_i32_0 = arith.constant 0 : i32
    %c0_i32_1 = arith.constant 0 : i32
    return %arg1, %c0_i32, %c0_i32_0 : i32, i32, i32
  }
  func.func @transform_3(%arg0: i32, %arg1: i32) -> (i32, i32, i32) {
    %c0_i32 = arith.constant 0 : i32
    %c0_i32_0 = arith.constant 0 : i32
    %c0_i32_1 = arith.constant 0 : i32
    return %arg1, %c0_i32, %c0_i32_0 : i32, i32, i32
  }
  func.func @transform_4(%arg0: i32, %arg1: i32) -> (i32, i32, i32) {
    %c0_i32 = arith.constant 0 : i32
    %c0_i32_0 = arith.constant 0 : i32
    %c0_i32_1 = arith.constant 0 : i32
    return %arg1, %c0_i32, %c0_i32_0 : i32, i32, i32
  }
  func.func @transform_5(%arg0: i32, %arg1: i32) -> (i32, i32, i32) {
    %c0_i32 = arith.constant 0 : i32
    %c0_i32_0 = arith.constant 0 : i32
    %c0_i32_1 = arith.constant 0 : i32
    return %arg1, %c0_i32, %c0_i32_0 : i32, i32, i32
  }
  func.func @transform_6(%arg0: i32, %arg1: i32) -> (i32, i32, i32) {
    %c0_i32 = arith.constant 0 : i32
    %c0_i32_0 = arith.constant 0 : i32
    %c0_i32_1 = arith.constant 0 : i32
    return %arg1, %c0_i32, %c0_i32_0 : i32, i32, i32
  }
  func.func @transform_7(%arg0: i32, %arg1: i32) -> (i32, i32, i32) {
    %c0_i32 = arith.constant 0 : i32
    %c0_i32_0 = arith.constant 0 : i32
    %c0_i32_1 = arith.constant 0 : i32
    return %arg1, %c0_i32, %c0_i32_0 : i32, i32, i32
  }
  func.func @transform_8(%arg0: i32, %arg1: i32) -> (i32, i32, i32) {
    %c0_i32 = arith.constant 0 : i32
    %c0_i32_0 = arith.constant 0 : i32
    %c0_i32_1 = arith.constant 0 : i32
    return %arg1, %c0_i32, %c0_i32_0 : i32, i32, i32
  }
  func.func @transform_9(%arg0: i32, %arg1: i32) -> (i32, i32, i32) {
    %c0_i32 = arith.constant 0 : i32
    %c0_i32_0 = arith.constant 0 : i32
    %c0_i32_1 = arith.constant 0 : i32
    return %arg1, %c0_i32, %c0_i32_0 : i32, i32, i32
  }
  func.func @transform_10(%arg0: i32, %arg1: i32) -> (i32, i32, i32) {
    %c0_i32 = arith.constant 0 : i32
    %c0_i32_0 = arith.constant 0 : i32
    %c0_i32_1 = arith.constant 0 : i32
    return %arg1, %c0_i32, %c0_i32_0 : i32, i32, i32
  }
  func.func @transform_11(%arg0: i32, %arg1: i32) -> (i32, i32, i32) {
    %c0_i32 = arith.constant 0 : i32
    %c0_i32_0 = arith.constant 0 : i32
    %c0_i32_1 = arith.constant 0 : i32
    return %arg1, %c0_i32, %c0_i32_0 : i32, i32, i32
  }
  func.func @transform_12(%arg0: i32, %arg1: i32) -> (i32, i32, i32) {
    %c0_i32 = arith.constant 0 : i32
    %c0_i32_0 = arith.constant 0 : i32
    %c0_i32_1 = arith.constant 0 : i32
    return %arg1, %c0_i32, %c0_i32_0 : i32, i32, i32
  }
  func.func @transform_13(%arg0: i32, %arg1: i32) -> (i32, i32, i32) {
    %c0_i32 = arith.constant 0 : i32
    %c0_i32_0 = arith.constant 0 : i32
    %c0_i32_1 = arith.constant 0 : i32
    return %arg1, %c0_i32, %c0_i32_0 : i32, i32, i32
  }
  func.func @transform_14(%arg0: i32, %arg1: i32) -> (i32, i32) {
    %c0_i32 = arith.constant 0 : i32
    %c0_i32_0 = arith.constant 0 : i32
    %c0_i32_1 = arith.constant 0 : i32
    return %c0_i32, %c0_i32_0 : i32, i32
  }
  func.func @transform_15(%arg0: i32, %arg1: i32) -> (i32, i32) {
    %c0_i32 = arith.constant 0 : i32
    %c0_i32_0 = arith.constant 0 : i32
    %c0_i32_1 = arith.constant 0 : i32
    return %c0_i32, %c0_i32_0 : i32, i32
  }
  func.func @transform_16(%arg0: i32, %arg1: i32) -> (i32, i32) {
    %c0_i32 = arith.constant 0 : i32
    %c0_i32_0 = arith.constant 0 : i32
    return %arg0, %c0_i32 : i32, i32
  }
}

</mosaic_0001>

<bundles_post_ra>
// kernel: tpu_custom_call.1
= control target key start
LH: loop header
LB: loop body
LE: loop exit
PB: predicated region body
PF: predicated region fallthrough
CT: control target
= control target key end

     0   :  { %s6827_s0 = inlined_call_operand.hbm [shape: bf16[8,8,128], index: 0, kind: input, shape index: {}]   ;;  %s6828_s1 = inlined_call_operand.hbm [shape: f32[8,1,8], index: 1, kind: input, shape index: {}]   ;;  %s6829_s2 = inlined_call_operand.hbm [shape: bf16[2,128,384], index: 2, kind: input, shape index: {}]   ;;  %s6830_s3 = inlined_call_operand.vmem [shape: f32[2,1,384], index: 3, kind: input, shape index: {}]   ;;  %s6831_s4 = inlined_call_operand.hbm [shape: bf16[2,128,128], index: 4, kind: input, shape index: {}]   ;;  %s6832_s5 = inlined_call_operand.vmem [shape: f32[2,1,128], index: 5, kind: input, shape index: {}]   ;;  %s6833_s6 = inlined_call_operand.vmem [shape: f32[2,1,128], index: 6, kind: input, shape index: {}]   ;;  %s6834_s7 = inlined_call_operand.vmem [shape: f32[2,1,128], index: 7, kind: input, shape index: {}]   ;;  %s6835_s8 = inlined_call_operand.hbm [shape: bf16[2,128,128], index: 8, kind: input, shape index: {}]   ;;  %s6836_s9 = inlined_call_operand.vmem [shape: f32[2,1,128], index: 9, kind: input, shape index: {}]   ;;  %s6837_s10 = inlined_call_operand.hbm [shape: bf16[2,128,128], index: 10, kind: input, shape index: {}]   ;;  %s6838_s11 = inlined_call_operand.vmem [shape: f32[2,1,128], index: 11, kind: input, shape index: {}]   ;;  %s6839_s12 = inlined_call_operand.vmem [shape: f32[2,1,128], index: 12, kind: input, shape index: {}]   ;;  %s6840_s13 = inlined_call_operand.vmem [shape: f32[2,1,128], index: 13, kind: input, shape index: {}]   ;;  %s6841_s14 = inlined_call_operand.hbm [shape: bf16[128,128], index: 14, kind: input, shape index: {}]   ;;  %s6842_s15 = inlined_call_operand.vmem [shape: f32[1,128], index: 15, kind: input, shape index: {}]   ;;  %s6843_s16 = inlined_call_operand.hbm [shape: f32[8,128], index: 16, kind: output, shape index: {}]  }
   0x1   :  { %6864 = sst [smem:[#allocation26_spill]] %s6827_s0 }
   0x2   :  { %6865 = sst [smem:[#allocation27_spill]] %s6828_s1 }
   0x3   :  { %6866 = sst [smem:[#allocation28_spill]] %s6829_s2 }
   0x4   :  { %6867 = sst [smem:[#allocation29_spill]] %s6830_s3 }
   0x5   :  { %6868 = sst [smem:[#allocation30_spill]] %s6831_s4 }
   0x6   :  { %6869 = sst [smem:[#allocation31_spill]] %s6832_s5 }
   0x7   :  { %6870 = sst [smem:[#allocation32_spill]] %s6833_s6 }
   0x8   :  { %6871 = sst [smem:[#allocation33_spill]] %s6834_s7 }
   0x9   :  { %6872 = sst [smem:[#allocation34_spill]] %s6835_s8 }
   0xa   :  { %6873 = sst [smem:[#allocation35_spill]] %s6836_s9 }
   0xb   :  { %6874 = sst [smem:[#allocation36_spill]] %s6837_s10 }
   0xc   :  { %6875 = sst [smem:[#allocation37_spill]] %s6838_s11 }
   0xd   :  { %6876 = sst [smem:[#allocation38_spill]] %s6839_s12 }
   0xe   :  { %6877 = sst [smem:[#allocation39_spill]] %s6840_s13 }
   0xf   :  { %6878 = sst [smem:[#allocation40_spill]] %s6841_s14 }
  0x10   :  { %6879 = sst [smem:[#allocation41_spill]] %s6842_s15 }
  0x11   :  { %6880 = sst [smem:[#allocation42_spill]] %s6843_s16 }
  0x12   :  { %21 = vsyncpa [#allocation6], 0 }
  0x13   :  { %22 = vsyncpa [#allocation9], 0 }
  0x14   :  { %23 = vsyncpa [#allocation7], 0  ;;  %s5699_s21 = smov 0   ;;  %s5701_s22 = smov 0  }
  0x15   :  { %s5703_s23 = smov 0   ;;  %s5705_s24 = smov 0  }
  0x16   :  { %s5707_s25 = smov 0   ;;  %s5709_s26 = smov 0  }
  0x17 LB: > { %6881 = sst [smem:[#allocation21_spill]] %s5578_s23  ;;  %s5728_s27 = sadd.s32 4294967295, %s5590_s26   ;;  %s5590_s26 = sphi %s5709_s26, %s29_s26   ;;  %s5586_s25 = sphi %s5707_s25, %s6940_s25   ;;  %s5582_s24 = sphi %s5705_s24, %s6939_s24   ;;  %s5578_s23 = sphi %s5703_s23, %s6938_s23   ;;  %s5574_s22 = sphi %s5701_s22, %s6942_s22   ;;  %s5570_s21 = sphi %s5699_s21, %s6941_s21  }
  0x18   : > { %6882 = sst [smem:[#allocation22_spill]] %s5582_s24  ;;  %p107_p0 = scmp.ne.s32.totalorder %s5578_s23, %s5574_s22 }
  0x19   : > { %6883 = sst [smem:[#allocation23_spill]] %s5586_s25  ;;  %p108_p1 = scmp.eq.s32.totalorder %s5590_s26, 0 }
  0x1a   : > { %p113_p2 = scmp.ne.s32.totalorder %s5574_s22, %s5570_s21  ;;  %p6846_p3 = scmp.eq.s32.totalorder %s5728_s27, 0 }
  0x1b   : > { %p109_p4 = por %p108_p1, %p107_p0  ;;  %p4327_p5 = scmp.ge.s32.totalorder %s5590_s26, 1 }
  0x1c   : > { %p5739_p6 = por %p6846_p3, %p113_p2  ;;  %p478_p7 = scmp.lt.s32.totalorder %s5590_s26, 3 }
  0x1d   : > { %s5592_s0 = smov [#allocation5]   ;;  %p5036_p10 = scmp.lt.s32.totalorder %s5590_s26, 2 }
  0x1e   : > { %s6884_s29 = scalar_select %p5739_p6, 1, 0 }
  0x1f   : > { %p5744_p8 = pnand %p4327_p5, %p478_p7  ;;  %s493_s17 = sshll.u32 %s5592_s0, 4  ;;  %s494_s17 = int_to_ptr.vmem [resolvable:$true] %s493_s17 }
  0x20   : > { %p5757_p12 = pnand %p5036_p10, %p109_p4  ;;  %s38_s20 = sadd.s32 1, %s5586_s25 }
  0x21   : > { %s6885_s30 = scalar_select %p5744_p8, 1, 0 }
  0x22   : > { %p5010_p9 = pneg %p5744_p8  ;;  %s6888_s16 = sld [smem:[#allocation26_spill]] }
  0x23   : > { %s6887_s19 = scalar_select %p5757_p12, 1, 0 }
  0x24   : > { %p5753_p11 = pnand %p5010_p9, %p6846_p3 }
  0x26   : > { %s6886_s18 = scalar_select %p5753_p11, 1, 0 }
  0x27   : > { %p5770_p0 = pneg %p5753_p11 }
  0x28   : > { %s5294_s15 = scalar_lea.hbm %s6888_s16, 512 }
  0x29   : > { %p5295_p13 = scmp.ne.s32.totalorder %s6888_s16, %s5294_s15  ;;  %p5301_p4 = scmp.lt.u32.totalorder %s5294_s15, %s6888_s16 }
  0x2a   : > { %s6889_s12 = scalar_select %p5770_p0, 1, 0 }
  0x2b   : > { %p5297_p1 = pnand %p5770_p0, %p5295_p13 }
  0x2d   : > { %p5298_p2 = pneg %p5297_p1 }
  0x2f   : > { %p5303_p5 = pnand %p5301_p4, %p5298_p2 }
  0x31   : > { %5306 = shalt.err (!%p5303_p5)
}
  0x32   : > { %s5307_s28 = scalar_lea.vmem %s494_s17, 512  ;;  %p5315_p3 = scmp.lt.s32.totalorder %s494_s17, %s494_s17 }
  0x33   : > { %p5308_p7 = scmp.ne.s32.totalorder %s494_s17, %s5307_s28  ;;  %p5316_p6 = scmp.lt.s32.totalorder %s5307_s28, %s5307_s28 }
  0x35   : > { %p5310_p9 = pnand %p5308_p7, %p5770_p0  ;;  %p5317_p8 = por %p5316_p6, %p5315_p3 }
  0x37   : > { %p5311_p10 = pneg %p5310_p9 }
  0x39   : > { %p5318_p12 = pnand %p5317_p8, %p5311_p10 }
  0x3b   : > { %5321 = shalt.err (!%p5318_p12)
}
  0x3c   : > { %s6851_s13 = smov 64   ;;  %s6853_s9 = smov 4  }
  0x3d   : > { %5013 = dma.hbm_to_vmem [thread:$0]  (!%p5753_p11), %s6888_s16, 512, %s494_s17, [#allocation6], %s6851_s13, %s6851_s13, %s6853_s9  }
  0x3e   : > { %p39_p3 = scmp.ge.s32.totalorder %s38_s20, 2  ;;  %s539_s21 = sand.u32 1, %s5590_s26  }
  0x3f   : > { %s541_s0 = sand.u32 1, %s5578_s23   ;;  %s4983_s7 = smul.u32 3072, %s5586_s25 }
  0x40   : > { %s6944_s20 = smov (%p39_p3, %s38_s20), 0  ;;  %s4982_s28 = smul.u32 192, %s541_s0 }
  0x41   : > { %6890 = sst [smem:[#allocation24_spill]] %s6944_s20  ;;  %s97_s3 = ssub.s32 %s5586_s25, %s6944_s20 }
  0x42   : > { %p98_p6 = scmp.eq.s32.totalorder %s97_s3, 0  ;;  %s6891_s2 = sld [smem:[#allocation28_spill]] }
  0x43   : > { %s543_s17 = scalar_lea.vmem [#allocation10], %s4982_s28  ;;  %s6892_s15 = sadd.s32 1, %s5578_s23 }
  0x44   : > { %s550_s11 = sshll.u32 %s543_s17, 4  ;;  %s5808_s9 = sshll.u32 %s541_s0, 6  ;;  %s5806_s11 = int_to_ptr.vmem [resolvable:$true] %s550_s11 }
  0x45   : > { %s5804_s13 = scalar_select %p98_p6, %s5578_s23, %s6892_s15  }
  0x46   : > { %s5810_s16 = scalar_lea.sflag [#allocation6], %s539_s21  ;;  %p6894_p12 = scmp.ne.s32.totalorder %s6887_s19, 0 }
  0x47   : > { %6893 = sst [smem:[#allocation25_spill]] %s5804_s13 }
  0x48   : > { %s5799_s24 = scalar_lea.hbm %s6891_s2, %s4983_s7  ;;  %p5816_p13 = pneg %p6894_p12 }
  0x49   : > { %s5322_s3 = scalar_lea.hbm %s5799_s24, 3072  ;;  %s5327_s28 = scalar_lea.hbm %s6891_s2, 6144 }
  0x4a   : > { %p5323_p8 = scmp.ne.s32.totalorder %s5799_s24, %s5322_s3  ;;  %p5328_p4 = scmp.lt.u32.totalorder %s5799_s24, %s6891_s2 }
  0x4b   : > { %p5329_p5 = scmp.lt.u32.totalorder %s5327_s28, %s5322_s3  ;;  %p5331_p9 = scmp.lt.u32.totalorder %s5322_s3, %s5799_s24 }
  0x4c   : > { %p5325_p1 = pnand %p5816_p13, %p5323_p8 }
  0x4d   : > { %p5330_p7 = por %p5329_p5, %p5328_p4 }
  0x4e   : > { %p5326_p2 = pneg %p5325_p1 }
  0x4f   : > { %p5332_p10 = por %p5331_p9, %p5330_p7 }
  0x51   : > { %p5333_p3 = pnand %p5332_p10, %p5326_p2 }
  0x53   : > { %5336 = shalt.err (!%p5333_p3)
}
  0x54   : > { %s5337_s21 = scalar_lea.vmem %s5806_s11, 3072  ;;  %s5595_s15 = smov [#allocation10]  }
  0x55   : > { %p5338_p6 = scmp.ne.s32.totalorder %s5806_s11, %s5337_s21  ;;  %s5342_s6 = sshll.u32 %s5595_s15, 4  ;;  %s5343_s6 = int_to_ptr.vmem [resolvable:$false] %s5342_s6 }
  0x56   : > { %s5344_s7 = scalar_lea.vmem %s5343_s6, 6144  ;;  %p5345_p11 = scmp.lt.s32.totalorder %s5806_s11, %s5343_s6 }
  0x57   : > { %p5340_p8 = pnand %p5338_p6, %p5816_p13  ;;  %p5346_p0 = scmp.lt.s32.totalorder %s5344_s7, %s5337_s21 }
  0x59   : > { %p5341_p1 = pneg %p5340_p8  ;;  %p5347_p4 = por %p5346_p0, %p5345_p11 }
  0x5b   : > { %p5348_p5 = pnand %p5347_p4, %p5341_p1 }
  0x5d   : > { %5351 = shalt.err (!%p5348_p5)
}
  0x5e   : > { %s5596_s3 = smov 192   ;;  %s5597_s28 = smov 12  }
  0x5f   : > { %5023 = dma.hbm_to_vmem [thread:$0]  (!%p6894_p12), %s5799_s24, 3072, %s5806_s11, %s5810_s16, %s5596_s3, %s5596_s3, %s5597_s28  }
  0x60   : > { %s5841_s17 = sshll.u32 %s5586_s25, 10  ;;  %s6896_s4 = sld [smem:[#allocation30_spill]] }
  0x61   : > { %s571_s6 = scalar_lea.vmem [#allocation11], %s5808_s9 }
  0x62   : > { %s578_s7 = sshll.u32 %s571_s6, 4  ;;  %s5850_s7 = int_to_ptr.vmem [resolvable:$true] %s578_s7 }
  0x66   : > { %s5847_s21 = scalar_lea.hbm %s6896_s4, %s5841_s17  ;;  %s5357_s3 = scalar_lea.hbm %s6896_s4, 2048 }
  0x67   : > { %s5352_s2 = scalar_lea.hbm %s5847_s21, 1024  ;;  %p5358_p7 = scmp.lt.u32.totalorder %s5847_s21, %s6896_s4 }
  0x68   : > { %p5353_p11 = scmp.ne.s32.totalorder %s5847_s21, %s5352_s2  ;;  %p5359_p9 = scmp.lt.u32.totalorder %s5357_s3, %s5352_s2 }
  0x69   : > { %p5361_p3 = scmp.lt.u32.totalorder %s5352_s2, %s5847_s21 }
  0x6a   : > { %p5355_p0 = pnand %p5353_p11, %p5816_p13  ;;  %p5360_p10 = por %p5359_p9, %p5358_p7 }
  0x6c   : > { %p5356_p2 = pneg %p5355_p0  ;;  %p5362_p6 = por %p5361_p3, %p5360_p10 }
  0x6e   : > { %p5363_p8 = pnand %p5362_p6, %p5356_p2 }
  0x70   : > { %5366 = shalt.err (!%p5363_p8)
}
  0x71   : > { %s5367_s15 = scalar_lea.vmem %s5850_s7, 1024  ;;  %s5598_s6 = smov [#allocation11]  }
  0x72   : > { %p5368_p1 = scmp.ne.s32.totalorder %s5850_s7, %s5367_s15  ;;  %s5372_s24 = sshll.u32 %s5598_s6, 4  ;;  %s5373_s24 = int_to_ptr.vmem [resolvable:$false] %s5372_s24 }
  0x73   : > { %s5374_s11 = scalar_lea.vmem %s5373_s24, 2048  ;;  %p5375_p11 = scmp.lt.s32.totalorder %s5850_s7, %s5373_s24 }
  0x74   : > { %p5370_p4 = pnand %p5368_p1, %p5816_p13  ;;  %p5376_p0 = scmp.lt.s32.totalorder %s5374_s11, %s5367_s15 }
  0x76   : > { %p5371_p5 = pneg %p5370_p4  ;;  %p5377_p7 = por %p5376_p0, %p5375_p11 }
  0x78   : > { %p5378_p9 = pnand %p5377_p7, %p5371_p5 }
  0x7a   : > { %5381 = shalt.err (!%p5378_p9)
}
  0x7b   : > { %s6897_s2 = smov 4   ;;  %s6898_s3 = smov 64  }
  0x7c   : > { %5026 = dma.hbm_to_vmem [thread:$0]  (!%p6894_p12), %s5847_s21, 1024, %s5850_s7, %s5810_s16, %s6898_s3, %s6898_s3, %s6897_s2  }
  0x7d   : > { %s5599_s28 = smov [#allocation8]   ;;  %s6899_s1 = sld [smem:[#allocation27_spill]] }
  0x7e   : > { %s509_s0 = sshll.u32 %s5599_s28, 4  ;;  %p6900_p10 = scmp.ne.s32.totalorder %s6889_s12, 0  ;;  %s510_s0 = int_to_ptr.vmem [resolvable:$true] %s509_s0 }
  0x83   : > { %s5382_s15 = scalar_lea.hbm %s6899_s1, 128 }
  0x84   : > { %p5383_p2 = scmp.ne.s32.totalorder %s6899_s1, %s5382_s15  ;;  %p5389_p8 = scmp.lt.u32.totalorder %s5382_s15, %s6899_s1 }
  0x86   : > { %p5385_p3 = pnand %p5383_p2, %p6900_p10 }
  0x88   : > { %p5386_p6 = pneg %p5385_p3 }
  0x8a   : > { %p5391_p1 = pnand %p5389_p8, %p5386_p6 }
  0x8c   : > { %5394 = shalt.err (!%p5391_p1)
}
  0x8d   : > { %s5395_s21 = scalar_lea.vmem %s510_s0, 128  ;;  %p5403_p0 = scmp.lt.s32.totalorder %s510_s0, %s510_s0 }
  0x8e   : > { %p5396_p4 = scmp.ne.s32.totalorder %s510_s0, %s5395_s21  ;;  %p5404_p7 = scmp.lt.s32.totalorder %s5395_s21, %s5395_s21 }
  0x90   : > { %p5398_p5 = pnand %p5396_p4, %p6900_p10  ;;  %p5405_p9 = por %p5404_p7, %p5403_p0 }
  0x92   : > { %p5399_p11 = pneg %p5398_p5 }
  0x94   : > { %p5406_p12 = pnand %p5405_p9, %p5399_p11 }
  0x96   : > { %5409 = shalt.err (!%p5406_p12)
}
  0x97   : > { %s5600_s4 = smov 16   ;;  %s5601_s25 = smov 1  }
  0x98   : > { %p6901_p2 = scmp.ne.s32.totalorder %s6886_s18, 0  ;;  %s6902_s8 = sld [smem:[#allocation34_spill]] }
  0x99   : > { %s610_s24 = scalar_lea.vmem [#allocation12], %s5808_s9  ;;  %s5602_s21 = smov [#allocation14]  }
  0x9a   : > { %5016 = dma.hbm_to_vmem [thread:$0]  (!%p6901_p2), %s6899_s1, 128, %s510_s0, [#allocation9], %s5600_s4, %s5600_s4, %s5601_s25  }
  0x9b   : > { %s617_s11 = sshll.u32 %s610_s24, 4  ;;  %s5904_s13 = sshll.u32 %s5602_s21, 4  ;;  %s5902_s11 = int_to_ptr.vmem [resolvable:$true] %s617_s11  ;;  %s523_s13 = int_to_ptr.vmem [resolvable:$true] %s5904_s13 }
  0x9e   : > { %s5899_s15 = scalar_lea.hbm %s6902_s8, %s5841_s17  ;;  %s5415_s25 = scalar_lea.hbm %s6902_s8, 2048 }
  0x9f   : > { %s5410_s23 = scalar_lea.hbm %s5899_s15, 1024  ;;  %p5416_p8 = scmp.lt.u32.totalorder %s5899_s15, %s6902_s8 }
  0xa0   : > { %p5411_p12 = scmp.ne.s32.totalorder %s5899_s15, %s5410_s23  ;;  %p5417_p1 = scmp.lt.u32.totalorder %s5415_s25, %s5410_s23 }
  0xa1   : > { %p5419_p5 = scmp.lt.u32.totalorder %s5410_s23, %s5899_s15 }
  0xa2   : > { %p5413_p3 = pnand %p5411_p12, %p5816_p13  ;;  %p5418_p4 = por %p5417_p1, %p5416_p8 }
  0xa4   : > { %p5414_p6 = pneg %p5413_p3  ;;  %p5420_p11 = por %p5419_p5, %p5418_p4 }
  0xa6   : > { %p5421_p0 = pnand %p5420_p11, %p5414_p6 }
  0xa8   : > { %5424 = shalt.err (!%p5421_p0)
}
  0xa9   : > { %s5425_s28 = scalar_lea.vmem %s5902_s11, 1024  ;;  %s5603_s6 = smov [#allocation12]  }
  0xaa   : > { %p5426_p7 = scmp.ne.s32.totalorder %s5902_s11, %s5425_s28  ;;  %s5430_s24 = sshll.u32 %s5603_s6, 4  ;;  %s5431_s24 = int_to_ptr.vmem [resolvable:$false] %s5430_s24 }
  0xab   : > { %s5432_s21 = scalar_lea.vmem %s5431_s24, 2048  ;;  %p5433_p3 = scmp.lt.s32.totalorder %s5902_s11, %s5431_s24 }
  0xac   : > { %p5428_p9 = pnand %p5426_p7, %p5816_p13  ;;  %p5434_p2 = scmp.lt.s32.totalorder %s5432_s21, %s5425_s28 }
  0xae   : > { %p5429_p12 = pneg %p5428_p9  ;;  %p5435_p8 = por %p5434_p2, %p5433_p3 }
  0xb0   : > { %p5436_p1 = pnand %p5435_p8, %p5429_p12 }
  0xb2   : > { %5439 = shalt.err (!%p5436_p1)
}
  0xb3   : > { %p6903_p6 = scmp.ne.s32.totalorder %s6887_s19, 0  ;;  %s6904_s14 = sld [smem:[#allocation40_spill]] }
  0xb5   : > { %5029 = dma.hbm_to_vmem [thread:$0]  (!%p6903_p6), %s5899_s15, 1024, %s5902_s11, %s5810_s16, %s6898_s3, %s6898_s3, %s6897_s2  }
  0xb9   : > { %s5440_s4 = scalar_lea.hbm %s6904_s14, 1024 }
  0xba   : > { %p5441_p2 = scmp.ne.s32.totalorder %s6904_s14, %s5440_s4  ;;  %p5447_p11 = scmp.lt.u32.totalorder %s5440_s4, %s6904_s14 }
  0xbc   : > { %p5443_p4 = pnand %p5441_p2, %p6900_p10 }
  0xbe   : > { %p5444_p5 = pneg %p5443_p4 }
  0xc0   : > { %p5449_p0 = pnand %p5447_p11, %p5444_p5 }
  0xc2   : > { %5452 = shalt.err (!%p5449_p0)
}
  0xc3   : > { %s5453_s6 = scalar_lea.vmem %s523_s13, 1024  ;;  %p5461_p3 = scmp.lt.s32.totalorder %s523_s13, %s523_s13 }
  0xc4   : > { %p5454_p7 = scmp.ne.s32.totalorder %s523_s13, %s5453_s6  ;;  %p5462_p8 = scmp.lt.s32.totalorder %s5453_s6, %s5453_s6 }
  0xc6   : > { %p5456_p9 = pnand %p5454_p7, %p6900_p10  ;;  %p5463_p1 = por %p5462_p8, %p5461_p3 }
  0xc8   : > { %p5457_p12 = pneg %p5456_p9 }
  0xca   : > { %p5464_p6 = pnand %p5463_p1, %p5457_p12 }
  0xcc   : > { %5467 = shalt.err (!%p5464_p6)
}
  0xcd   : > { %p6905_p2 = scmp.ne.s32.totalorder %s6886_s18, 0  ;;  %s6906_s10 = sld [smem:[#allocation36_spill]] }
  0xce   : > { %s637_s18 = scalar_lea.vmem [#allocation13], %s5808_s9 }
  0xcf   : > { %5019 = dma.hbm_to_vmem [thread:$0]  (!%p6905_p2), %s6904_s14, 1024, %s523_s13, [#allocation9], %s6898_s3, %s6898_s3, %s6897_s2  }
  0xd0   : > { %s644_s23 = sshll.u32 %s637_s18, 4  ;;  %s5960_s23 = int_to_ptr.vmem [resolvable:$true] %s644_s23 }
  0xd3   : > { %s5957_s21 = scalar_lea.hbm %s6906_s10, %s5841_s17  ;;  %s5473_s25 = scalar_lea.hbm %s6906_s10, 2048 }
  0xd4   : > { %s5468_s0 = scalar_lea.hbm %s5957_s21, 1024  ;;  %p5474_p5 = scmp.lt.u32.totalorder %s5957_s21, %s6906_s10 }
  0xd5   : > { %p5469_p10 = scmp.ne.s32.totalorder %s5957_s21, %s5468_s0  ;;  %p5475_p11 = scmp.lt.u32.totalorder %s5473_s25, %s5468_s0 }
  0xd6   : > { %p5477_p7 = scmp.lt.u32.totalorder %s5468_s0, %s5957_s21 }
  0xd7   : > { %p5471_p6 = pnand %p5469_p10, %p5816_p13  ;;  %p5476_p0 = por %p5475_p11, %p5474_p5 }
  0xd9   : > { %p5472_p4 = pneg %p5471_p6  ;;  %p5478_p9 = por %p5477_p7, %p5476_p0 }
  0xdb   : > { %p5479_p12 = pnand %p5478_p9, %p5472_p4 }
  0xdd   : > { %5482 = shalt.err (!%p5479_p12)
}
  0xde   : > { %s5483_s9 = scalar_lea.vmem %s5960_s23, 1024  ;;  %s5604_s7 = smov [#allocation13]  }
  0xdf   : > { %p5484_p3 = scmp.ne.s32.totalorder %s5960_s23, %s5483_s9  ;;  %s5488_s28 = sshll.u32 %s5604_s7, 4  ;;  %s5489_s28 = int_to_ptr.vmem [resolvable:$false] %s5488_s28 }
  0xe0   : > { %s5490_s6 = scalar_lea.vmem %s5489_s28, 2048  ;;  %p5491_p2 = scmp.lt.s32.totalorder %s5960_s23, %s5489_s28 }
  0xe1   : > { %p5486_p8 = pnand %p5484_p3, %p5816_p13  ;;  %p5492_p10 = scmp.lt.s32.totalorder %s5490_s6, %s5483_s9 }
  0xe3   : > { %p5487_p1 = pneg %p5486_p8  ;;  %p5493_p6 = por %p5492_p10, %p5491_p2 }
  0xe5   : > { %p5494_p5 = pnand %p5493_p6, %p5487_p1 }
  0xe7   : > { %5497 = shalt.err (!%p5494_p5)
}
  0xe8   : > { %p6907_p4 = scmp.ne.s32.totalorder %s6887_s19, 0  ;;  %p6908_p13 = scmp.ne.s32.totalorder %s6885_s30, 0 }
  0xe9   : > { %p6909_p11 = scmp.eq.s32.totalorder (!%p6908_p13), %s5728_s27, 0 }
  0xea   : > { %5032 = dma.hbm_to_vmem [thread:$0]  (!%p6907_p4), %s5957_s21, 1024, %s5960_s23, %s5810_s16, %s6898_s3, %s6898_s3, %s6897_s2  }
  0xeb   : > { %674 = sbr.rel (%p6908_p13) target bundleno = 3727 (0xe8f), region = 84 }
  0xf2   : > { %5549 = dma.done.wait (%p6909_p11), [#allocation6], 512   ;;  %p6910_p0 = pmov %p6909_p11 }
  0xf4   : > { %5551 = vsyncadd (%p6910_p0), [#allocation6], 4294966784  ;;  %p6911_p7 = pmov %p6910_p0 }
  0xf5   : > { %p6912_p9 = pmov %p6910_p0 }
  0xf6   : > { %5553 = dma.done.wait (%p6911_p7), [#allocation9], 128  }
  0xf7   : > { %5555 = vsyncadd (%p6912_p9), [#allocation9], 4294967168  ;;  %s684_s19 = sand.u32 1, %s5728_s27   ;;  %s686_s16 = sand.u32 1, %s5574_s22  }
  0xf8   : > { %s4984_s5 = smul.u32 192, %s686_s16  ;;  %s685_s30 = scalar_lea.sflag [#allocation6], %s684_s19 }
  0xf9   : > { %p6913_p12 = scmp.ne.s32.totalorder %s6884_s29, 0 }
  0xfa   : > { %s5999_s2 = scalar_lea.vmem [#allocation10], %s4984_s5 }
  0xfb   : > { %5557 = dma.done.wait (%p6913_p12), %s685_s30, 6144  }
  0xfc   : > { %5559 = vsyncadd (%p6913_p12), %s685_s30, 4294961152  ;;  %s4345_s3 = sshll.u32 %s686_s16, 6  ;;  %p6914_p3 = pmov %p6910_p0 }
  0xfd   : > { %s6005_s15 = scalar_lea.vmem [#allocation11], %s4345_s3  ;;  %s6007_s11 = scalar_lea.vmem [#allocation12], %s4345_s3 }
  0xfe   : > { %s6009_s12 = scalar_lea.vmem [#allocation13], %s4345_s3 }
  0xff   : > { %5561 = dma.done.wait (%p6914_p3), [#allocation9], 1024   ;;  %p6915_p8 = pmov %p6910_p0 }
 0x100   : > { %s6916_s24 = sld [smem:[#allocation22_spill]]  ;;  %s6919_s28 = sld [smem:[#allocation33_spill]] }
 0x101   : > { %5563 = vsyncadd (%p6915_p8), [#allocation9], 4294966272  ;;  %s6920_s5 = sld [smem:[#allocation29_spill]]  ;;  %s6921_s8 = sld [smem:[#allocation35_spill]] }
 0x102   : > { %s6922_s23 = sld [smem:[#allocation37_spill]]  ;;  %s6923_s25 = sld [smem:[#allocation38_spill]] }
 0x103   : > { %s6924_s7 = sld [smem:[#allocation39_spill]] }
 0x106   : > { %p805_p1 = scmp.lt.s32.totalorder %s6916_s24, 1  ;;  %p4349_p2 = scmp.ne.s32.totalorder %s6916_s24, 0 }
 0x107   : > { %v4511_v0 = vld [vmem:[#allocation5] sm:$0xff] (!%p4349_p2)   ;;  %v4526_v1 = vld [vmem:[#allocation5 + $0x8] sm:$0xff] (!%p4349_p2)   ;;  %v4527_v2 = vld [vmem:[#allocation5 + $0x10] sm:$0xff] (!%p4349_p2)   ;;  %v5605_v8 = vmov (!%p4349_p2), 0  }
 0x108   : > { %s6017_s21 = scalar_select %p805_p1, %s6916_s24, 1 }
 0x109   : > { %834 = sbr.rel (%p4349_p2) target bundleno = 272 (0x110), region = 116  ;;  %v4512_v3 = vunpack.c.l.bf16 (!%p4349_p2), %v4511_v0  ;;  %v4513_v4 = vunpack.c.h.bf16 (!%p4349_p2), %v4511_v0  ;;  %v4516_v5 = vunpack.c.l.bf16 (!%p4349_p2), %v4526_v1  ;;  %v4517_v6 = vunpack.c.h.bf16 (!%p4349_p2), %v4526_v1  ;;  %v4528_v7 = vld [vmem:[#allocation5 + $0x18] sm:$0xff] (!%p4349_p2)   ;;  %859 = vst [vmem:[#allocation4] sm:$0xff] (!%p4349_p2), %v5605_v8  ;;  %860 = vst [vmem:[#allocation4 + $0x8] sm:$0xff] (!%p4349_p2), %v5605_v8 }
 0x10a   : > { %s4985_s29 = smul.u32 3, %s6017_s21  ;;  %s817_s6 = scalar_lea.vmem %s6919_s28, %s6017_s21  ;;  %861 = vst [vmem:[#allocation4 + $0x10] sm:$0xff] (!%p4349_p2), %v5605_v8  ;;  %862 = vst [vmem:[#allocation4 + $0x18] sm:$0xff] (!%p4349_p2), %v5605_v8  ;;  %v4520_v9 = vunpack.c.l.bf16 (!%p4349_p2), %v4527_v2  ;;  %v4521_v10 = vunpack.c.h.bf16 (!%p4349_p2), %v4527_v2  ;;  %v4524_v11 = vunpack.c.l.bf16 (!%p4349_p2), %v4528_v7  ;;  %v4525_v12 = vunpack.c.h.bf16 (!%p4349_p2), %v4528_v7 }
 0x10b   : > { %s820_s10 = scalar_lea.vmem %s6921_s8, %s6017_s21  ;;  %s823_s0 = scalar_lea.vmem %s6922_s23, %s6017_s21  ;;  %851 = vst [vmem:[#allocation2] sm:$0xff] (!%p4349_p2), %v4512_v3  ;;  %852 = vst [vmem:[#allocation2 + $0x8] sm:$0xff] (!%p4349_p2), %v4513_v4 }
 0x10c   : > { %s6035_s30 = scalar_lea.vmem %s6920_s5, %s4985_s29  ;;  %s826_s20 = scalar_lea.vmem %s6923_s25, %s6017_s21  ;;  %853 = vst [vmem:[#allocation2 + $0x10] sm:$0xff] (!%p4349_p2), %v4516_v5  ;;  %854 = vst [vmem:[#allocation2 + $0x18] sm:$0xff] (!%p4349_p2), %v4517_v6 }
 0x10d   : > { %s829_s28 = scalar_lea.vmem %s6924_s7, %s6017_s21  ;;  %855 = vst [vmem:[#allocation2 + $0x20] sm:$0xff] (!%p4349_p2), %v4520_v9  ;;  %856 = vst [vmem:[#allocation2 + $0x28] sm:$0xff] (!%p4349_p2), %v4521_v10 }
 0x10e   : > { %857 = vst [vmem:[#allocation2 + $0x30] sm:$0xff] (!%p4349_p2), %v4524_v11  ;;  %858 = vst [vmem:[#allocation2 + $0x38] sm:$0xff] (!%p4349_p2), %v4525_v12 }
 0x110 PF: > { %v5108_v13 = vld [vmem:[%s5999_s2 + $0x4] ss:$12 sps:$4 sm:$0xff]   ;;  %v5110_v14 = vld [vmem:[%s5999_s2] ss:$12 sps:$4 sm:$0xff]   ;;  %v5606_v15 = vmov 0   ;;  %v5607_v50 = vmov 0.0   ;;  %v917_v51 = vlaneseq }
 0x111   : > { %1092 = vmatprep.mubr.bf16.mxu0 %v5606_v15  ;;  %1060 = vmatprep.subr.bf16.mxu0 %v5108_v13  ;;  %v5111_v16 = vld [vmem:[%s5999_s2 + $0x1c] ss:$12 sps:$4 sm:$0xff]   ;;  %v5113_v17 = vld [vmem:[%s5999_s2 + $0x18] ss:$12 sps:$4 sm:$0xff]   ;;  %v5114_v18 = vld [vmem:[%s5999_s2 + $0x34] ss:$12 sps:$4 sm:$0xff]  }
 0x112   : > { %1061 = vmatpush1.bf16.msra.mxu0 %v5110_v14  ;;  %v5116_v19 = vld [vmem:[%s5999_s2 + $0x30] ss:$12 sps:$4 sm:$0xff]   ;;  %v5117_v20 = vld [vmem:[%s5999_s2 + $0x4c] ss:$12 sps:$4 sm:$0xff]   ;;  %v5119_v22 = vld [vmem:[%s5999_s2 + $0x48] ss:$12 sps:$4 sm:$0xff]  }
 0x113   : > { %1062 = vmatprep.subr.bf16.mxu0 %v5111_v16  ;;  %v863_v21 = vld [vmem:[#allocation2] sm:$0xff]  ;;  %v864_v23 = vld [vmem:[#allocation2 + $0x8] sm:$0xff]  ;;  %v5132_v27 = vld [vmem:[%s5999_s2 + $0x8] ss:$12 sps:$4 sm:$0xff]   ;;  %vm5608_vm0 = vmmov 0   ;;  %v918_v52 = vshrl.u32 %v917_v51, 7 }
 0x114   : > { %v5120_v24 = vld [vmem:[%s5999_s2 + $0x64] ss:$12 sps:$4 sm:$0xff]   ;;  %v879_v25 = vpack.c.bf16 %v864_v23, %v863_v21  ;;  %v5122_v26 = vld [vmem:[%s5999_s2 + $0x60] ss:$12 sps:$4 sm:$0xff]   ;;  %v5123_v29 = vld [vmem:[%s5999_s2 + $0x7c] ss:$12 sps:$4 sm:$0xff]   ;;  %4674 = vmatprep.subr.bf16.mxu1 %v5132_v27 }
 0x115   : > { %v5133_v28 = vld [vmem:[%s5999_s2 + $0x20] ss:$12 sps:$4 sm:$0xff]   ;;  %4675 = vmatpush3.bf16.msra.mxu1 %v5132_v27  ;;  %v5134_v30 = vld [vmem:[%s5999_s2 + $0x38] ss:$12 sps:$4 sm:$0xff]   ;;  %v5128_v33 = vld [vmem:[%s5999_s2 + $0x90] ss:$12 sps:$4 sm:$0xff]  }
 0x116   : > { %1063 = vmatpush1.bf16.msra.mxu0 %v5113_v17  ;;  %4690 = vmatprep.mubr.bf16.mxu1 %v879_v25  ;;  %v5125_v31 = vld [vmem:[%s5999_s2 + $0x78] ss:$12 sps:$4 sm:$0xff]   ;;  %v5126_v32 = vld [vmem:[%s5999_s2 + $0x94] ss:$12 sps:$4 sm:$0xff]   ;;  %v5135_v34 = vld [vmem:[%s5999_s2 + $0x50] ss:$12 sps:$4 sm:$0xff]  }
 0x117   : > { %1064 = vmatprep.subr.bf16.mxu0 %v5114_v18  ;;  %4676 = vmatprep.subr.bf16.mxu1 %v5133_v28  ;;  %v5129_v35 = vld [vmem:[%s5999_s2 + $0xac] ss:$12 sps:$4 sm:$0xff]   ;;  %v5136_v36 = vld [vmem:[%s5999_s2 + $0x68] ss:$12 sps:$4 sm:$0xff]   ;;  %v5139_v43 = vld [vmem:[%s5999_s2 + $0xb0] ss:$12 sps:$4 sm:$0xff]  }
 0x118   : > { %v5131_v37 = vld [vmem:[%s5999_s2 + $0xa8] ss:$12 sps:$4 sm:$0xff]   ;;  %v5137_v38 = vld [vmem:[%s5999_s2 + $0x80] ss:$12 sps:$4 sm:$0xff]   ;;  %v5138_v39 = vld [vmem:[%s5999_s2 + $0x98] ss:$12 sps:$4 sm:$0xff]  }
 0x119   : > { %4677 = vmatpush3.bf16.msra.mxu1 %v5133_v28  ;;  %v865_v40 = vld [vmem:[#allocation2 + $0x10] sm:$0xff]  ;;  %v866_v41 = vld [vmem:[#allocation2 + $0x18] sm:$0xff]  ;;  %v867_v44 = vld [vmem:[#allocation2 + $0x20] sm:$0xff]  ;;  %v923_v53 = vsub.s32 1, %v918_v52  ;;  %v919_v56 = vsub.s32 0, %v918_v52  ;;  %vm1342_vm1 = vcmask 130048  }
 0x11a   : > { %1065 = vmatpush1.bf16.msra.mxu0 %v5116_v19  ;;  %4678 = vmatprep.subr.bf16.mxu1 %v5134_v30  ;;  %v880_v42 = vpack.c.bf16 %v866_v41, %v865_v40  ;;  %v868_v45 = vld [vmem:[#allocation2 + $0x28] sm:$0xff]  ;;  %v869_v47 = vld [vmem:[#allocation2 + $0x30] sm:$0xff]  ;;  %v870_v48 = vld [vmem:[#allocation2 + $0x38] sm:$0xff]  ;;  %v927_v2 = vsub.s32 2, %v918_v52  ;;  %vm1811_vm2 = vcmask 1043456   ;;  %vm1711_vm3 = vcmask 64512  }
 0x11b   : > { %1066 = vmatprep.subr.bf16.mxu0 %v5117_v20  ;;  %v881_v46 = vpack.c.bf16 %v868_v45, %v867_v44  ;;  %v882_v49 = vpack.c.bf16 %v870_v48, %v869_v47  ;;  %v915_v54 = vld [vmem:[%s6035_s30] sm:$0x7]  ;;  %s5609_s1 = smov 112   ;;  %s5610_s8 = smov 16   ;;  %vm3157_vm4 = vcmask 261248  }
 0x11c   : > { %v6090_v55 = vrot.slane %v915_v54, %v923_v53  ;;  %v6093_v62 = vrot.slane %v915_v54, %v919_v56  ;;  %v6104_v9 = vrot.slane %v915_v54, %v927_v2  ;;  %s6927_s4 = sld [smem:[#allocation32_spill]] }
 0x11d   : > { %4679 = vmatpush3.bf16.msra.mxu1 %v5134_v30 }
 0x11e   : > { %1067 = vmatpush1.bf16.msra.mxu0 %v5119_v22  ;;  %4680 = vmatprep.subr.bf16.mxu1 %v5135_v34 }
 0x11f   : > { %1068 = vmatprep.subr.bf16.mxu0 %v5120_v24 }
 0x121   : > { %4681 = vmatpush3.bf16.msra.mxu1 %v5135_v34 }
 0x122   : > { %1069 = vmatpush1.bf16.msra.mxu0 %v5122_v26  ;;  %4682 = vmatprep.subr.bf16.mxu1 %v5136_v36  ;;  %s6928_s17 = scalar_lea.vmem %s6927_s4, %s6017_s21 }
 0x123   : > { %1070 = vmatprep.subr.bf16.mxu0 %v5123_v29 }
 0x125   : > { %4683 = vmatpush3.bf16.msra.mxu1 %v5136_v36 }
 0x126   : > { %1071 = vmatpush1.bf16.msra.mxu0 %v5125_v31  ;;  %4684 = vmatprep.subr.bf16.mxu1 %v5137_v38 }
 0x127   : > { %1072 = vmatprep.subr.bf16.mxu0 %v5126_v32 }
 0x129   : > { %4685 = vmatpush3.bf16.msra.mxu1 %v5137_v38 }
 0x12a   : > { %1073 = vmatpush1.bf16.msra.mxu0 %v5128_v33  ;;  %4686 = vmatprep.subr.bf16.mxu1 %v5138_v39 }
 0x12b   : > { %1074 = vmatprep.subr.bf16.mxu0 %v5129_v35 }
 0x12d   : > { %4687 = vmatpush3.bf16.msra.mxu1 %v5138_v39 }
 0x12e   : > { %1075 = vmatpush1.bf16.msra.mxu0 %v5131_v37  ;;  %4688 = vmatprep.subr.bf16.mxu1 %v5139_v43 }
 0x12f   : > { %4734 = vmatprep.subr.bf16.mxu0 %v5607_v50 }
 0x131   : > { %1093 = vmatmul.mubr.bf16.vlgmr.msra.gmra.mrb[0].mxu0 %v879_v25  ;;  %4689 = vmatpush3.bf16.msra.mxu1 %v5139_v43 }
 0x132   : > { %1102 = vmatprep.mubr.bf16.mxu0 %v5606_v15  ;;  %4698 = vmatprep.subr.bf16.mxu1 %v5607_v50 }
 0x134   : > { %4691 = vmatmul.mubr.bf16.vlgmr.msra.gmra.mrb[0].mxu1 %v880_v42 }
 0x135   : > { %4694 = vmatprep.mubr.bf16.mxu1 %v881_v46 }
 0x139   : > { %1103 = vmatmul.mubr.bf16.gmra.mrb[4].mxu0 %v880_v42 }
 0x13a   : > { %1112 = vmatprep.mubr.bf16.mxu0 %v5606_v15 }
 0x13c   : > { %4695 = vmatmul.mubr.bf16.gmra.mrb[4].mxu1 %v882_v49 }
 0x13d   : > { %4700 = vmatprep.mubr.msk.bf16.mxu1 %vm5608_vm0, %v5607_v50 }
 0x141   : > { %1113 = vmatmul.mubr.bf16.gmra.mrb[8].mxu0 %v881_v46 }
 0x142   : > { %1122 = vmatprep.mubr.bf16.mxu0 %v5606_v15 }
 0x149   : > { %1123 = vmatmul.mubr.bf16.gmra.mrb[12].mxu0 %v882_v49 }
 0x14a   : > { %4736 = vmatprep.mubr.msk.bf16.mxu0 %vm5608_vm0, %v5607_v50 }
 0x204   : > { %v1094_v57 = vpop.f32.mrb[0].mxu0 }
 0x205   : > { %v1096_v58 = vpop.f32.mrb[1].mxu0  ;;  %v1095_v3 = vadd.f32 %v1094_v57, %v6093_v62 }
 0x206   : > { %v1097_v59 = vadd.f32 %v1096_v58, %v6090_v55  ;;  %v1098_v60 = vpop.f32.mrb[2].mxu0 }
 0x207   : > { %v1100_v61 = vpop.f32.mrb[3].mxu0  ;;  %v6106_v10 = vpack.c.bf16 %v1095_v3, %v1095_v3  ;;  %v4692_v13 = vpop.f32.mrb[0].mxu1  ;;  %v1099_v16 = vadd.f32 %v1098_v60, %v6093_v62 }
 0x208   : > { %v6095_v63 = vpack.c.bf16 %v1097_v59, %v1097_v59  ;;  %v1101_v1 = vadd.f32 %v1100_v61, %v6090_v55  ;;  %v6116_v14 = vadd.f32 %v4692_v13, %v6104_v9  ;;  %v1167_v15 = vpop.f32.mrb[1].mxu1 }
 0x209   : > { %v4693_v19 = vpop.f32.mrb[2].mxu1  ;;  %v6127_v25 = vpack.c.bf16 %v1099_v16, %v1099_v16  ;;  %v1168_v48 = vadd.f32 %v1167_v15, %v6104_v9 }
 0x20a   : > { %v1347_v0 = vsel %vm1342_vm1, %v6095_v63, 0  ;;  %v6102_v6 = vpack.c.bf16 %v1101_v1, %v1101_v1  ;;  %v6123_v21 = vadd.f32 %v4693_v19, %v6104_v9  ;;  %v6125_v22 = vpop.f32.mrb[3].mxu1 }
 0x20b   : > { %4699 = vmatpush3.bf16.xpose.msra.mxu1 %v1347_v0  ;;  %v6173_v54 = vpack.c.bf16 %v1168_v48, %v1168_v48 }
 0x20c   : > { %4704 = vmatprep.subr.bf16.mxu1 %v5607_v50  ;;  %v1104_v4 = vpop.f32.mrb[4].mxu0  ;;  %v1393_v12 = vsel %vm1342_vm1, %v6102_v6, 0 }
 0x20d   : > { %v1106_v5 = vpop.f32.mrb[5].mxu0  ;;  %v1105_v31 = vadd.f32 %v1104_v4, %v6093_v62  ;;  %v1813_v61 = vsel %vm1811_vm2, %v6173_v54, 0 }
 0x20e   : > { %v1108_v7 = vpop.f32.mrb[6].mxu0  ;;  %v1107_v11 = vadd.f32 %v1106_v5, %v6090_v55 }
 0x20f   : > { %v1110_v8 = vpop.f32.mrb[7].mxu0  ;;  %v4696_v28 = vpop.f32.mrb[4].mxu1  ;;  %v6153_v43 = vpack.c.bf16 %v1105_v31, %v1105_v31  ;;  %v1109_v49 = vadd.f32 %v1108_v7, %v6093_v62 }
 0x210   : > { %v6119_v17 = vpack.c.bf16 %v1107_v11, %v1107_v11  ;;  %v1111_v27 = vadd.f32 %v1110_v8, %v6090_v55  ;;  %v6137_v29 = vadd.f32 %v4696_v28, %v6104_v9  ;;  %v1183_v30 = vpop.f32.mrb[5].mxu1 }
 0x211   : > { %v6142_v33 = vadd.f32 %v1183_v30, %v6104_v9  ;;  %v4697_v34 = vpop.f32.mrb[6].mxu1  ;;  %v6175_v56 = vpack.c.bf16 %v1109_v49, %v1109_v49 }
 0x212   : > { %4701 = vmatmul.mubr.msk.bf16.vlgmr.msra.gmra.mrb[8].mxu1 %vm1342_vm1, %v6106_v10  ;;  %v1439_v26 = vsel %vm1342_vm1, %v6119_v17, 0  ;;  %v6145_v36 = vadd.f32 %v4697_v34, %v6104_v9  ;;  %v1186_v37 = vpop.f32.mrb[7].mxu1  ;;  %v6147_v38 = vpack.c.bf16 %v1111_v27, %v1111_v27 }
 0x213   : > { %4705 = vmatpush3.bf16.xpose.msra.mxu1 %v1393_v12  ;;  %4706 = vmatprep.mubr.msk.bf16.mxu1 %vm5608_vm0, %v5607_v50  ;;  %v6151_v41 = vadd.f32 %v1186_v37, %v6104_v9 }
 0x214   : > { %4710 = vmatprep.subr.bf16.mxu1 %v5607_v50  ;;  %v1114_v18 = vpop.f32.mrb[8].mxu0  ;;  %v1485_v46 = vsel %vm1342_vm1, %v6147_v38, 0 }
 0x215   : > { %v1116_v20 = vpop.f32.mrb[9].mxu0  ;;  %v1115_v60 = vadd.f32 %v1114_v18, %v6093_v62 }
 0x216   : > { %v1118_v23 = vpop.f32.mrb[10].mxu0  ;;  %v1117_v44 = vadd.f32 %v1116_v20, %v6090_v55 }
 0x217   : > { %v1120_v24 = vpop.f32.mrb[11].mxu0  ;;  %v6196_v1 = vpack.c.bf16 %v1115_v60, %v1115_v60  ;;  %v1119_v4 = vadd.f32 %v1118_v23, %v6093_v62  ;;  %v6240_v23 = vld [vmem:[#allocation8 + $0x1] ss:$0 sm:$0xff] }
 0x218   : > { %v6168_v52 = vpack.c.bf16 %v1117_v44, %v1117_v44  ;;  %v1121_v58 = vadd.f32 %v1120_v24, %v6090_v55  ;;  %v6248_v44 = vld [vmem:[#allocation8 + $0x3] ss:$0 sm:$0xff] }
 0x219   : > { %v6210_v7 = vpack.c.bf16 %v1119_v4, %v1119_v4  ;;  %v6254_v4 = vld [vmem:[#allocation8 + $0x6] ss:$0 sm:$0xff] }
 0x21a   : > { %4707 = vmatmul.mubr.msk.bf16.vlgmr.msra.gmra.mrb[12].mxu1 %vm1342_vm1, %v6127_v25  ;;  %v1531_v57 = vsel %vm1342_vm1, %v6168_v52, 0  ;;  %v6189_v0 = vpack.c.bf16 %v1121_v58, %v1121_v58 }
 0x21b   : > { %4711 = vmatpush3.bf16.xpose.msra.mxu1 %v1439_v26  ;;  %4712 = vmatprep.mubr.msk.bf16.mxu1 %vm5608_vm0, %v5607_v50 }
 0x21c   : > { %4716 = vmatprep.subr.bf16.mxu1 %v5607_v50  ;;  %v1124_v32 = vpop.f32.mrb[12].mxu0  ;;  %v1577_v2 = vsel %vm1342_vm1, %v6189_v0, 0 }
 0x21d   : > { %v1126_v35 = vpop.f32.mrb[13].mxu0  ;;  %v1125_v53 = vadd.f32 %v1124_v32, %v6093_v62  ;;  %v6244_v32 = vld [vmem:[#allocation8 + $0x2] ss:$0 sm:$0xff] }
 0x21e   : > { %v1127_v39 = vadd.f32 %v1126_v35, %v6090_v55  ;;  %v1128_v40 = vpop.f32.mrb[14].mxu0 }
 0x21f   : > { %v1130_v42 = vpop.f32.mrb[15].mxu0  ;;  %v6180_v59 = vpack.c.bf16 %v1125_v53, %v1125_v53  ;;  %v1129_v11 = vadd.f32 %v1128_v40, %v6093_v62  ;;  %v6233_v62 = vld [vmem:[#allocation8] ss:$0 sm:$0xff] }
 0x220   : > { %v6156_v45 = vpack.c.bf16 %v1127_v39, %v1127_v39  ;;  %v1131_v3 = vadd.f32 %v1130_v42, %v6090_v55  ;;  %v1171_v55 = vadd.f32 %v6125_v22, %v6104_v9 }
 0x221   : > { %v6224_v13 = vpack.c.bf16 %v1129_v11, %v1129_v11 }
 0x222   : > { %4713 = vmatmul.mubr.msk.bf16.vlgmr.msra.gmra.mrb[16].mxu1 %vm1342_vm1, %v6153_v43  ;;  %v1623_v47 = vsel %vm1342_vm1, %v6156_v45, 0  ;;  %v6207_v5 = vpack.c.bf16 %v1131_v3, %v1131_v3  ;;  %v6221_v12 = vpack.c.bf16 %v1171_v55, %v1171_v55  ;;  %v6252_v3 = vld [vmem:[#allocation8 + $0x4] ss:$0 sm:$0xff] }
 0x223   : > { %4717 = vmatpush3.bf16.xpose.msra.mxu1 %v1485_v46  ;;  %4718 = vmatprep.mubr.msk.bf16.mxu1 %vm5608_vm0, %v5607_v50 }
 0x224   : > { %4722 = vmatprep.subr.bf16.mxu1 %v5607_v50  ;;  %4735 = vmatpush3.bf16.xpose.msra.mxu0 %v1623_v47  ;;  %v1669_v8 = vsel %vm1342_vm1, %v6207_v5, 0  ;;  %v1859_v15 = vsel %vm1811_vm2, %v6221_v12, 0 }
 0x225   : > { %4746 = vmatprep.subr.bf16.mxu0 %v5607_v50 }
 0x22a   : > { %4719 = vmatmul.mubr.msk.bf16.vlgmr.msra.gmra.mrb[20].mxu1 %vm1342_vm1, %v6175_v56 }
 0x22b   : > { %4723 = vmatpush3.bf16.xpose.msra.mxu1 %v1531_v57  ;;  %4724 = vmatprep.mubr.msk.bf16.mxu1 %vm5608_vm0, %v5607_v50 }
 0x22c   : > { %4728 = vmatprep.subr.bf16.mxu1 %v5607_v50  ;;  %4737 = vmatmul.mubr.msk.bf16.vlgmr.msra.gmra.mrb[16].mxu0 %vm1342_vm1, %v6180_v59 }
 0x22d   : > { %4747 = vmatpush3.bf16.msra.mxu0 %v1813_v61  ;;  %4748 = vmatprep.mubr.msk.bf16.mxu0 %vm5608_vm0, %v5607_v50 }
 0x22e   : > { %4758 = vmatprep.subr.bf16.mxu0 %v5607_v50 }
 0x232   : > { %4725 = vmatmul.mubr.msk.bf16.vlgmr.msra.gmra.mrb[24].mxu1 %vm1342_vm1, %v6196_v1 }
 0x233   : > { %4729 = vmatpush3.bf16.xpose.msra.mxu1 %v1577_v2  ;;  %4730 = vmatprep.mubr.msk.bf16.mxu1 %vm5608_vm0, %v5607_v50 }
 0x234   : > { %4740 = vmatprep.subr.bf16.mxu1 %v5607_v50 }
 0x23a   : > { %4731 = vmatmul.mubr.msk.bf16.vlgmr.msra.gmra.mrb[28].mxu1 %vm1342_vm1, %v6210_v7 }
 0x23b   : > { %4741 = vmatpush3.bf16.xpose.msra.mxu1 %v1669_v8  ;;  %4742 = vmatprep.mubr.msk.bf16.mxu1 %vm5608_vm0, %v5607_v50 }
 0x23c   : > { %4752 = vmatprep.subr.bf16.mxu1 %v5607_v50 }
 0x242   : > { %4743 = vmatmul.mubr.msk.bf16.vlgmr.msra.gmra.mrb[32].mxu1 %vm1342_vm1, %v6224_v13 }
 0x243   : > { %4753 = vmatpush3.bf16.msra.mxu1 %v1859_v15  ;;  %4754 = vmatprep.mubr.msk.bf16.mxu1 %vm5608_vm0, %v5607_v50 }
 0x244   : > { %4764 = vmatprep.subr.bf16.mxu1 %v5607_v50 }
 0x2e5   : > { %v1383_v9 = vpop.f32.mrb[8].mxu1 }
 0x2e6   : > { %v6236_v16 = vadd.f32 %v6233_v62, %v1383_v9  ;;  %v4702_v18 = vpop.f32.mrb[9].mxu1 }
 0x2e7   : > { %v1386_v19 = vpop.f32.mrb[10].mxu1 }
 0x2e8   : > { %v4703_v20 = vpop.f32.mrb[11].mxu1  ;;  %v1712_v22 = vsel %vm1711_vm3, %v6236_v16, -inf }
 0x2e9   : > { %1713 = vmax.xlane.f32.xlu0 %v1712_v22  ;;  %v6260_v22 = vld [vmem:[#allocation8 + $0x5] ss:$0 sm:$0xff] }
 0x2ed   : > { %v1429_v24 = vpop.f32.mrb[12].mxu1 }
 0x2ee   : > { %v1430_v26 = vadd.f32 %v6240_v23, %v1429_v24  ;;  %v4708_v27 = vpop.f32.mrb[13].mxu1 }
 0x2ef   : > { %v1432_v28 = vpop.f32.mrb[14].mxu1 }
 0x2f0   : > { %v4709_v30 = vpop.f32.mrb[15].mxu1  ;;  %v1715_v31 = vsel %vm1711_vm3, %v1430_v26, -inf }
 0x2f1   : > { %1716 = vmax.xlane.f32.xlu0 %v1715_v31 }
 0x2f5   : > { %v1475_v34 = vpop.f32.mrb[16].mxu1 }
 0x2f6   : > { %v1476_v35 = vadd.f32 %v6244_v32, %v1475_v34  ;;  %v4714_v37 = vpop.f32.mrb[17].mxu1 }
 0x2f7   : > { %v1478_v39 = vpop.f32.mrb[18].mxu1  ;;  %v6264_v37 = vld [vmem:[#allocation8 + $0x7] ss:$0 sm:$0xff] }
 0x2f8   : > { %v4715_v40 = vpop.f32.mrb[19].mxu1  ;;  %v1718_v42 = vsel %vm1711_vm3, %v1476_v35, -inf }
 0x2f9   : > { %1719 = vmax.xlane.f32.xlu1 %v1718_v42 }
 0x2fd   : > { %v1521_v46 = vpop.f32.mrb[20].mxu1 }
 0x2fe   : > { %v1522_v47 = vadd.f32 %v6248_v44, %v1521_v46  ;;  %v4720_v48 = vpop.f32.mrb[21].mxu1 }
 0x2ff   : > { %v1524_v49 = vpop.f32.mrb[22].mxu1  ;;  %v1659_v53 = vpop.f32.mrb[16].mxu0 }
 0x300   : > { %v4721_v57 = vpop.f32.mrb[23].mxu1  ;;  %v1721_v58 = vsel %vm1711_vm3, %v1522_v47, -inf  ;;  %v4738_v60 = vpop.f32.mrb[17].mxu0  ;;  %v1660_v11 = vadd.f32 %v6254_v4, %v1659_v53 }
 0x301   : > { %1722 = vmax.xlane.f32.xlu1 %v1721_v58  ;;  %v1662_v61 = vpop.f32.mrb[18].mxu0 }
 0x302   : > { %v4739_v2 = vpop.f32.mrb[19].mxu0  ;;  %v1730_v20 = vsel %vm1711_vm3, %v1660_v11, -inf }
 0x305   : > { %v1567_v8 = vpop.f32.mrb[24].mxu1 }
 0x306   : > { %v1568_v55 = vadd.f32 %v6252_v3, %v1567_v8  ;;  %v4726_v15 = vpop.f32.mrb[25].mxu1 }
 0x307   : > { %v1570_v9 = vpop.f32.mrb[26].mxu1 }
 0x308   : > { %v1724_v18 = vsel %vm1711_vm3, %v1568_v55, -inf  ;;  %v4727_v19 = vpop.f32.mrb[27].mxu1 }
 0x309   : > { %1725 = vmax.xlane.f32.xlu0 %v1724_v18 }
 0x30d   : > { %1731 = vmax.xlane.f32.xlu0 %v1730_v20  ;;  %v1613_v24 = vpop.f32.mrb[28].mxu1 }
 0x30e   : > { %v1614_v27 = vadd.f32 %v6260_v22, %v1613_v24  ;;  %v4732_v28 = vpop.f32.mrb[29].mxu1 }
 0x30f   : > { %v1616_v30 = vpop.f32.mrb[30].mxu1 }
 0x310   : > { %v1727_v31 = vsel %vm1711_vm3, %v1614_v27, -inf  ;;  %v4733_v34 = vpop.f32.mrb[31].mxu1 }
 0x311   : > { %1728 = vmax.xlane.f32.xlu1 %v1727_v31 }
 0x315   : > { %v1705_v39 = vpop.f32.mrb[32].mxu1 }
 0x316   : > { %v6267_v40 = vadd.f32 %v6264_v37, %v1705_v39  ;;  %v4744_v42 = vpop.f32.mrb[33].mxu1 }
 0x317   : > { %v1708_v46 = vpop.f32.mrb[34].mxu1 }
 0x318   : > { %v1733_v48 = vsel %vm1711_vm3, %v6267_v40, -inf  ;;  %v4745_v49 = vpop.f32.mrb[35].mxu1 }
 0x319   : > { %1734 = vmax.xlane.f32.xlu1 %v1733_v48 }
 0x376   : > { %v1714_v53 = vpop.xlane.xlu0 %1713 }
 0x377   : > { %v1736_v57 = vsub.f32 %v6236_v16, %v1714_v53 }
 0x379   : > { %v1744_v58 = vmul.f32 1.442695, %v1736_v57 }
 0x37b   : > { %5164 = vpow2.f32 %v1744_v58 }
 0x37e   : > { %v1717_v60 = vpop.xlane.xlu0 %1716 }
 0x37f   : > { %v1737_v61 = vsub.f32 %v1430_v26, %v1717_v60 }
 0x381   : > { %v1746_v2 = vmul.f32 1.442695, %v1737_v61 }
 0x383   : > { %5166 = vpow2.f32 %v1746_v2 }
 0x385   : > { %v6272_v8 = vpop.eup %5164 }
 0x386   : > { %v1720_v15 = vpop.xlane.xlu1 %1719  ;;  %v1760_v9 = vsel %vm1711_vm3, %v6272_v8, 0.0 }
 0x387   : > { %v1738_v18 = vsub.f32 %v1476_v35, %v1720_v15  ;;  %1761 = vadd.xlane.f32.xlu0 %v1760_v9 }
 0x389   : > { %v1748_v19 = vmul.f32 1.442695, %v1738_v18 }
 0x38b   : > { %5168 = vpow2.f32 %v1748_v19 }
 0x38d   : > { %v6276_v20 = vpop.eup %5166 }
 0x38e   : > { %v1723_v24 = vpop.xlane.xlu1 %1722  ;;  %v1763_v16 = vsel %vm1711_vm3, %v6276_v20, 0.0 }
 0x38f   : > { %v1739_v28 = vsub.f32 %v1522_v47, %v1723_v24  ;;  %1764 = vadd.xlane.f32.xlu1 %v1763_v16 }
 0x391   : > { %v1750_v26 = vmul.f32 1.442695, %v1739_v28 }
 0x393   : > { %5170 = vpow2.f32 %v1750_v26 }
 0x395   : > { %v6280_v30 = vpop.eup %5168 }
 0x396   : > { %v1726_v31 = vpop.xlane.xlu0 %1725  ;;  %v1766_v34 = vsel %vm1711_vm3, %v6280_v30, 0.0 }
 0x397   : > { %v1740_v35 = vsub.f32 %v1568_v55, %v1726_v31  ;;  %1767 = vadd.xlane.f32.xlu0 %v1766_v34 }
 0x399   : > { %v1752_v39 = vmul.f32 1.442695, %v1740_v35 }
 0x39a   : > { %v1732_v42 = vpop.xlane.xlu0 %1731 }
 0x39b   : > { %5172 = vpow2.f32 %v1752_v39  ;;  %v1742_v46 = vsub.f32 %v1660_v11, %v1732_v42 }
 0x39d   : > { %v6284_v48 = vpop.eup %5170  ;;  %v1756_v49 = vmul.f32 1.442695, %v1742_v46 }
 0x39e   : > { %v1769_v47 = vsel %vm1711_vm3, %v6284_v48, 0.0  ;;  %v1729_v11 = vpop.xlane.xlu1 %1728 }
 0x39f   : > { %5174 = vpow2.f32 %v1756_v49  ;;  %1770 = vadd.xlane.f32.xlu1 %v1769_v47  ;;  %v1741_v60 = vsub.f32 %v1614_v27, %v1729_v11 }
 0x3a1   : > { %v1754_v61 = vmul.f32 1.442695, %v1741_v60 }
 0x3a3   : > { %5176 = vpow2.f32 %v1754_v61 }
 0x3a5   : > { %v6288_v53 = vpop.eup %5172 }
 0x3a6   : > { %v1772_v57 = vsel %vm1711_vm3, %v6288_v53, 0.0 }
 0x3a7   : > { %1773 = vadd.xlane.f32.xlu0 %v1772_v57 }
 0x3a9   : > { %v6292_v55 = vpop.eup %5174 }
 0x3aa   : > { %v1778_v58 = vsel %vm1711_vm3, %v6292_v55, 0.0 }
 0x3ab   : > { %1779 = vadd.xlane.f32.xlu0 %v1778_v58 }
 0x3ad   : > { %v6306_v2 = vpop.eup %5176 }
 0x3b0   : > { %2289 = vrot.lane.b32.xlu1 %v6102_v6, %s5609_s1  ;;  %v1775_v6 = vsel %vm1711_vm3, %v6306_v2, 0.0 }
 0x3c1   : > { %2237 = vrot.lane.b32.xlu0 %v6095_v63, %s5609_s1  ;;  %v1735_v63 = vpop.xlane.xlu1 %1734 }
 0x3c5   : > { %2341 = vrot.lane.b32.xlu0 %v6119_v17, %s5609_s1  ;;  %v1743_v17 = vsub.f32 %v6267_v40, %v1735_v63 }
 0x3c9   : > { %2338 = vrot.lane.b32.xlu0 %v6153_v43, %s5609_s1  ;;  %v1758_v43 = vmul.f32 1.442695, %v1743_v17 }
 0x3cb   : > { %5178 = vpow2.f32 %v1758_v43 }
 0x3cd   : > { %2445 = vrot.lane.b32.xlu0 %v6168_v52, %s5609_s1 }
 0x3d1   : > { %2442 = vrot.lane.b32.xlu0 %v6196_v1, %s5609_s1 }
 0x3d4   : > { %1776 = vadd.xlane.f32.xlu1 %v1775_v6  ;;  %v6405_v6 = vpack.c.bf16 %v6145_v36, %v6145_v36 }
 0x3d5   : > { %2549 = vrot.lane.b32.xlu0 %v6156_v45, %s5609_s1  ;;  %v6319_v52 = vpop.eup %5178 }
 0x3d6   : > { %v1781_v1 = vsel %vm1711_vm3, %v6319_v52, 0.0 }
 0x3d9   : > { %2546 = vrot.lane.b32.xlu0 %v6180_v59, %s5609_s1  ;;  %v6329_v59 = vpack.c.bf16 %v6116_v14, %v6116_v14 }
 0x3db   : > { %v1905_v9 = vsel %vm1811_vm2, %v6329_v59, 0 }
 0x3e5   : > { %2234 = vrot.lane.b32.xlu1 %v6106_v10, %s5609_s1 }
 0x409   : > { %1782 = vadd.xlane.f32.xlu1 %v1781_v1 }
 0x414   : > { %v1762_v27 = vpop.xlane.xlu0 %1761 }
 0x415   : > { %5180 = vrcp.f32 %v1762_v27  ;;  %v2135_v27 = vsel %vm1811_vm2, %v6405_v6, 0 }
 0x41a   : > { %2286 = vrot.lane.b32.xlu1 %v6127_v25, %s5609_s1 }
 0x41c   : > { %v1765_v45 = vpop.xlane.xlu1 %1764 }
 0x41d   : > { %5182 = vrcp.f32 %v1765_v45 }
 0x41e   : > { %2393 = vrot.lane.b32.xlu1 %v6147_v38, %s5609_s1  ;;  %v6344_v38 = vpack.c.bf16 %v6123_v21, %v6123_v21 }
 0x41f   : > { %v5181_v10 = vpop.eup %5180 }
 0x420   : > { %v1792_v40 = vmul.f32 %v5181_v10, %v6272_v8  ;;  %v1951_v18 = vsel %vm1811_vm2, %v6344_v38, 0 }
 0x422   : > { %2390 = vrot.lane.b32.xlu1 %v6175_v56, %s5609_s1  ;;  %v1800_v15 = vpack.c.bf16 %v1792_v40, %v1792_v40 }
 0x424   : > { %4749 = vmatmul.mubr.msk.bf16.vlgmr.msra.gmra.mrb[20].mxu0 %vm1711_vm3, %v1800_v15  ;;  %v1768_v25 = vpop.xlane.xlu0 %1767 }
 0x425   : > { %4759 = vmatpush3.bf16.msra.mxu0 %v1905_v9  ;;  %5184 = vrcp.f32 %v1768_v25  ;;  %4760 = vmatprep.mubr.msk.bf16.mxu0 %vm5608_vm0, %v5607_v50 }
 0x426   : > { %2497 = vrot.lane.b32.xlu1 %v6189_v0, %s5609_s1  ;;  %4770 = vmatprep.subr.bf16.mxu0 %v5607_v50  ;;  %v6359_v0 = vpack.c.bf16 %v6142_v33, %v6142_v33 }
 0x427   : > { %v5183_v14 = vpop.eup %5182 }
 0x428   : > { %v1793_v56 = vmul.f32 %v5183_v14, %v6276_v20  ;;  %v1997_v24 = vsel %vm1811_vm2, %v6359_v0, 0 }
 0x42a   : > { %2494 = vrot.lane.b32.xlu1 %v6210_v7, %s5609_s1  ;;  %v1801_v8 = vpack.c.bf16 %v1793_v56, %v1793_v56 }
 0x42c   : > { %4755 = vmatmul.mubr.msk.bf16.vlgmr.msra.gmra.mrb[36].mxu1 %vm1711_vm3, %v1801_v8  ;;  %v1771_v19 = vpop.xlane.xlu1 %1770 }
 0x42d   : > { %4765 = vmatpush3.bf16.msra.mxu1 %v1951_v18  ;;  %5186 = vrcp.f32 %v1771_v19  ;;  %4766 = vmatprep.mubr.msk.bf16.mxu1 %vm5608_vm0, %v5607_v50 }
 0x42e   : > { %2601 = vrot.lane.b32.xlu1 %v6207_v5, %s5609_s1  ;;  %4776 = vmatprep.subr.bf16.mxu1 %v5607_v50  ;;  %v6372_v5 = vpack.c.bf16 %v6151_v41, %v6151_v41  ;;  %v6383_v41 = vpack.c.bf16 %v6137_v29, %v6137_v29 }
 0x42f   : > { %v5185_v21 = vpop.eup %5184 }
 0x430   : > { %v1794_v7 = vmul.f32 %v5185_v21, %v6280_v30  ;;  %v2043_v30 = vsel %vm1811_vm2, %v6372_v5, 0  ;;  %v2089_v42 = vsel %vm1811_vm2, %v6383_v41, 0 }
 0x432   : > { %2598 = vrot.lane.b32.xlu1 %v6224_v13, %s5609_s1  ;;  %v1802_v20 = vpack.c.bf16 %v1794_v7, %v1794_v7 }
 0x434   : > { %4761 = vmatmul.mubr.msk.bf16.vlgmr.msra.gmra.mrb[24].mxu0 %vm1711_vm3, %v1802_v20  ;;  %v1774_v16 = vpop.xlane.xlu0 %1773 }
 0x435   : > { %4771 = vmatpush3.bf16.msra.mxu0 %v1997_v24  ;;  %5188 = vrcp.f32 %v1774_v16  ;;  %4772 = vmatprep.mubr.msk.bf16.mxu0 %vm5608_vm0, %v5607_v50 }
 0x436   : > { %4782 = vmatprep.subr.bf16.mxu0 %v5607_v50 }
 0x437   : > { %v5187_v33 = vpop.eup %5186 }
 0x438   : > { %v1795_v13 = vmul.f32 %v5187_v33, %v6284_v48  ;;  %v1780_v28 = vpop.xlane.xlu0 %1779 }
 0x439   : > { %5190 = vrcp.f32 %v1780_v28 }
 0x43a   : > { %v1803_v26 = vpack.c.bf16 %v1795_v13, %v1795_v13 }
 0x43c   : > { %4767 = vmatmul.mubr.msk.bf16.vlgmr.msra.gmra.mrb[40].mxu1 %vm1711_vm3, %v1803_v26  ;;  %v2238_v48 = vpop.permute.xlu0 %2237 }
 0x43d   : > { %4777 = vmatpush3.bf16.msra.mxu1 %v2043_v30  ;;  %4778 = vmatprep.mubr.msk.bf16.mxu1 %vm5608_vm0, %v5607_v50  ;;  %v2243_v49 = vsel %vm1342_vm1, %v2238_v48, 0 }
 0x43e   : > { %4788 = vmatprep.subr.bf16.mxu1 %v5607_v50 }
 0x43f   : > { %v5189_v31 = vpop.eup %5188 }
 0x440   : > { %v1796_v34 = vmul.f32 %v5189_v31, %v6288_v53  ;;  %v2342_v47 = vpop.permute.xlu0 %2341  ;;  %v2290_v53 = vpop.permute.xlu1 %2289 }
 0x441   : > { %v2347_v11 = vsel %vm1342_vm1, %v2342_v47, 0  ;;  %v2295_v56 = vsel %vm1342_vm1, %v2290_v53, 0 }
 0x442   : > { %v1804_v35 = vpack.c.bf16 %v1796_v34, %v1796_v34 }
 0x443   : > { %v5191_v39 = vpop.eup %5190 }
 0x444   : > { %4773 = vmatmul.mubr.msk.bf16.vlgmr.msra.gmra.mrb[28].mxu0 %vm1711_vm3, %v1804_v35  ;;  %v1798_v46 = vmul.f32 %v5191_v39, %v6292_v55  ;;  %v2339_v57 = vpop.permute.xlu0 %2338 }
 0x445   : > { %4783 = vmatpush3.bf16.msra.mxu0 %v2089_v42  ;;  %4784 = vmatprep.mubr.msk.bf16.mxu0 %vm5608_vm0, %v5607_v50 }
 0x446   : > { %4794 = vmatprep.subr.bf16.mxu0 %v5607_v50  ;;  %v1806_v29 = vpack.c.bf16 %v1798_v46, %v1798_v46 }
 0x448   : > { %v2446_v60 = vpop.permute.xlu0 %2445 }
 0x449   : > { %v2451_v43 = vsel %vm1342_vm1, %v2446_v60, 0 }
 0x44c   : > { %4785 = vmatmul.mubr.msk.bf16.vlgmr.msra.gmra.mrb[32].mxu0 %vm1711_vm3, %v1806_v29  ;;  %v2443_v63 = vpop.permute.xlu0 %2442 }
 0x44d   : > { %4796 = vmatprep.mubr.msk.bf16.mxu0 %vm5608_vm0, %v5607_v50 }
 0x44e   : > { %4795 = vmatpush3.bf16.xpose.msra.mxu0 %v2243_v49 }
 0x44f   : > { %4806 = vmatprep.subr.bf16.mxu0 %v5607_v50 }
 0x450   : > { %v2550_v36 = vpop.permute.xlu0 %2549 }
 0x454   : > { %v2547_v45 = vpop.permute.xlu0 %2546 }
 0x461   : > { %v1777_v58 = vpop.xlane.xlu1 %1776 }
 0x462   : > { %5192 = vrcp.f32 %v1777_v58 }
 0x465   : > { %v2235_v55 = vpop.permute.xlu1 %2234 }
 0x466   : > { %4797 = vmatmul.mubr.msk.bf16.vlgmr.msra.gmra.mrb[36].mxu0 %vm1342_vm1, %v2235_v55 }
 0x467   : > { %4807 = vmatpush3.bf16.xpose.msra.mxu0 %v2347_v11  ;;  %4808 = vmatprep.mubr.msk.bf16.mxu0 %vm5608_vm0, %v5607_v50 }
 0x468   : > { %4818 = vmatprep.subr.bf16.mxu0 %v5607_v50 }
 0x46c   : > { %v5193_v61 = vpop.eup %5192 }
 0x46d   : > { %v1797_v17 = vmul.f32 %v5193_v61, %v6306_v2  ;;  %v2555_v2 = vsel %vm1342_vm1, %v2550_v36, 0 }
 0x46e   : > { %4809 = vmatmul.mubr.msk.bf16.vlgmr.msra.gmra.mrb[40].mxu0 %vm1342_vm1, %v2339_v57 }
 0x46f   : > { %4819 = vmatpush3.bf16.xpose.msra.mxu0 %v2451_v43  ;;  %v1805_v1 = vpack.c.bf16 %v1797_v17, %v1797_v17  ;;  %4820 = vmatprep.mubr.msk.bf16.mxu0 %vm5608_vm0, %v5607_v50 }
 0x470   : > { %4830 = vmatprep.subr.bf16.mxu0 %v5607_v50 }
 0x471   : > { %4779 = vmatmul.mubr.msk.bf16.vlgmr.msra.gmra.mrb[44].mxu1 %vm1711_vm3, %v1805_v1 }
 0x472   : > { %4789 = vmatpush3.bf16.msra.mxu1 %v2135_v27  ;;  %4790 = vmatprep.mubr.msk.bf16.mxu1 %vm5608_vm0, %v5607_v50 }
 0x473   : > { %4800 = vmatprep.subr.bf16.mxu1 %v5607_v50 }
 0x476   : > { %4821 = vmatmul.mubr.msk.bf16.vlgmr.msra.gmra.mrb[44].mxu0 %vm1342_vm1, %v2443_v63 }
 0x477   : > { %4831 = vmatpush3.bf16.xpose.msra.mxu0 %v2555_v2  ;;  %4832 = vmatprep.mubr.msk.bf16.mxu0 %vm5608_vm0, %v5607_v50 }
 0x478   : > { %4842 = vmatprep.subr.bf16.mxu0 %v5607_v50 }
 0x47e   : > { %4833 = vmatmul.mubr.msk.bf16.vlgmr.msra.gmra.mrb[48].mxu0 %vm1342_vm1, %v2547_v45 }
 0x47f   : > { %4844 = vmatprep.mubr.msk.bf16.mxu0 %vm5608_vm0, %v5607_v50 }
 0x496   : > { %v1783_v10 = vpop.xlane.xlu1 %1782 }
 0x497   : > { %5194 = vrcp.f32 %v1783_v10 }
 0x49a   : > { %v2287_v40 = vpop.permute.xlu1 %2286 }
 0x49e   : > { %v2394_v25 = vpop.permute.xlu1 %2393 }
 0x49f   : > { %v2399_v18 = vsel %vm1342_vm1, %v2394_v25, 0 }
 0x4a1   : > { %v5195_v15 = vpop.eup %5194 }
 0x4a2   : > { %v1799_v9 = vmul.f32 %v5195_v15, %v6319_v52  ;;  %v2391_v8 = vpop.permute.xlu1 %2390 }
 0x4a4   : > { %v1807_v14 = vpack.c.bf16 %v1799_v9, %v1799_v9 }
 0x4a6   : > { %4791 = vmatmul.mubr.msk.bf16.vlgmr.msra.gmra.mrb[48].mxu1 %vm1711_vm3, %v1807_v14  ;;  %v2498_v19 = vpop.permute.xlu1 %2497 }
 0x4a7   : > { %4801 = vmatpush3.bf16.xpose.msra.mxu1 %v2295_v56  ;;  %4802 = vmatprep.mubr.msk.bf16.mxu1 %vm5608_vm0, %v5607_v50  ;;  %v2503_v21 = vsel %vm1342_vm1, %v2498_v19, 0 }
 0x4a8   : > { %4812 = vmatprep.subr.bf16.mxu1 %v5607_v50 }
 0x4aa   : > { %v2495_v52 = vpop.permute.xlu1 %2494 }
 0x4ae   : > { %4803 = vmatmul.mubr.msk.bf16.vlgmr.msra.gmra.mrb[52].mxu1 %vm1342_vm1, %v2287_v40  ;;  %v2602_v7 = vpop.permute.xlu1 %2601 }
 0x4af   : > { %4813 = vmatpush3.bf16.xpose.msra.mxu1 %v2399_v18  ;;  %4814 = vmatprep.mubr.msk.bf16.mxu1 %vm5608_vm0, %v5607_v50  ;;  %v2607_v20 = vsel %vm1342_vm1, %v2602_v7, 0 }
 0x4b0   : > { %4824 = vmatprep.subr.bf16.mxu1 %v5607_v50 }
 0x4b2   : > { %v2599_v24 = vpop.permute.xlu1 %2598 }
 0x4b6   : > { %4815 = vmatmul.mubr.msk.bf16.vlgmr.msra.gmra.mrb[56].mxu1 %vm1342_vm1, %v2391_v8 }
 0x4b7   : > { %4825 = vmatpush3.bf16.xpose.msra.mxu1 %v2503_v21  ;;  %4826 = vmatprep.mubr.msk.bf16.mxu1 %vm5608_vm0, %v5607_v50 }
 0x4b8   : > { %4836 = vmatprep.subr.bf16.mxu1 %v5607_v50 }
 0x4be   : > { %4827 = vmatmul.mubr.msk.bf16.vlgmr.msra.gmra.mrb[60].mxu1 %vm1342_vm1, %v2495_v52 }
 0x4bf   : > { %4837 = vmatpush3.bf16.xpose.msra.mxu1 %v2607_v20  ;;  %4838 = vmatprep.mubr.msk.bf16.mxu1 %vm5608_vm0, %v5607_v50 }
 0x4c0   : > { %4848 = vmatprep.subr.bf16.mxu1 %v5607_v50 }
 0x4c6   : > { %4839 = vmatmul.mubr.msk.bf16.vlgmr.msra.gmra.mrb[64].mxu1 %vm1342_vm1, %v2599_v24 }
 0x4c7   : > { %4850 = vmatprep.mubr.msk.bf16.mxu1 %vm5608_vm0, %v5607_v50 }
 0x4f7   : > { %v1849_v16 = vpop.f32.mrb[20].mxu0 }
 0x4f8   : > { %v4750_v33 = vpop.f32.mrb[21].mxu0 }
 0x4f9   : > { %v1852_v13 = vpop.f32.mrb[22].mxu0 }
 0x4fa   : > { %v4751_v28 = vpop.f32.mrb[23].mxu0 }
 0x4ff   : > { %v1895_v26 = vpop.f32.mrb[36].mxu1 }
 0x500   : > { %v2177_v30 = vpack.c.bf16 %v1895_v26, %v1849_v16  ;;  %v4756_v31 = vpop.f32.mrb[37].mxu1 }
 0x501   : > { %v1898_v34 = vpop.f32.mrb[38].mxu1 }
 0x502   : > { %2181 = vst.msk [vmem:[#allocation4] sm:$0xff] %vm1342_vm1, %v2177_v30  ;;  %v4757_v35 = vpop.f32.mrb[39].mxu1 }
 0x507   : > { %v1941_v39 = vpop.f32.mrb[24].mxu0 }
 0x508   : > { %v4762_v42 = vpop.f32.mrb[25].mxu0 }
 0x509   : > { %v1944_v46 = vpop.f32.mrb[26].mxu0 }
 0x50a   : > { %v4763_v48 = vpop.f32.mrb[27].mxu0 }
 0x50f   : > { %v1987_v29 = vpop.f32.mrb[40].mxu1 }
 0x510   : > { %v2178_v49 = vpack.c.bf16 %v1987_v29, %v1941_v39  ;;  %v4768_v47 = vpop.f32.mrb[41].mxu1 }
 0x511   : > { %v1990_v53 = vpop.f32.mrb[42].mxu1 }
 0x512   : > { %2182 = vst.msk [vmem:[#allocation4 + $0x8] sm:$0xff] %vm1342_vm1, %v2178_v49  ;;  %v4769_v57 = vpop.f32.mrb[43].mxu1 }
 0x517   : > { %v2033_v58 = vpop.f32.mrb[28].mxu0 }
 0x518   : > { %v4774_v55 = vpop.f32.mrb[29].mxu0 }
 0x519   : > { %v2036_v11 = vpop.f32.mrb[30].mxu0 }
 0x51a   : > { %v4775_v60 = vpop.f32.mrb[31].mxu0 }
 0x51f   : > { %v2125_v61 = vpop.f32.mrb[32].mxu0 }
 0x520   : > { %v4786_v63 = vpop.f32.mrb[33].mxu0 }
 0x521   : > { %v2128_v17 = vpop.f32.mrb[34].mxu0 }
 0x522   : > { %v4787_v43 = vpop.f32.mrb[35].mxu0 }
 0x539   : > { %v2279_v1 = vpop.f32.mrb[36].mxu0 }
 0x53a   : > { %v6454_v27 = vadd.f32 %v6233_v62, %v2279_v1  ;;  %v4798_v36 = vpop.f32.mrb[37].mxu0 }
 0x53b   : > { %v2282_v2 = vpop.f32.mrb[38].mxu0 }
 0x53c   : > { %v4799_v45 = vpop.f32.mrb[39].mxu0  ;;  %v2649_v10 = vsel %vm1711_vm3, %v6454_v27, -inf }
 0x53d   : > { %2650 = vmax.xlane.f32.xlu0 %v2649_v10 }
 0x541   : > { %v2383_v40 = vpop.f32.mrb[40].mxu0 }
 0x542   : > { %v6459_v15 = vadd.f32 %v6244_v32, %v2383_v40  ;;  %v4810_v9 = vpop.f32.mrb[41].mxu0 }
 0x543   : > { %v2386_v25 = vpop.f32.mrb[42].mxu0 }
 0x544   : > { %v2079_v14 = vpop.f32.mrb[44].mxu1  ;;  %v4811_v56 = vpop.f32.mrb[43].mxu0  ;;  %v2655_v8 = vsel %vm1711_vm3, %v6459_v15, -inf }
 0x545   : > { %v2179_v62 = vpack.c.bf16 %v2079_v14, %v2033_v58  ;;  %2656 = vmax.xlane.f32.xlu0 %v2655_v8  ;;  %v4780_v18 = vpop.f32.mrb[45].mxu1 }
 0x546   : > { %v2082_v19 = vpop.f32.mrb[46].mxu1 }
 0x547   : > { %2183 = vst.msk [vmem:[#allocation4 + $0x10] sm:$0xff] %vm1342_vm1, %v2179_v62  ;;  %v4781_v52 = vpop.f32.mrb[47].mxu1 }
 0x549   : > { %v2487_v21 = vpop.f32.mrb[44].mxu0 }
 0x54a   : > { %v4822_v7 = vpop.f32.mrb[45].mxu0  ;;  %v2488_v58 = vadd.f32 %v6252_v3, %v2487_v21 }
 0x54b   : > { %v2490_v20 = vpop.f32.mrb[46].mxu0 }
 0x54c   : > { %v4823_v24 = vpop.f32.mrb[47].mxu0  ;;  %v2661_v60 = vsel %vm1711_vm3, %v2488_v58, -inf }
 0x551   : > { %v2591_v32 = vpop.f32.mrb[48].mxu0 }
 0x552   : > { %v4834_v16 = vpop.f32.mrb[49].mxu0 }
 0x553   : > { %v2594_v33 = vpop.f32.mrb[50].mxu0 }
 0x554   : > { %v4835_v13 = vpop.f32.mrb[51].mxu0 }
 0x579   : > { %v2171_v28 = vpop.f32.mrb[48].mxu1 }
 0x57a   : > { %v2180_v26 = vpack.c.bf16 %v2171_v28, %v2125_v61  ;;  %v4792_v30 = vpop.f32.mrb[49].mxu1 }
 0x57b   : > { %v2174_v31 = vpop.f32.mrb[50].mxu1 }
 0x57c   : > { %2184 = vst.msk [vmem:[#allocation4 + $0x18] sm:$0xff] %vm1342_vm1, %v2180_v26  ;;  %v4793_v34 = vpop.f32.mrb[51].mxu1 }
 0x581   : > { %v2331_v35 = vpop.f32.mrb[52].mxu1 }
 0x582   : > { %v2332_v39 = vadd.f32 %v6240_v23, %v2331_v35  ;;  %v4804_v42 = vpop.f32.mrb[53].mxu1  ;;  %v2592_v23 = vadd.f32 %v6254_v4, %v2591_v32 }
 0x583   : > { %v2334_v46 = vpop.f32.mrb[54].mxu1 }
 0x584   : > { %v4805_v48 = vpop.f32.mrb[55].mxu1  ;;  %v2652_v29 = vsel %vm1711_vm3, %v2332_v39, -inf  ;;  %v2667_v1 = vsel %vm1711_vm3, %v2592_v23, -inf }
 0x585   : > { %2653 = vmax.xlane.f32.xlu1 %v2652_v29 }
 0x589   : > { %v2435_v49 = vpop.f32.mrb[56].mxu1 }
 0x58a   : > { %v6468_v47 = vadd.f32 %v6248_v44, %v2435_v49  ;;  %v4816_v53 = vpop.f32.mrb[57].mxu1 }
 0x58b   : > { %v2438_v57 = vpop.f32.mrb[58].mxu1 }
 0x58c   : > { %v4817_v55 = vpop.f32.mrb[59].mxu1  ;;  %v2658_v11 = vsel %vm1711_vm3, %v6468_v47, -inf }
 0x58d   : > { %2659 = vmax.xlane.f32.xlu0 %v2658_v11 }
 0x591   : > { %2662 = vmax.xlane.f32.xlu0 %v2661_v60  ;;  %v2539_v61 = vpop.f32.mrb[60].mxu1 }
 0x592   : > { %v6476_v63 = vadd.f32 %v6260_v22, %v2539_v61  ;;  %v4828_v44 = vpop.f32.mrb[61].mxu1 }
 0x593   : > { %v2542_v17 = vpop.f32.mrb[62].mxu1 }
 0x594   : > { %v4829_v43 = vpop.f32.mrb[63].mxu1  ;;  %v2664_v3 = vsel %vm1711_vm3, %v6476_v63, -inf }
 0x595   : > { %2668 = vmax.xlane.f32.xlu0 %v2667_v1  ;;  %2665 = vmax.xlane.f32.xlu1 %v2664_v3 }
 0x599   : > { %v2643_v36 = vpop.f32.mrb[64].mxu1 }
 0x59a   : > { %v4840_v2 = vpop.f32.mrb[65].mxu1  ;;  %v6488_v22 = vadd.f32 %v6264_v37, %v2643_v36 }
 0x59b   : > { %v2646_v4 = vpop.f32.mrb[66].mxu1 }
 0x59c   : > { %v4841_v45 = vpop.f32.mrb[67].mxu1  ;;  %v2670_v25 = vsel %vm1711_vm3, %v6488_v22, -inf }
 0x5a6   : > { %2795 = vrot.lane.b32.xlu1 %v6221_v12, %s5609_s1 }
 0x5aa   : > { %2844 = vrot.lane.b32.xlu1 %v6329_v59, %s5609_s1 }
 0x5ab   : > { %2746 = vrot.lane.b32.xlu0 %v6173_v54, %s5609_s1 }
 0x5ca   : > { %v2651_v10 = vpop.xlane.xlu0 %2650 }
 0x5cb   : > { %v2673_v40 = vsub.f32 %v6454_v27, %v2651_v10 }
 0x5cd   : > { %v2681_v9 = vmul.f32 1.442695, %v2673_v40 }
 0x5ce   : > { %2671 = vmax.xlane.f32.xlu1 %v2670_v25 }
 0x5cf   : > { %5196 = vpow2.f32 %v2681_v9 }
 0x5d2   : > { %v2657_v14 = vpop.xlane.xlu0 %2656 }
 0x5d3   : > { %v2675_v12 = vsub.f32 %v6459_v15, %v2657_v14 }
 0x5d5   : > { %v2685_v56 = vmul.f32 1.442695, %v2675_v12 }
 0x5d7   : > { %5198 = vpow2.f32 %v2685_v56 }
 0x5d9   : > { %v6494_v59 = vpop.eup %5196 }
 0x5da   : > { %v2697_v54 = vsel %vm1711_vm3, %v6494_v59, 0.0 }
 0x5db   : > { %2698 = vadd.xlane.f32.xlu0 %v2697_v54 }
 0x5df   : > { %2893 = vrot.lane.b32.xlu1 %v6344_v38, %s5609_s1 }
 0x5e1   : > { %v6500_v37 = vpop.eup %5198 }
 0x5e2   : > { %v2703_v27 = vsel %vm1711_vm3, %v6500_v37, 0.0 }
 0x5e3   : > { %2704 = vadd.xlane.f32.xlu0 %v2703_v27 }
 0x5f9   : > { %2942 = vrot.lane.b32.xlu0 %v6359_v0, %s5609_s1 }
 0x612   : > { %v2654_v15 = vpop.xlane.xlu1 %2653 }
 0x613   : > { %v2674_v8 = vsub.f32 %v2332_v39, %v2654_v15 }
 0x615   : > { %v2683_v62 = vmul.f32 1.442695, %v2674_v8 }
 0x617   : > { %5200 = vpow2.f32 %v2683_v62 }
 0x61a   : > { %v2660_v18 = vpop.xlane.xlu0 %2659 }
 0x61b   : > { %v2676_v35 = vsub.f32 %v6468_v47, %v2660_v18 }
 0x61d   : > { %v2687_v39 = vmul.f32 1.442695, %v2676_v35 }
 0x61e   : > { %v2663_v19 = vpop.xlane.xlu0 %2662 }
 0x61f   : > { %v2677_v52 = vsub.f32 %v2488_v58, %v2663_v19 }
 0x621   : > { %v6506_v21 = vpop.eup %5200  ;;  %v2689_v7 = vmul.f32 1.442695, %v2677_v52 }
 0x622   : > { %v2669_v38 = vpop.xlane.xlu0 %2668  ;;  %v2666_v20 = vpop.xlane.xlu1 %2665  ;;  %v2700_v24 = vsel %vm1711_vm3, %v6506_v21, 0.0 }
 0x623   : > { %5202 = vpow2.f32 %v2689_v7  ;;  %v2679_v32 = vsub.f32 %v2592_v23, %v2669_v38  ;;  %2701 = vadd.xlane.f32.xlu1 %v2700_v24  ;;  %v2678_v42 = vsub.f32 %v6476_v63, %v2666_v20 }
 0x625   : > { %v2693_v16 = vmul.f32 1.442695, %v2679_v32  ;;  %v2691_v46 = vmul.f32 1.442695, %v2678_v42 }
 0x626   : > { %v2747_v0 = vpop.permute.xlu0 %2746  ;;  %v2796_v33 = vpop.permute.xlu1 %2795 }
 0x627   : > { %5204 = vpow2.f32 %v2693_v16  ;;  %v2752_v13 = vsel %vm1811_vm2, %v2747_v0, 0  ;;  %v2801_v28 = vsel %vm1811_vm2, %v2796_v33, 0 }
 0x628   : > { %4843 = vmatpush3.bf16.msra.mxu0 %v2752_v13  ;;  %4849 = vmatpush3.bf16.msra.mxu1 %v2801_v28  ;;  %5206 = vpow2.f32 %v2687_v39 }
 0x629   : > { %4854 = vmatprep.subr.bf16.mxu0 %v5607_v50  ;;  %4860 = vmatprep.subr.bf16.mxu1 %v5607_v50  ;;  %5208 = vpow2.f32 %v2691_v46  ;;  %v5140_v46 = vld [vmem:[%s6005_s15] sm:$0xff]  }
 0x62a   : > { %v2845_v29 = vpop.permute.xlu1 %2844 }
 0x62b   : > { %v2850_v44 = vsel %vm1811_vm2, %v2845_v29, 0 }
 0x62d   : > { %v6514_v26 = vpop.eup %5202 }
 0x62e   : > { %v2709_v30 = vsel %vm1711_vm3, %v6514_v26, 0.0 }
 0x62f   : > { %2710 = vadd.xlane.f32.xlu0 %v2709_v30 }
 0x631   : > { %v6518_v31 = vpop.eup %5204 }
 0x632   : > { %v2715_v34 = vsel %vm1711_vm3, %v6518_v31, 0.0  ;;  %v6528_v48 = vpop.eup %5206 }
 0x633   : > { %2716 = vadd.xlane.f32.xlu0 %v2715_v34  ;;  %v2706_v49 = vsel %vm1711_vm3, %v6528_v48, 0.0  ;;  %v6532_v53 = vpop.eup %5208 }
 0x634   : > { %2991 = vrot.lane.b32.xlu1 %v6372_v5, %s5609_s1  ;;  %v2712_v47 = vsel %vm1711_vm3, %v6532_v53, 0.0 }
 0x649   : > { %3040 = vrot.lane.b32.xlu0 %v6383_v41, %s5609_s1 }
 0x658   : > { %2707 = vadd.xlane.f32.xlu1 %v2706_v49 }
 0x65b   : > { %v2672_v5 = vpop.xlane.xlu1 %2671 }
 0x65c   : > { %v2680_v57 = vsub.f32 %v6488_v22, %v2672_v5  ;;  %2713 = vadd.xlane.f32.xlu1 %v2712_v47  ;;  %v5142_v5 = vld [vmem:[%s6005_s15 + $0x10] sm:$0xff]  }
 0x65e   : > { %v2695_v41 = vmul.f32 1.442695, %v2680_v57  ;;  %v5143_v57 = vld [vmem:[%s6005_s15 + $0x18] sm:$0xff]  }
 0x65f   : > { %v2894_v2 = vpop.permute.xlu1 %2893 }
 0x660   : > { %5210 = vpow2.f32 %v2695_v41  ;;  %v2899_v40 = vsel %vm1811_vm2, %v2894_v2, 0  ;;  %v5144_v41 = vld [vmem:[%s6005_s15 + $0x20] sm:$0xff]  }
 0x668   : > { %v2699_v58 = vpop.xlane.xlu0 %2698 }
 0x669   : > { %5212 = vrcp.f32 %v2699_v58 }
 0x66a   : > { %v6537_v55 = vpop.eup %5210 }
 0x66b   : > { %v2718_v11 = vsel %vm1711_vm3, %v6537_v55, 0.0 }
 0x66c   : > { %2719 = vadd.xlane.f32.xlu1 %v2718_v11 }
 0x670   : > { %v2705_v23 = vpop.xlane.xlu0 %2704 }
 0x671   : > { %5214 = vrcp.f32 %v2705_v23  ;;  %v5145_v23 = vld [vmem:[%s6005_s15 + $0x28] sm:$0xff]  }
 0x673   : > { %v5213_v60 = vpop.eup %5212 }
 0x674   : > { %v2729_v61 = vmul.f32 %v5213_v60, %v6494_v59  ;;  %v2943_v1 = vpop.permute.xlu0 %2942 }
 0x675   : > { %v2948_v36 = vsel %vm1811_vm2, %v2943_v1, 0  ;;  %v5147_v1 = vld [vmem:[%s6005_s15 + $0x38] sm:$0xff]  }
 0x676   : > { %v2737_v63 = vpack.c.bf16 %v2729_v61, %v2729_v61 }
 0x678   : > { %4845 = vmatmul.mubr.msk.bf16.vlgmr.msra.gmra.mrb[52].mxu0 %vm1711_vm3, %v2737_v63 }
 0x679   : > { %4855 = vmatpush3.bf16.msra.mxu0 %v2850_v44  ;;  %4856 = vmatprep.mubr.msk.bf16.mxu0 %vm5608_vm0, %v5607_v50 }
 0x67a   : > { %4866 = vmatprep.subr.bf16.mxu0 %v5607_v50 }
 0x67b   : > { %v5215_v17 = vpop.eup %5214 }
 0x67c   : > { %v2731_v43 = vmul.f32 %v5215_v17, %v6500_v37 }
 0x67d   : > { %3089 = vrot.lane.b32.xlu1 %v6405_v6, %s5609_s1 }
 0x67e   : > { %v2739_v3 = vpack.c.bf16 %v2731_v43, %v2731_v43  ;;  %v5146_v43 = vld [vmem:[%s6005_s15 + $0x30] sm:$0xff]  }
 0x680   : > { %4857 = vmatmul.mubr.msk.bf16.vlgmr.msra.gmra.mrb[56].mxu0 %vm1711_vm3, %v2739_v3 }
 0x681   : > { %4867 = vmatpush3.bf16.msra.mxu0 %v2948_v36  ;;  %4868 = vmatprep.mubr.msk.bf16.mxu0 %vm5608_vm0, %v5607_v50 }
 0x682   : > { %4878 = vmatprep.subr.bf16.mxu0 %v5607_v50 }
 0x6b0   : > { %v2702_v4 = vpop.xlane.xlu1 %2701 }
 0x6b1   : > { %5216 = vrcp.f32 %v2702_v4 }
 0x6b4   : > { %v2992_v15 = vpop.permute.xlu1 %2991 }
 0x6b5   : > { %v2997_v7 = vsel %vm1811_vm2, %v2992_v15, 0 }
 0x6bb   : > { %v5217_v45 = vpop.eup %5216 }
 0x6bc   : > { %v2730_v22 = vmul.f32 %v5217_v45, %v6506_v21  ;;  %v2711_v10 = vpop.xlane.xlu0 %2710 }
 0x6bd   : > { %5218 = vrcp.f32 %v2711_v10 }
 0x6be   : > { %v2738_v6 = vpack.c.bf16 %v2730_v22, %v2730_v22 }
 0x6c0   : > { %v2717_v9 = vpop.xlane.xlu0 %2716  ;;  %4851 = vmatmul.mubr.msk.bf16.vlgmr.msra.gmra.mrb[68].mxu1 %vm1711_vm3, %v2738_v6 }
 0x6c1   : > { %5220 = vrcp.f32 %v2717_v9  ;;  %4861 = vmatpush3.bf16.msra.mxu1 %v2899_v40  ;;  %4862 = vmatprep.mubr.msk.bf16.mxu1 %vm5608_vm0, %v5607_v50 }
 0x6c2   : > { %4872 = vmatprep.subr.bf16.mxu1 %v5607_v50 }
 0x6c4   : > { %v3041_v12 = vpop.permute.xlu0 %3040 }
 0x6c5   : > { %v3046_v54 = vsel %vm1811_vm2, %v3041_v12, 0 }
 0x6c7   : > { %v5219_v25 = vpop.eup %5218 }
 0x6c8   : > { %v2733_v14 = vmul.f32 %v5219_v25, %v6514_v26 }
 0x6ca   : > { %v2741_v56 = vpack.c.bf16 %v2733_v14, %v2733_v14 }
 0x6cb   : > { %v5221_v59 = vpop.eup %5220 }
 0x6cc   : > { %4869 = vmatmul.mubr.msk.bf16.vlgmr.msra.gmra.mrb[60].mxu0 %vm1711_vm3, %v2741_v56  ;;  %v2735_v37 = vmul.f32 %v5221_v59, %v6518_v31 }
 0x6cd   : > { %4879 = vmatpush3.bf16.msra.mxu0 %v3046_v54  ;;  %4880 = vmatprep.mubr.msk.bf16.mxu0 %vm5608_vm0, %v5607_v50 }
 0x6ce   : > { %v2743_v27 = vpack.c.bf16 %v2735_v37, %v2735_v37  ;;  %4890 = vmatprep.subr.bf16.mxu0 %v5140_v46 }
 0x6d4   : > { %4881 = vmatmul.mubr.msk.bf16.vlgmr.msra.gmra.mrb[64].mxu0 %vm1711_vm3, %v2743_v27 }
 0x6d5   : > { %4891 = vmatpush3.bf16.msra.mxu0 %v5140_v46 }
 0x6e5   : > { %v2708_v8 = vpop.xlane.xlu1 %2707 }
 0x6e6   : > { %5222 = vrcp.f32 %v2708_v8 }
 0x6e9   : > { %v2714_v62 = vpop.xlane.xlu1 %2713 }
 0x6ea   : > { %5224 = vrcp.f32 %v2714_v62 }
 0x6f0   : > { %v5223_v18 = vpop.eup %5222 }
 0x6f1   : > { %v2732_v19 = vmul.f32 %v5223_v18, %v6528_v48  ;;  %v5141_v48 = vld [vmem:[%s6005_s15 + $0x8] sm:$0xff]   ;;  %s6925_s15 = sld [smem:[#allocation31_spill]] }
 0x6f2   : > { %4892 = vmatprep.subr.bf16.mxu0 %v5141_v48 }
 0x6f3   : > { %v2740_v52 = vpack.c.bf16 %v2732_v19, %v2732_v19  ;;  %4893 = vmatpush3.bf16.msra.mxu0 %v5141_v48 }
 0x6f4   : > { %v5225_v21 = vpop.eup %5224  ;;  %4894 = vmatprep.subr.bf16.mxu0 %v5142_v5 }
 0x6f5   : > { %4863 = vmatmul.mubr.msk.bf16.vlgmr.msra.gmra.mrb[72].mxu1 %vm1711_vm3, %v2740_v52  ;;  %v2734_v38 = vmul.f32 %v5225_v21, %v6532_v53 }
 0x6f6   : > { %4873 = vmatpush3.bf16.msra.mxu1 %v2997_v7  ;;  %4874 = vmatprep.mubr.msk.bf16.mxu1 %vm5608_vm0, %v5607_v50 }
 0x6f7   : > { %4884 = vmatprep.subr.bf16.mxu1 %v5607_v50  ;;  %v2742_v24 = vpack.c.bf16 %v2734_v38, %v2734_v38  ;;  %4895 = vmatpush3.bf16.msra.mxu0 %v5142_v5  ;;  %s6926_s24 = scalar_lea.vmem %s6925_s15, %s6017_s21  ;;  %s6934_s21 = sld [smem:[#allocation22_spill]] }
 0x6f8   : > { %4896 = vmatprep.subr.bf16.mxu0 %v5143_v57  ;;  %v4462_v52 = vld [vmem:[%s6926_s24] ss:$0 sm:$0xff] }
 0x6f9   : > { %v2720_v20 = vpop.xlane.xlu1 %2719 }
 0x6fa   : > { %5226 = vrcp.f32 %v2720_v20 }
 0x6fb   : > { %4897 = vmatpush3.bf16.msra.mxu0 %v5143_v57  ;;  %v5281_v57 = vld [vmem:[#allocation2 + $0x28] sm:$0xff] }
 0x6fc   : > { %4898 = vmatprep.subr.bf16.mxu0 %v5144_v41 }
 0x6fd   : > { %4875 = vmatmul.mubr.msk.bf16.vlgmr.msra.gmra.mrb[76].mxu1 %vm1711_vm3, %v2742_v24  ;;  %v3090_v32 = vpop.permute.xlu1 %3089  ;;  %p4493_p10 = scmp.ne.s32.totalorder %s6934_s21, 1 }
 0x6fe   : > { %v3095_v16 = vsel %vm1811_vm2, %v3090_v32, 0  ;;  %4886 = vmatprep.mubr.msk.bf16.mxu1 %vm5608_vm0, %v5607_v50  ;;  %vm5612_vm6 = vmmov (!%p4493_p10), 0   ;;  %vm3977_vm7 = vcmask (!%p4493_p10), 1041409   ;;  %vm3980_vm8 = vcmask (!%p4493_p10), 1042434   ;;  %s6935_s1 = sld [smem:[#allocation41_spill]] (!%p4493_p10) }
 0x6ff   : > { %4885 = vmatpush3.bf16.msra.mxu1 %v3095_v16  ;;  %4899 = vmatpush3.bf16.msra.mxu0 %v5144_v41  ;;  %vm3983_vm9 = vcmask (!%p4493_p10), 1043459   ;;  %vm3986_vm10 = vcmask (!%p4493_p10), 1044484   ;;  %vm3989_vm11 = vcmask (!%p4493_p10), 1045509   ;;  %vm3992_vm12 = vcmask (!%p4493_p10), 1046534  }
 0x700   : > { %4900 = vmatprep.subr.bf16.mxu0 %v5145_v23  ;;  %vm3995_vm13 = vcmask (!%p4493_p10), 1047559  }
 0x703   : > { %4901 = vmatpush3.bf16.msra.mxu0 %v5145_v23 }
 0x704   : > { %v5227_v0 = vpop.eup %5226  ;;  %4902 = vmatprep.subr.bf16.mxu0 %v5146_v43 }
 0x705   : > { %v2736_v33 = vmul.f32 %v5227_v0, %v6537_v55  ;;  %v5276_v0 = vld [vmem:[#allocation2] sm:$0xff] }
 0x707   : > { %v2744_v13 = vpack.c.bf16 %v2736_v33, %v2736_v33  ;;  %4903 = vmatpush3.bf16.msra.mxu0 %v5146_v43 }
 0x708   : > { %4904 = vmatprep.subr.bf16.mxu0 %v5147_v1 }
 0x709   : > { %4887 = vmatmul.mubr.msk.bf16.vlgmr.msra.gmra.mrb[80].mxu1 %vm1711_vm3, %v2744_v13  ;;  %v5277_v13 = vld [vmem:[#allocation2 + $0x8] sm:$0xff] }
 0x70b   : > { %4905 = vmatpush3.bf16.msra.mxu0 %v5147_v1 }
 0x74b   : > { %v2788_v28 = vpop.f32.mrb[52].mxu0 }
 0x74c   : > { %v4846_v26 = vpop.f32.mrb[53].mxu0 }
 0x74d   : > { %v2791_v30 = vpop.f32.mrb[54].mxu0 }
 0x74e   : > { %v4847_v31 = vpop.f32.mrb[55].mxu0  ;;  %v5278_v30 = vld [vmem:[#allocation2 + $0x10] sm:$0xff] }
 0x753   : > { %v2886_v34 = vpop.f32.mrb[56].mxu0 }
 0x754   : > { %v4858_v35 = vpop.f32.mrb[57].mxu0 }
 0x755   : > { %v2889_v39 = vpop.f32.mrb[58].mxu0 }
 0x756   : > { %v4859_v42 = vpop.f32.mrb[59].mxu0 }
 0x793   : > { %v2837_v50 = vpop.f32.mrb[68].mxu1 }
 0x794   : > { %v3137_v29 = vpack.c.bf16 %v2837_v50, %v2788_v28  ;;  %v4852_v49 = vpop.f32.mrb[69].mxu1 }
 0x795   : > { %v2840_v53 = vpop.f32.mrb[70].mxu1 }
 0x796   : > { %3145 = vrot.lane.b32.xlu0 %v3137_v29, %s5610_s8  ;;  %v4853_v47 = vpop.f32.mrb[71].mxu1  ;;  %v5280_v53 = vld [vmem:[#allocation2 + $0x20] sm:$0xff] }
 0x79f   : > { %v2984_v58 = vpop.f32.mrb[60].mxu0 }
 0x7a0   : > { %v4870_v55 = vpop.f32.mrb[61].mxu0 }
 0x7a1   : > { %v2987_v11 = vpop.f32.mrb[62].mxu0 }
 0x7a2   : > { %v4871_v60 = vpop.f32.mrb[63].mxu0  ;;  %v5283_v11 = vld [vmem:[#allocation2 + $0x38] sm:$0xff] }
 0x7a3   : > { %v6599_v60 = vand.u32 127, %v917_v51 }
 0x7a5   : > { %vm3314_vm5 = vcmp.lt.s32.totalorder %v6599_v60, 32 }
 0x7a7   : > { %v3082_v61 = vpop.f32.mrb[64].mxu0 }
 0x7a8   : > { %v4882_v63 = vpop.f32.mrb[65].mxu0 }
 0x7a9   : > { %v3085_v44 = vpop.f32.mrb[66].mxu0 }
 0x7aa   : > { %v4883_v17 = vpop.f32.mrb[67].mxu0 }
 0x7c8   : > { %v2935_v3 = vpop.f32.mrb[72].mxu1 }
 0x7c9   : > { %v3138_v36 = vpack.c.bf16 %v2935_v3, %v2886_v34  ;;  %v4864_v2 = vpop.f32.mrb[73].mxu1  ;;  %v5279_v34 = vld [vmem:[#allocation2 + $0x18] sm:$0xff] }
 0x7ca   : > { %v2938_v4 = vpop.f32.mrb[74].mxu1 }
 0x7cb   : > { %3147 = vrot.lane.b32.xlu1 %v3138_v36, %s5610_s8  ;;  %v4865_v45 = vpop.f32.mrb[75].mxu1 }
 0x7d0   : > { %v3033_v22 = vpop.f32.mrb[76].mxu1 }
 0x7d1   : > { %v3139_v10 = vpack.c.bf16 %v3033_v22, %v2984_v58  ;;  %v4876_v6 = vpop.f32.mrb[77].mxu1  ;;  %v5282_v58 = vld [vmem:[#allocation2 + $0x30] sm:$0xff] }
 0x7d2   : > { %v3036_v40 = vpop.f32.mrb[78].mxu1 }
 0x7d3   : > { %3149 = vrot.lane.b32.xlu0 %v3139_v10, %s5610_s8  ;;  %v4877_v9 = vpop.f32.mrb[79].mxu1 }
 0x7dc   : > { %v3131_v25 = vpop.f32.mrb[80].mxu1 }
 0x7dd   : > { %v3140_v14 = vpack.c.bf16 %v3131_v25, %v3082_v61  ;;  %v4888_v12 = vpop.f32.mrb[81].mxu1 }
 0x7de   : > { %v3134_v56 = vpop.f32.mrb[82].mxu1 }
 0x7df   : > { %3151 = vrot.lane.b32.xlu1 %v3140_v14, %s5610_s8  ;;  %v4889_v59 = vpop.f32.mrb[83].mxu1 }
 0x7e0   : > { %v5148_v59 = vld [vmem:[%s6007_s11] sm:$0xff]  }
 0x7e1   : > { %4914 = vmatprep.subr.bf16.mxu1 %v5148_v59 }
 0x7e2   : > { %4915 = vmatpush3.bf16.msra.mxu1 %v5148_v59 }
 0x808   : > { %v3146_v54 = vpop.permute.xlu0 %3145 }
 0x809   : > { %3158 = vst.msk [vmem:[#allocation4] sm:$0xff] %vm3157_vm4, %v3146_v54 }
 0x810   : > { %v3162_v37 = vld [vmem:[#allocation4] sm:$0xff] }
 0x811   : > { %4906 = vmatprep.mubr.bf16.mxu0 %v3162_v37 }
 0x83d   : > { %v3148_v27 = vpop.permute.xlu1 %3147 }
 0x83e   : > { %3159 = vst.msk [vmem:[#allocation4 + $0x8] sm:$0xff] %vm3157_vm4, %v3148_v27 }
 0x845   : > { %v3150_v15 = vpop.permute.xlu0 %3149  ;;  %v3163_v8 = vld [vmem:[#allocation4 + $0x8] sm:$0xff] }
 0x846   : > { %3160 = vst.msk [vmem:[#allocation4 + $0x10] sm:$0xff] %vm3157_vm4, %v3150_v15  ;;  %4907 = vmatmul.mubr.bf16.vlgmr.msra.gmra.mrb[68].mxu0 %v3163_v8 }
 0x84d   : > { %v3164_v62 = vld [vmem:[#allocation4 + $0x10] sm:$0xff] }
 0x84e   : > { %4910 = vmatprep.mubr.bf16.mxu0 %v3164_v62  ;;  %v5149_v62 = vld [vmem:[%s6007_s11 + $0x8] sm:$0xff]  }
 0x84f   : > { %4916 = vmatprep.subr.bf16.mxu1 %v5149_v62 }
 0x850   : > { %4917 = vmatpush3.bf16.msra.mxu1 %v5149_v62 }
 0x851   : > { %v3152_v18 = vpop.permute.xlu1 %3151 }
 0x852   : > { %3161 = vst.msk [vmem:[#allocation4 + $0x18] sm:$0xff] %vm3157_vm4, %v3152_v18 }
 0x859   : > { %v3165_v19 = vld [vmem:[#allocation4 + $0x18] sm:$0xff] }
 0x85a   : > { %4911 = vmatmul.mubr.bf16.gmra.mrb[72].mxu0 %v3165_v19 }
 0x919   : > { %v4908_v21 = vpop.f32.mrb[68].mxu0 }
 0x91a   : > { %v3271_v7 = vpop.f32.mrb[69].mxu0  ;;  %v3280_v32 = vadd.f32 %v4908_v21, %v4462_v52 }
 0x91b   : > { %v3272_v38 = vadd.f32 %v4462_v52, %v3271_v7  ;;  %v4909_v20 = vpop.f32.mrb[70].mxu0 }
 0x91c   : > { %v3274_v24 = vpop.f32.mrb[71].mxu0  ;;  %v3283_v26 = vadd.f32 %v4909_v20, %v4462_v52  ;;  %v3304_v31 = vadd.f32 %v5278_v30, %v3280_v32  ;;  %v5151_v30 = vld [vmem:[%s6007_s11 + $0x18] sm:$0xff]  }
 0x91d   : > { %v3275_v16 = vadd.f32 %v4462_v52, %v3274_v24  ;;  %v3302_v33 = vadd.f32 %v5276_v0, %v3272_v38 }
 0x91e   : > { %v3305_v35 = vadd.f32 %v5279_v34, %v3283_v26  ;;  %v5153_v34 = vld [vmem:[%s6007_s11 + $0x28] sm:$0xff]  }
 0x91f   : > { %3315 = vadd.xlane.f32.xlu0 %v3302_v33  ;;  %v3303_v28 = vadd.f32 %v5277_v13, %v3275_v16  ;;  %v5150_v16 = vld [vmem:[%s6007_s11 + $0x10] sm:$0xff]  }
 0x920   : > { %4918 = vmatprep.subr.bf16.mxu1 %v5150_v16 }
 0x921   : > { %3317 = vadd.xlane.f32.xlu1 %v3303_v28  ;;  %4919 = vmatpush3.bf16.msra.mxu1 %v5150_v16 }
 0x922   : > { %4920 = vmatprep.subr.bf16.mxu1 %v5151_v30 }
 0x923   : > { %3319 = vadd.xlane.f32.xlu0 %v3304_v31 }
 0x925   : > { %4921 = vmatpush3.bf16.msra.mxu1 %v5151_v30 }
 0x927   : > { %3321 = vadd.xlane.f32.xlu0 %v3305_v35 }
 0x92d   : > { %v4912_v39 = vpop.f32.mrb[72].mxu0 }
 0x92e   : > { %v3287_v42 = vpop.f32.mrb[73].mxu0  ;;  %v3296_v29 = vadd.f32 %v4912_v39, %v4462_v52  ;;  %v5155_v39 = vld [vmem:[%s6007_s11 + $0x38] sm:$0xff]  }
 0x92f   : > { %v3288_v46 = vadd.f32 %v4462_v52, %v3287_v42  ;;  %v4913_v48 = vpop.f32.mrb[74].mxu0  ;;  %v5156_v42 = vld [vmem:[%s6009_s12] sm:$0xff]  }
 0x930   : > { %v3290_v50 = vpop.f32.mrb[75].mxu0  ;;  %v3299_v47 = vadd.f32 %v4913_v48, %v4462_v52  ;;  %v3308_v55 = vadd.f32 %v5282_v58, %v3296_v29  ;;  %4938 = vmatprep.subr.bf16.mxu0 %v5156_v42 }
 0x931   : > { %v3291_v49 = vadd.f32 %v4462_v52, %v3290_v50  ;;  %v3306_v5 = vadd.f32 %v5280_v53, %v3288_v46  ;;  %v5157_v46 = vld [vmem:[%s6009_s12 + $0x8] sm:$0xff]   ;;  %4939 = vmatpush3.bf16.msra.mxu0 %v5156_v42 }
 0x932   : > { %v3309_v23 = vadd.f32 %v5283_v11, %v3299_v47  ;;  %4940 = vmatprep.subr.bf16.mxu0 %v5157_v46 }
 0x933   : > { %3323 = vadd.xlane.f32.xlu0 %v3306_v5  ;;  %v3307_v41 = vadd.f32 %v5281_v57, %v3291_v49 }
 0x935   : > { %3325 = vadd.xlane.f32.xlu1 %v3307_v41  ;;  %4941 = vmatpush3.bf16.msra.mxu0 %v5157_v46 }
 0x937   : > { %3327 = vadd.xlane.f32.xlu0 %v3308_v55 }
 0x939   : > { %3329 = vadd.xlane.f32.xlu1 %v3309_v23 }
 0x9ac   : > { %v3316_v61 = vpop.xlane.xlu0 %3315 }
 0x9ad   : > { %v3331_v63 = vmul.f32 0.03125, %v3316_v61  ;;  %v4471_v61 = vld [vmem:[%s6928_s17] ss:$0 sm:$0xff] }
 0x9ae   : > { %v3318_v44 = vpop.xlane.xlu1 %3317 }
 0x9af   : > { %v3339_v17 = vsub.f32 %v3302_v33, %v3331_v63  ;;  %v3332_v43 = vmul.f32 0.03125, %v3318_v44 }
 0x9b0   : > { %v3320_v1 = vpop.xlane.xlu0 %3319 }
 0x9b1   : > { %v3340_v3 = vsub.f32 %v3303_v28, %v3332_v43  ;;  %v3333_v36 = vmul.f32 0.03125, %v3320_v1  ;;  %v6604_v2 = vsel %vm3314_vm5, %v3339_v17, 0.0 }
 0x9b2   : > { %v3355_v4 = vmul.f32 %v6604_v2, %v6604_v2 }
 0x9b3   : > { %v3341_v51 = vsub.f32 %v3304_v31, %v3333_v36  ;;  %v6610_v45 = vsel %vm3314_vm5, %v3340_v3, 0.0  ;;  %v5152_v31 = vld [vmem:[%s6007_s11 + $0x20] sm:$0xff]   ;;  %v4472_v3 = vld [vmem:[%s817_s6] ss:$0 sm:$0xff] }
 0x9b4   : > { %v3322_v22 = vpop.xlane.xlu0 %3321  ;;  %3363 = vadd.xlane.f32.xlu0 %v3355_v4  ;;  %v3356_v10 = vmul.f32 %v6610_v45, %v6610_v45  ;;  %4922 = vmatprep.subr.bf16.mxu1 %v5152_v31 }
 0x9b5   : > { %v3334_v6 = vmul.f32 0.03125, %v3322_v22  ;;  %v6616_v40 = vsel %vm3314_vm5, %v3341_v51, 0.0  ;;  %4923 = vmatpush3.bf16.msra.mxu1 %v5152_v31 }
 0x9b6   : > { %3365 = vadd.xlane.f32.xlu1 %v3356_v10  ;;  %v3357_v9 = vmul.f32 %v6616_v40, %v6616_v40  ;;  %4924 = vmatprep.subr.bf16.mxu1 %v5153_v34 }
 0x9b7   : > { %v3342_v25 = vsub.f32 %v3305_v35, %v3334_v6  ;;  %v5154_v35 = vld [vmem:[%s6007_s11 + $0x30] sm:$0xff]  }
 0x9b8   : > { %3367 = vadd.xlane.f32.xlu0 %v3357_v9 }
 0x9b9   : > { %v6622_v14 = vsel %vm3314_vm5, %v3342_v25, 0.0  ;;  %4925 = vmatpush3.bf16.msra.mxu1 %v5153_v34 }
 0x9ba   : > { %v3358_v12 = vmul.f32 %v6622_v14, %v6622_v14  ;;  %4926 = vmatprep.subr.bf16.mxu1 %v5154_v35 }
 0x9bc   : > { %3369 = vadd.xlane.f32.xlu1 %v3358_v12 }
 0x9bd   : > { %4927 = vmatpush3.bf16.msra.mxu1 %v5154_v35 }
 0x9be   : > { %4928 = vmatprep.subr.bf16.mxu1 %v5155_v39 }
 0x9c0   : > { %v3324_v56 = vpop.xlane.xlu0 %3323 }
 0x9c1   : > { %v3335_v54 = vmul.f32 0.03125, %v3324_v56  ;;  %4929 = vmatpush3.bf16.msra.mxu1 %v5155_v39 }
 0x9c2   : > { %v3326_v37 = vpop.xlane.xlu1 %3325 }
 0x9c3   : > { %v3343_v27 = vsub.f32 %v3306_v5, %v3335_v54  ;;  %v3336_v15 = vmul.f32 0.03125, %v3326_v37 }
 0x9c4   : > { %v3328_v8 = vpop.xlane.xlu0 %3327 }
 0x9c5   : > { %v3344_v18 = vsub.f32 %v3307_v41, %v3336_v15  ;;  %v3337_v19 = vmul.f32 0.03125, %v3328_v8  ;;  %v6630_v52 = vsel %vm3314_vm5, %v3343_v27, 0.0 }
 0x9c6   : > { %v3330_v21 = vpop.xlane.xlu1 %3329  ;;  %v3359_v7 = vmul.f32 %v6630_v52, %v6630_v52 }
 0x9c7   : > { %v3345_v38 = vsub.f32 %v3308_v55, %v3337_v19  ;;  %v3338_v20 = vmul.f32 0.03125, %v3330_v21  ;;  %v6636_v24 = vsel %vm3314_vm5, %v3344_v18, 0.0 }
 0x9c8   : > { %3371 = vadd.xlane.f32.xlu0 %v3359_v7  ;;  %v3360_v32 = vmul.f32 %v6636_v24, %v6636_v24 }
 0x9c9   : > { %v3346_v0 = vsub.f32 %v3309_v23, %v3338_v20  ;;  %v6643_v33 = vsel %vm3314_vm5, %v3345_v38, 0.0 }
 0x9ca   : > { %3373 = vadd.xlane.f32.xlu1 %v3360_v32  ;;  %v3361_v13 = vmul.f32 %v6643_v33, %v6643_v33 }
 0x9cb   : > { %v6649_v28 = vsel %vm3314_vm5, %v3346_v0, 0.0 }
 0x9cc   : > { %3375 = vadd.xlane.f32.xlu0 %v3361_v13  ;;  %v3362_v26 = vmul.f32 %v6649_v28, %v6649_v28 }
 0x9ce   : > { %3377 = vadd.xlane.f32.xlu1 %v3362_v26 }
 0xa41   : > { %v3364_v48 = vpop.xlane.xlu0 %3363 }
 0xa42   : > { %v3379_v50 = vmul.f32 0.03125, %v3364_v48  ;;  %v5158_v48 = vld [vmem:[%s6009_s12 + $0x10] sm:$0xff]  }
 0xa43   : > { %v3366_v29 = vpop.xlane.xlu1 %3365  ;;  %4942 = vmatprep.subr.bf16.mxu0 %v5158_v48 }
 0xa44   : > { %v3387_v49 = vadd.f32 1e-12, %v3379_v50  ;;  %v3380_v53 = vmul.f32 0.03125, %v3366_v29  ;;  %4943 = vmatpush3.bf16.msra.mxu0 %v5158_v48  ;;  %v5160_v50 = vld [vmem:[%s6009_s12 + $0x20] sm:$0xff]   ;;  %v5161_v29 = vld [vmem:[%s6009_s12 + $0x28] sm:$0xff]  }
 0xa45   : > { %v3368_v5 = vpop.xlane.xlu0 %3367 }
 0xa46   : > { %5228 = vrsqrt.f32 %v3387_v49  ;;  %v3388_v47 = vadd.f32 1e-12, %v3380_v53  ;;  %v3381_v57 = vmul.f32 0.03125, %v3368_v5  ;;  %v5162_v49 = vld [vmem:[%s6009_s12 + $0x30] sm:$0xff]   ;;  %v5163_v53 = vld [vmem:[%s6009_s12 + $0x38] sm:$0xff]  }
 0xa47   : > { %v4473_v5 = vld [vmem:[%s820_s10] ss:$0 sm:$0xff] }
 0xa48   : > { %5230 = vrsqrt.f32 %v3388_v47  ;;  %v3389_v41 = vadd.f32 1e-12, %v3381_v57 }
 0xa49   : > { %v3370_v58 = vpop.xlane.xlu1 %3369 }
 0xa4a   : > { %5232 = vrsqrt.f32 %v3389_v41  ;;  %v3382_v55 = vmul.f32 0.03125, %v3370_v58 }
 0xa4c   : > { %v3390_v11 = vadd.f32 1e-12, %v3382_v55 }
 0xa4e   : > { %5234 = vrsqrt.f32 %v3390_v11 }
 0xa50   : > { %v5229_v23 = vpop.eup %5228 }
 0xa51   : > { %v3403_v63 = vmul.f32 %v5229_v23, %v6604_v2 }
 0xa52   : > { %v5231_v44 = vpop.eup %5230 }
 0xa53   : > { %v3417_v17 = vmul.f32 %v4471_v61, %v3403_v63  ;;  %v3404_v43 = vmul.f32 %v5231_v44, %v6610_v45 }
 0xa54   : > { %v5233_v1 = vpop.eup %5232 }
 0xa55   : > { %v3418_v36 = vmul.f32 %v4471_v61, %v3404_v43  ;;  %v3405_v4 = vmul.f32 %v5233_v1, %v6616_v40  ;;  %v3372_v51 = vpop.xlane.xlu0 %3371  ;;  %v6673_v10 = vadd.f32 %v4472_v3, %v3417_v17 }
 0xa56   : > { %v3383_v22 = vmul.f32 0.03125, %v3372_v51 }
 0xa57   : > { %v6675_v6 = vadd.f32 %v4472_v3, %v3418_v36  ;;  %v3374_v2 = vpop.xlane.xlu1 %3373  ;;  %v3419_v45 = vmul.f32 %v4471_v61, %v3405_v4 }
 0xa58   : > { %v5235_v9 = vpop.eup %5234  ;;  %v3391_v25 = vadd.f32 1e-12, %v3383_v22  ;;  %v3384_v12 = vmul.f32 0.03125, %v3374_v2 }
 0xa59   : > { %v3406_v56 = vmul.f32 %v5235_v9, %v6622_v14  ;;  %v3376_v59 = vpop.xlane.xlu0 %3375  ;;  %v3455_v54 = vpack.c.bf16 %v6675_v6, %v6673_v10  ;;  %v6680_v18 = vadd.f32 %v4472_v3, %v3419_v45 }
 0xa5a   : > { %5236 = vrsqrt.f32 %v3391_v25  ;;  %v3392_v37 = vadd.f32 1e-12, %v3384_v12  ;;  %v3385_v40 = vmul.f32 0.03125, %v3376_v59 }
 0xa5b   : > { %v3420_v27 = vmul.f32 %v4471_v61, %v3406_v56  ;;  %v3378_v15 = vpop.xlane.xlu1 %3377  ;;  %4930 = vmatprep.mubr.bf16.mxu1 %v3455_v54 }
 0xa5c   : > { %5238 = vrsqrt.f32 %v3392_v37  ;;  %v3393_v8 = vadd.f32 1e-12, %v3385_v40  ;;  %v3386_v62 = vmul.f32 0.03125, %v3378_v15 }
 0xa5d   : > { %v6682_v19 = vadd.f32 %v4472_v3, %v3420_v27 }
 0xa5e   : > { %5240 = vrsqrt.f32 %v3393_v8  ;;  %v3394_v21 = vadd.f32 1e-12, %v3386_v62 }
 0xa5f   : > { %v3456_v14 = vpack.c.bf16 %v6682_v19, %v6680_v18 }
 0xa60   : > { %5242 = vrsqrt.f32 %v3394_v21 }
 0xa61   : > { %4931 = vmatmul.mubr.bf16.vlgmr.msra.gmra.mrb[84].mxu1 %v3456_v14 }
 0xa64   : > { %v5237_v7 = vpop.eup %5236 }
 0xa65   : > { %v3407_v38 = vmul.f32 %v5237_v7, %v6630_v52 }
 0xa66   : > { %v5239_v20 = vpop.eup %5238 }
 0xa67   : > { %v3421_v32 = vmul.f32 %v4471_v61, %v3407_v38  ;;  %v3408_v16 = vmul.f32 %v5239_v20, %v6636_v24 }
 0xa68   : > { %v5241_v0 = vpop.eup %5240 }
 0xa69   : > { %v3422_v13 = vmul.f32 %v4471_v61, %v3408_v16  ;;  %v3409_v26 = vmul.f32 %v5241_v0, %v6643_v33  ;;  %v6689_v31 = vadd.f32 %v4472_v3, %v3421_v32 }
 0xa6a   : > { %v5243_v30 = vpop.eup %5242 }
 0xa6b   : > { %v6691_v34 = vadd.f32 %v4472_v3, %v3422_v13  ;;  %v3423_v35 = vmul.f32 %v4471_v61, %v3409_v26  ;;  %v3410_v39 = vmul.f32 %v5243_v30, %v6649_v28  ;;  %v5159_v28 = vld [vmem:[%s6009_s12 + $0x18] sm:$0xff]  }
 0xa6c   : > { %4944 = vmatprep.subr.bf16.mxu0 %v5159_v28 }
 0xa6d   : > { %v3424_v52 = vmul.f32 %v4471_v61, %v3410_v39  ;;  %v3457_v24 = vpack.c.bf16 %v6691_v34, %v6689_v31  ;;  %v6696_v42 = vadd.f32 %v4472_v3, %v3423_v35  ;;  %4945 = vmatpush3.bf16.msra.mxu0 %v5159_v28 }
 0xa6e   : > { %4946 = vmatprep.subr.bf16.mxu0 %v5160_v50 }
 0xa6f   : > { %v6698_v46 = vadd.f32 %v4472_v3, %v3424_v52  ;;  %4934 = vmatprep.mubr.bf16.mxu1 %v3457_v24 }
 0xa71   : > { %v3458_v33 = vpack.c.bf16 %v6698_v46, %v6696_v42  ;;  %4947 = vmatpush3.bf16.msra.mxu0 %v5160_v50 }
 0xa72   : > { %4948 = vmatprep.subr.bf16.mxu0 %v5161_v29 }
 0xa73   : > { %4935 = vmatmul.mubr.bf16.gmra.mrb[88].mxu1 %v3458_v33 }
 0xa75   : > { %4949 = vmatpush3.bf16.msra.mxu0 %v5161_v29 }
 0xa76   : > { %4950 = vmatprep.subr.bf16.mxu0 %v5162_v49 }
 0xa79   : > { %4951 = vmatpush3.bf16.msra.mxu0 %v5162_v49 }
 0xa7a   : > { %4952 = vmatprep.subr.bf16.mxu0 %v5163_v53 }
 0xa7d   : > { %4953 = vmatpush3.bf16.msra.mxu0 %v5163_v53 }
 0xb34   : > { %v4932_v47 = vpop.f32.mrb[84].mxu1 }
 0xb35   : > { %v3573_v57 = vadd.f32 %v4932_v47, %v4473_v5  ;;  %v3564_v41 = vpop.f32.mrb[85].mxu1 }
 0xb36   : > { %v3565_v58 = vadd.f32 %v4473_v5, %v3564_v41  ;;  %v4933_v55 = vpop.f32.mrb[86].mxu1 }
 0xb37   : > { %v3605_v11 = vmul.f32 0.70710677, %v3573_v57  ;;  %v3576_v23 = vadd.f32 %v4933_v55, %v4473_v5  ;;  %v3567_v61 = vpop.f32.mrb[87].mxu1  ;;  %v3597_v2 = vmul.f32 0.5, %v3573_v57 }
 0xb38   : > { %v3603_v63 = vmul.f32 0.70710677, %v3565_v58  ;;  %v3568_v44 = vadd.f32 %v4473_v5, %v3567_v61  ;;  %v3595_v45 = vmul.f32 0.5, %v3565_v58 }
 0xb39   : > { %5244 = verf.f32 %v3605_v11  ;;  %v3606_v17 = vmul.f32 0.70710677, %v3576_v23  ;;  %v3598_v9 = vmul.f32 0.5, %v3576_v23  ;;  %v4482_v11 = vld [vmem:[%s823_s0] ss:$0 sm:$0xff] }
 0xb3a   : > { %5246 = verf.f32 %v3603_v63  ;;  %v3604_v43 = vmul.f32 0.70710677, %v3568_v44  ;;  %v3596_v56 = vmul.f32 0.5, %v3568_v44 }
 0xb3b   : > { %5248 = verf.f32 %v3606_v17 }
 0xb3c   : > { %5250 = verf.f32 %v3604_v43 }
 0xb43   : > { %v5245_v1 = vpop.eup %5244 }
 0xb44   : > { %v5247_v3 = vpop.eup %5246  ;;  %v3621_v36 = vadd.f32 1.0, %v5245_v1 }
 0xb45   : > { %v5249_v4 = vpop.eup %5248  ;;  %v3619_v51 = vadd.f32 1.0, %v5247_v3 }
 0xb46   : > { %v5251_v22 = vpop.eup %5250  ;;  %v3622_v25 = vadd.f32 1.0, %v5249_v4  ;;  %v4936_v12 = vpop.f32.mrb[88].mxu1  ;;  %v3629_v40 = vmul.f32 %v3621_v36, %v3597_v2 }
 0xb47   : > { %v3620_v59 = vadd.f32 1.0, %v5251_v22  ;;  %v3589_v54 = vadd.f32 %v4936_v12, %v4473_v5  ;;  %v3580_v37 = vpop.f32.mrb[89].mxu1  ;;  %v3627_v62 = vmul.f32 %v3619_v51, %v3595_v45 }
 0xb48   : > { %v3630_v27 = vmul.f32 %v3622_v25, %v3598_v9  ;;  %v3581_v15 = vadd.f32 %v4473_v5, %v3580_v37  ;;  %v4937_v8 = vpop.f32.mrb[90].mxu1 }
 0xb49   : > { %v3628_v21 = vmul.f32 %v3620_v59, %v3596_v56  ;;  %v3609_v14 = vmul.f32 0.70710677, %v3589_v54  ;;  %v3592_v7 = vadd.f32 %v4937_v8, %v4473_v5  ;;  %v3583_v38 = vpop.f32.mrb[91].mxu1  ;;  %v3601_v48 = vmul.f32 0.5, %v3589_v54 }
 0xb4a   : > { %v3636_v20 = vpack.c.bf16 %v3630_v27, %v3629_v40  ;;  %v3607_v32 = vmul.f32 0.70710677, %v3581_v15  ;;  %v3584_v16 = vadd.f32 %v4473_v5, %v3583_v38  ;;  %v3599_v29 = vmul.f32 0.5, %v3581_v15 }
 0xb4b   : > { %5252 = verf.f32 %v3609_v14  ;;  %v3610_v0 = vmul.f32 0.70710677, %v3592_v7  ;;  %v3635_v13 = vpack.c.bf16 %v3628_v21, %v3627_v62  ;;  %v3602_v28 = vmul.f32 0.5, %v3592_v7 }
 0xb4c   : > { %5254 = verf.f32 %v3607_v32  ;;  %v3608_v26 = vmul.f32 0.70710677, %v3584_v16  ;;  %v3600_v49 = vmul.f32 0.5, %v3584_v16 }
 0xb4d   : > { %5256 = verf.f32 %v3610_v0  ;;  %4954 = vmatprep.mubr.bf16.mxu0 %v3635_v13 }
 0xb4e   : > { %5258 = verf.f32 %v3608_v26  ;;  %4955 = vmatmul.mubr.bf16.vlgmr.msra.gmra.mrb[76].mxu0 %v3636_v20 }
 0xb55   : > { %v5253_v30 = vpop.eup %5252 }
 0xb56   : > { %v5255_v35 = vpop.eup %5254  ;;  %v3625_v39 = vadd.f32 1.0, %v5253_v30 }
 0xb57   : > { %v5257_v52 = vpop.eup %5256  ;;  %v3623_v24 = vadd.f32 1.0, %v5255_v35 }
 0xb58   : > { %v5259_v33 = vpop.eup %5258  ;;  %v3626_v50 = vadd.f32 1.0, %v5257_v52  ;;  %v3633_v5 = vmul.f32 %v3625_v39, %v3601_v48 }
 0xb59   : > { %v3624_v53 = vadd.f32 1.0, %v5259_v33  ;;  %v3631_v57 = vmul.f32 %v3623_v24, %v3599_v29 }
 0xb5a   : > { %v3634_v47 = vmul.f32 %v3626_v50, %v3602_v28 }
 0xb5b   : > { %v3632_v41 = vmul.f32 %v3624_v53, %v3600_v49 }
 0xb5c   : > { %v3638_v58 = vpack.c.bf16 %v3634_v47, %v3633_v5 }
 0xb5d   : > { %v3637_v55 = vpack.c.bf16 %v3632_v41, %v3631_v57 }
 0xb5f   : > { %4958 = vmatprep.mubr.bf16.mxu0 %v3637_v55 }
 0xb60   : > { %4959 = vmatmul.mubr.bf16.gmra.mrb[80].mxu0 %v3638_v58 }
 0xc21   : > { %v4956_v23 = vpop.f32.mrb[76].mxu0 }
 0xc22   : > { %v3753_v61 = vadd.f32 %v4956_v23, %v4482_v11  ;;  %v3744_v63 = vpop.f32.mrb[77].mxu0 }
 0xc23   : > { %v4957_v44 = vpop.f32.mrb[78].mxu0  ;;  %v3745_v17 = vadd.f32 %v4482_v11, %v3744_v63 }
 0xc24   : > { %v3756_v43 = vadd.f32 %v4957_v44, %v4482_v11  ;;  %v3747_v1 = vpop.f32.mrb[79].mxu0  ;;  %v3777_v3 = vadd.f32 %v3753_v61, %v6680_v18 }
 0xc25   : > { %v3748_v36 = vadd.f32 %v4482_v11, %v3747_v1  ;;  %v3775_v51 = vadd.f32 %v3745_v17, %v6673_v10 }
 0xc26   : > { %3789 = vadd.xlane.f32.xlu0 %v3777_v3  ;;  %v3778_v4 = vadd.f32 %v3756_v43, %v6682_v19 }
 0xc27   : > { %v3776_v22 = vadd.f32 %v3748_v36, %v6675_v6 }
 0xc28   : > { %3791 = vadd.xlane.f32.xlu1 %v3778_v4 }
 0xc2a   : > { %3785 = vadd.xlane.f32.xlu0 %v3775_v51 }
 0xc2c   : > { %3787 = vadd.xlane.f32.xlu1 %v3776_v22 }
 0xc33   : > { %v4960_v2 = vpop.f32.mrb[80].mxu0 }
 0xc34   : > { %v3760_v9 = vpop.f32.mrb[81].mxu0  ;;  %v3769_v56 = vadd.f32 %v4960_v2, %v4482_v11 }
 0xc35   : > { %v3761_v25 = vadd.f32 %v4482_v11, %v3760_v9  ;;  %v4961_v12 = vpop.f32.mrb[82].mxu0  ;;  %v4491_v9 = vld [vmem:[%s826_s20] ss:$0 sm:$0xff] }
 0xc36   : > { %v3763_v45 = vpop.f32.mrb[83].mxu0  ;;  %v3772_v54 = vadd.f32 %v4961_v12, %v4482_v11  ;;  %v3781_v10 = vadd.f32 %v3769_v56, %v6696_v42 }
 0xc37   : > { %v3764_v59 = vadd.f32 %v4482_v11, %v3763_v45  ;;  %v3779_v18 = vadd.f32 %v3761_v25, %v6689_v31  ;;  %v4492_v45 = vld [vmem:[%s829_s28] ss:$0 sm:$0xff] }
 0xc38   : > { %v3782_v6 = vadd.f32 %v3772_v54, %v6698_v46 }
 0xc39   : > { %3793 = vadd.xlane.f32.xlu0 %v3779_v18  ;;  %v3780_v19 = vadd.f32 %v3764_v59, %v6691_v34 }
 0xc3b   : > { %3795 = vadd.xlane.f32.xlu1 %v3780_v19 }
 0xc3d   : > { %3797 = vadd.xlane.f32.xlu0 %v3781_v10 }
 0xc3f   : > { %3799 = vadd.xlane.f32.xlu1 %v3782_v6 }
 0xcb3   : > { %v3790_v37 = vpop.xlane.xlu0 %3789 }
 0xcb4   : > { %v3803_v40 = vmul.f32 0.03125, %v3790_v37 }
 0xcb5   : > { %v3792_v27 = vpop.xlane.xlu1 %3791 }
 0xcb6   : > { %v3811_v15 = vsub.f32 %v3777_v3, %v3803_v40  ;;  %v3804_v8 = vmul.f32 0.03125, %v3792_v27 }
 0xcb7   : > { %v3786_v62 = vpop.xlane.xlu0 %3785 }
 0xcb8   : > { %v3812_v21 = vsub.f32 %v3778_v4, %v3804_v8  ;;  %v3801_v14 = vmul.f32 0.03125, %v3786_v62  ;;  %v3819_v31 = vsel %vm3314_vm5, %v3811_v15, 0.0 }
 0xcb9   : > { %v3788_v7 = vpop.xlane.xlu1 %3787  ;;  %v3827_v34 = vmul.f32 %v3819_v31, %v3819_v31 }
 0xcba   : > { %v3809_v38 = vsub.f32 %v3775_v51, %v3801_v14  ;;  %v3802_v20 = vmul.f32 0.03125, %v3788_v7  ;;  %v3820_v42 = vsel %vm3314_vm5, %v3812_v21, 0.0 }
 0xcbb   : > { %3837 = vadd.xlane.f32.xlu0 %v3827_v34  ;;  %v3828_v46 = vmul.f32 %v3820_v42, %v3820_v42 }
 0xcbc   : > { %v3810_v32 = vsub.f32 %v3776_v22, %v3802_v20  ;;  %v3817_v16 = vsel %vm3314_vm5, %v3809_v38, 0.0 }
 0xcbd   : > { %3839 = vadd.xlane.f32.xlu1 %v3828_v46  ;;  %v3825_v0 = vmul.f32 %v3817_v16, %v3817_v16 }
 0xcbe   : > { %v3818_v13 = vsel %vm3314_vm5, %v3810_v32, 0.0 }
 0xcbf   : > { %3833 = vadd.xlane.f32.xlu0 %v3825_v0  ;;  %v3826_v26 = vmul.f32 %v3818_v13, %v3818_v13 }
 0xcc1   : > { %3835 = vadd.xlane.f32.xlu1 %v3826_v26 }
 0xcc6   : > { %v3794_v30 = vpop.xlane.xlu0 %3793 }
 0xcc7   : > { %v3805_v35 = vmul.f32 0.03125, %v3794_v30 }
 0xcc8   : > { %v3796_v39 = vpop.xlane.xlu1 %3795 }
 0xcc9   : > { %v3813_v52 = vsub.f32 %v3779_v18, %v3805_v35  ;;  %v3806_v24 = vmul.f32 0.03125, %v3796_v39 }
 0xcca   : > { %v3798_v33 = vpop.xlane.xlu0 %3797 }
 0xccb   : > { %v3814_v48 = vsub.f32 %v3780_v19, %v3806_v24  ;;  %v3807_v28 = vmul.f32 0.03125, %v3798_v33  ;;  %v6736_v50 = vsel %vm3314_vm5, %v3813_v52, 0.0 }
 0xccc   : > { %v3800_v29 = vpop.xlane.xlu1 %3799  ;;  %v3829_v49 = vmul.f32 %v6736_v50, %v6736_v50 }
 0xccd   : > { %v3815_v53 = vsub.f32 %v3781_v10, %v3807_v28  ;;  %v3808_v5 = vmul.f32 0.03125, %v3800_v29  ;;  %v6742_v47 = vsel %vm3314_vm5, %v3814_v48, 0.0 }
 0xcce   : > { %3841 = vadd.xlane.f32.xlu0 %v3829_v49  ;;  %v3830_v57 = vmul.f32 %v6742_v47, %v6742_v47 }
 0xccf   : > { %v3816_v41 = vsub.f32 %v3782_v6, %v3808_v5  ;;  %v6748_v58 = vsel %vm3314_vm5, %v3815_v53, 0.0 }
 0xcd0   : > { %3843 = vadd.xlane.f32.xlu1 %v3830_v57  ;;  %v3831_v55 = vmul.f32 %v6748_v58, %v6748_v58 }
 0xcd1   : > { %v6754_v11 = vsel %vm3314_vm5, %v3816_v41, 0.0  ;;  %v5611_v41 = vmov (!%p4493_p10), 0.0  }
 0xcd2   : > { %3845 = vadd.xlane.f32.xlu0 %v3831_v55  ;;  %v3832_v23 = vmul.f32 %v6754_v11, %v6754_v11  ;;  %4962 = vmatprep.subr.bf16.mxu0 (!%p4493_p10), %v5611_v41  ;;  %v5286_v55 = vld [vmem:[#allocation14 + $0x10] sm:$0xff] (!%p4493_p10)  }
 0xcd3   : > { %4978 = vmatprep.mubr.msk.bf16.mxu0 (!%p4493_p10), %vm5612_vm6, %v5611_v41 }
 0xcd4   : > { %3847 = vadd.xlane.f32.xlu1 %v3832_v23 }
 0xd48   : > { %v3838_v61 = vpop.xlane.xlu0 %3837 }
 0xd49   : > { %v3851_v63 = vmul.f32 0.03125, %v3838_v61 }
 0xd4a   : > { %v3840_v44 = vpop.xlane.xlu1 %3839 }
 0xd4b   : > { %v3859_v17 = vadd.f32 1e-12, %v3851_v63  ;;  %v3852_v43 = vmul.f32 0.03125, %v3840_v44 }
 0xd4c   : > { %v3834_v1 = vpop.xlane.xlu0 %3833 }
 0xd4d   : > { %5260 = vrsqrt.f32 %v3859_v17  ;;  %v3860_v3 = vadd.f32 1e-12, %v3852_v43  ;;  %v3849_v36 = vmul.f32 0.03125, %v3834_v1 }
 0xd4e   : > { %v3836_v4 = vpop.xlane.xlu1 %3835 }
 0xd4f   : > { %5262 = vrsqrt.f32 %v3860_v3  ;;  %v3857_v60 = vadd.f32 1e-12, %v3849_v36  ;;  %v3850_v51 = vmul.f32 0.03125, %v3836_v4  ;;  %v5287_v36 = vld [vmem:[#allocation14 + $0x18] sm:$0xff] (!%p4493_p10)  }
 0xd51   : > { %5264 = vrsqrt.f32 %v3857_v60  ;;  %v3858_v22 = vadd.f32 1e-12, %v3850_v51 }
 0xd53   : > { %5266 = vrsqrt.f32 %v3858_v22 }
 0xd57   : > { %v5261_v2 = vpop.eup %5260 }
 0xd58   : > { %v3875_v25 = vmul.f32 %v5261_v2, %v3819_v31 }
 0xd59   : > { %v5263_v12 = vpop.eup %5262 }
 0xd5a   : > { %v3889_v56 = vmul.f32 %v4491_v9, %v3875_v25  ;;  %v3876_v59 = vmul.f32 %v5263_v12, %v3820_v42 }
 0xd5b   : > { %v5265_v18 = vpop.eup %5264  ;;  %v3842_v54 = vpop.xlane.xlu0 %3841 }
 0xd5c   : > { %v3903_v19 = vadd.f32 %v4492_v45, %v3889_v56  ;;  %v3890_v10 = vmul.f32 %v4491_v9, %v3876_v59  ;;  %v3873_v6 = vmul.f32 %v5265_v18, %v3817_v16  ;;  %v3853_v37 = vmul.f32 0.03125, %v3842_v54 }
 0xd5d   : > { %v5267_v40 = vpop.eup %5266  ;;  %v3844_v27 = vpop.xlane.xlu1 %3843 }
 0xd5e   : > { %3911 = vst [vmem:[#allocation2 + $0x10] sm:$0xff] %v3903_v19  ;;  %v3904_v15 = vadd.f32 %v4492_v45, %v3890_v10  ;;  %v3887_v8 = vmul.f32 %v4491_v9, %v3873_v6  ;;  %v3874_v62 = vmul.f32 %v5267_v40, %v3818_v13  ;;  %v3861_v21 = vadd.f32 1e-12, %v3853_v37  ;;  %v5288_v19 = vld [vmem:[#allocation14 + $0x20] sm:$0xff] (!%p4493_p10)  }
 0xd5f   : > { %v3854_v14 = vmul.f32 0.03125, %v3844_v27  ;;  %v3846_v31 = vpop.xlane.xlu0 %3845 }
 0xd60   : > { %3912 = vst [vmem:[#allocation2 + $0x18] sm:$0xff] %v3904_v15  ;;  %v3901_v7 = vadd.f32 %v4492_v45, %v3887_v8  ;;  %v3888_v34 = vmul.f32 %v4491_v9, %v3874_v62  ;;  %5268 = vrsqrt.f32 %v3861_v21  ;;  %v3855_v38 = vmul.f32 0.03125, %v3846_v31 }
 0xd61   : > { %v3862_v20 = vadd.f32 1e-12, %v3854_v14  ;;  %v3848_v42 = vpop.xlane.xlu1 %3847  ;;  %v5289_v14 = vld [vmem:[#allocation14 + $0x28] sm:$0xff] (!%p4493_p10)  }
 0xd62   : > { %3909 = vst [vmem:[#allocation2] sm:$0xff] %v3901_v7  ;;  %v3902_v46 = vadd.f32 %v4492_v45, %v3888_v34  ;;  %v3863_v32 = vadd.f32 1e-12, %v3855_v38  ;;  %v3856_v16 = vmul.f32 0.03125, %v3848_v42 }
 0xd63   : > { %5270 = vrsqrt.f32 %v3862_v20  ;;  %v5290_v20 = vld [vmem:[#allocation14 + $0x30] sm:$0xff] (!%p4493_p10)  }
 0xd64   : > { %3910 = vst [vmem:[#allocation2 + $0x8] sm:$0xff] %v3902_v46  ;;  %5272 = vrsqrt.f32 %v3863_v32  ;;  %v3864_v0 = vadd.f32 1e-12, %v3856_v16  ;;  %v5291_v32 = vld [vmem:[#allocation14 + $0x38] sm:$0xff] (!%p4493_p10)  }
 0xd65   : > { %v3923_v61 = vld [vmem:[#allocation2 + $0x10] sm:$0xff] (!%p4493_p10) }
 0xd66   : > { %5274 = vrsqrt.f32 %v3864_v0  ;;  %v3931_v3 = vpack.c.bf16 (!%p4493_p10), %v3923_v61, %v3923_v61 }
 0xd67   : > { %v3924_v63 = vld [vmem:[#allocation2 + $0x18] sm:$0xff] (!%p4493_p10) }
 0xd68   : > { %v3932_v60 = vpack.c.bf16 (!%p4493_p10), %v3924_v63, %v3924_v63 }
 0xd6a   : > { %v5269_v13 = vpop.eup %5268  ;;  %v3971_v56 = vunpack.c.l.b16 (!%p4493_p10), %v3932_v60 }
 0xd6b   : > { %v3877_v26 = vmul.f32 %v5269_v13, %v6736_v50  ;;  %v3922_v23 = vld [vmem:[#allocation2 + $0x8] sm:$0xff] (!%p4493_p10)  ;;  %v4494_v13 = vld [vmem:[%s6935_s1] ss:$0 sm:$0xff] (!%p4493_p10) }
 0xd6c   : > { %v3930_v1 = vpack.c.bf16 (!%p4493_p10), %v3922_v23, %v3922_v23  ;;  %v3982_v37 = vrot.slane (!%p4493_p10), %v3971_v56, 5 }
 0xd6d   : > { %v5271_v30 = vpop.eup %5270  ;;  %v3891_v35 = vmul.f32 %v4491_v9, %v3877_v26 }
 0xd6e   : > { %v5273_v39 = vpop.eup %5272  ;;  %v3878_v52 = vmul.f32 %v5271_v30, %v6742_v47  ;;  %v5284_v47 = vld [vmem:[#allocation14] sm:$0xff] (!%p4493_p10)   ;;  %v3969_v12 = vunpack.c.l.b16 (!%p4493_p10), %v3930_v1 }
 0xd6f   : > { %v3905_v24 = vadd.f32 %v4492_v45, %v3891_v35  ;;  %v3879_v33 = vmul.f32 %v5273_v39, %v6748_v58  ;;  %4963 = vmatpush3.bf16.msra.mxu0 (!%p4493_p10), %v5284_v47  ;;  %v5285_v58 = vld [vmem:[#allocation14 + $0x8] sm:$0xff] (!%p4493_p10)  }
 0xd70   : > { %v5275_v48 = vpop.eup %5274  ;;  %v3892_v28 = vmul.f32 %v4491_v9, %v3878_v52  ;;  %4964 = vmatprep.subr.bf16.mxu0 (!%p4493_p10), %v5611_v41  ;;  %v3976_v54 = vrot.slane (!%p4493_p10), %v3969_v12, 7 }
 0xd71   : > { %3913 = vst [vmem:[#allocation2 + $0x20] sm:$0xff] %v3905_v24  ;;  %v3893_v29 = vmul.f32 %v4491_v9, %v3879_v33  ;;  %v3880_v49 = vmul.f32 %v5275_v48, %v6754_v11  ;;  %3920 = sbr.rel (%p4493_p10) target bundleno = 3696 (0xe70), region = 120  ;;  %v3921_v11 = vld [vmem:[#allocation2] sm:$0xff] (!%p4493_p10) }
 0xd72   : > { %v3906_v53 = vadd.f32 %v4492_v45, %v3892_v28  ;;  %v3929_v43 = vpack.c.bf16 (!%p4493_p10), %v3921_v11, %v3921_v11 }
 0xd73   : > { %v3907_v5 = vadd.f32 %v4492_v45, %v3893_v29  ;;  %v3894_v57 = vmul.f32 %v4491_v9, %v3880_v49  ;;  %4965 = vmatpush3.bf16.msra.mxu0 (!%p4493_p10), %v5285_v58 }
 0xd74   : > { %3914 = vst [vmem:[#allocation2 + $0x28] sm:$0xff] %v3906_v53  ;;  %4966 = vmatprep.subr.bf16.mxu0 (!%p4493_p10), %v5611_v41  ;;  %v3968_v25 = vunpack.c.l.b16 (!%p4493_p10), %v3929_v43 }
 0xd75   : > { %3915 = vst [vmem:[#allocation2 + $0x30] sm:$0xff] %v3907_v5  ;;  %v3908_v50 = vadd.f32 %v4492_v45, %v3894_v57  ;;  %v3970_v45 = vunpack.c.l.b16 (!%p4493_p10), %v3931_v3 }
 0xd76   : > { %v3978_v15 = vsel (!%p4493_p10), %vm3977_vm7, %v3976_v54, %v3968_v25 }
 0xd77   : > { %3916 = vst [vmem:[#allocation2 + $0x38] sm:$0xff] %v3908_v50  ;;  %4967 = vmatpush3.bf16.msra.mxu0 (!%p4493_p10), %v5286_v55  ;;  %v3979_v6 = vrot.slane (!%p4493_p10), %v3970_v45, 6 }
 0xd78   : > { %v3925_v44 = vld [vmem:[#allocation2 + $0x20] sm:$0xff]  ;;  %4968 = vmatprep.subr.bf16.mxu0 %v5611_v41 }
 0xd79   : > { %v3933_v51 = vpack.c.bf16 %v3925_v44, %v3925_v44  ;;  %v3981_v8 = vsel %vm3980_vm8, %v3979_v6, %v3978_v15 }
 0xd7a   : > { %v3984_v21 = vsel %vm3983_vm9, %v3982_v37, %v3981_v8 }
 0xd7b   : > { %v3926_v17 = vld [vmem:[#allocation2 + $0x28] sm:$0xff]  ;;  %v3972_v59 = vunpack.c.l.b16 %v3933_v51  ;;  %4969 = vmatpush3.bf16.msra.mxu0 %v5287_v36 }
 0xd7c   : > { %v3927_v4 = vld [vmem:[#allocation2 + $0x30] sm:$0xff]  ;;  %v3934_v22 = vpack.c.bf16 %v3926_v17, %v3926_v17  ;;  %4970 = vmatprep.subr.bf16.mxu0 %v5611_v41 }
 0xd7d   : > { %v3935_v9 = vpack.c.bf16 %v3927_v4, %v3927_v4  ;;  %v3985_v40 = vrot.slane %v3972_v59, 4 }
 0xd7e   : > { %v3928_v2 = vld [vmem:[#allocation2 + $0x38] sm:$0xff]  ;;  %v3973_v18 = vunpack.c.l.b16 %v3934_v22 }
 0xd7f   : > { %v3936_v10 = vpack.c.bf16 %v3928_v2, %v3928_v2  ;;  %v3974_v27 = vunpack.c.l.b16 %v3935_v9  ;;  %4971 = vmatpush3.bf16.msra.mxu0 %v5288_v19  ;;  %v3987_v7 = vsel %vm3986_vm10, %v3985_v40, %v3984_v21 }
 0xd80   : > { %v3988_v62 = vrot.slane %v3973_v18, 3  ;;  %4972 = vmatprep.subr.bf16.mxu0 %v5611_v41 }
 0xd81   : > { %v3975_v31 = vunpack.c.l.b16 %v3936_v10  ;;  %v3991_v34 = vrot.slane %v3974_v27, 2 }
 0xd82   : > { %v3990_v38 = vsel %vm3989_vm11, %v3988_v62, %v3987_v7 }
 0xd83   : > { %4973 = vmatpush3.bf16.msra.mxu0 %v5289_v14  ;;  %v3994_v42 = vrot.slane %v3975_v31, 1  ;;  %v3993_v46 = vsel %vm3992_vm12, %v3991_v34, %v3990_v38 }
 0xd84   : > { %4974 = vmatprep.subr.bf16.mxu0 %v5611_v41 }
 0xd85   : > { %v3996_v16 = vsel %vm3995_vm13, %v3994_v42, %v3993_v46 }
 0xd86   : > { %v3997_v0 = vpack.c.b16 %v3996_v16, %v3996_v16 }
 0xd87   : > { %4975 = vmatpush3.bf16.msra.mxu0 %v5290_v20 }
 0xd88   : > { %4976 = vmatprep.subr.bf16.mxu0 %v5611_v41 }
 0xd8b   : > { %4977 = vmatpush3.bf16.msra.mxu0 %v5291_v32 }
 0xd8e   : > { %4979 = vmatmul.mubr.bf16.vlgmr.msra.gmra.mrb[0].mxu0 %v3997_v0 }
 0xe61   : > { %v4081_v26 = vpop.f32.mrb[0].mxu0 }
 0xe62   : > { %v4082_v30 = vadd.f32 %v4494_v13, %v4081_v26  ;;  %v4980_v35 = vpop.f32.mrb[1].mxu0 }
 0xe63   : > { %v4084_v39 = vpop.f32.mrb[2].mxu0 }
 0xe64   : > { %5292 = vtanh.f32 %v4082_v30  ;;  %v4981_v52 = vpop.f32.mrb[3].mxu0 }
 0xe6e   : > { %v5293_v24 = vpop.eup %5292 }
 0xe6f   : > { %4088 = vst [vmem:[#allocation15] sm:$0xff] %v5293_v24 }
 0xe70 PF: > { %p5040_p6 = scmp.eq.s32.totalorder %s5728_s27, 1  ;;  %s5613_s8 = smov [#allocation15]  }
 0xe71   : > { %s4098_s14 = sshll.u32 %s5613_s8, 4  ;;  %s4099_s14 = int_to_ptr.vmem [resolvable:$true] %s4098_s14 }
 0xe72   : > { %s5498_s2 = scalar_lea.vmem %s4099_s14, 128  ;;  %p5505_p11 = scmp.lt.s32.totalorder %s4099_s14, %s4099_s14 }
 0xe73   : > { %p5499_p5 = scmp.ne.s32.totalorder %s4099_s14, %s5498_s2  ;;  %p5506_p0 = scmp.lt.s32.totalorder %s5498_s2, %s5498_s2 }
 0xe75   : > { %p5500_p4 = pnand %p5499_p5, %p5040_p6  ;;  %p5507_p7 = por %p5506_p0, %p5505_p11 }
 0xe77   : > { %p5501_p13 = pneg %p5500_p4 }
 0xe79   : > { %p5508_p9 = pnand %p5507_p7, %p5501_p13 }
 0xe7b   : > { %5511 = shalt.err (!%p5508_p9)
}
 0xe7c   : > { %s6936_s11 = sld [smem:[#allocation42_spill]] }
 0xe82   : > { %s5512_s29 = scalar_lea.hbm %s6936_s11, 128 }
 0xe83   : > { %p5513_p12 = scmp.ne.s32.totalorder %s6936_s11, %s5512_s29  ;;  %p5518_p1 = scmp.lt.u32.totalorder %s5512_s29, %s6936_s11 }
 0xe85   : > { %p5514_p3 = pnand %p5513_p12, %p5040_p6 }
 0xe87   : > { %p5515_p8 = pneg %p5514_p3 }
 0xe89   : > { %p5520_p2 = pnand %p5518_p1, %p5515_p8 }
 0xe8b   : > { %5523 = shalt.err (!%p5520_p2)
}
 0xe8c   : > { %5007 = dma.vmem_to_hbm [thread:$0]  (%p5040_p6), %s4099_s14, 128, %s6936_s11, [#allocation7]  }
 0xe8d   : > { %5565 = dma.done.wait (%p5040_p6), [#allocation7], 128  }
 0xe8e   : > { %5567 = vsyncadd (%p5040_p6), [#allocation7], 4294967168 }
 0xe8f PF: > { %s29_s26 = sadd.s32 1, %s5590_s26   ;;  %s6937_s30 = sld [smem:[#allocation21_spill]] }
 0xe90   : > { %p26_p10 = scmp.ge.s32.totalorder %s29_s26, 4   ;;  %s6938_s23 = sld [smem:[#allocation25_spill]] }
 0xe91   : > { %s6939_s24 = sld [smem:[#allocation23_spill]]  ;;  %s6940_s25 = sld [smem:[#allocation24_spill]] }
 0xe92   : > { %s6941_s21 = smov %s5574_s22  ;;  %28 = sbr.rel (!%p26_p10) target bundleno = 23 (0x17), region = 200 }
 0xe95   : > { %s6942_s22 = smov %s6937_s30 }
 0xe99   :  { %4111 = vsyncpa [#allocation6], 1 }
 0xe9a   :  { %4113 = vsyncpa [#allocation6 + $0x1], 1 }
 0xe9b   :  { %4114 = vsyncpa [#allocation9], 1 }
 0xe9c   :  { %4115 = vsyncpa [#allocation7], 1 }
 0xe9d   :  { %4117 = vsyncpa [#allocation7 + $0x1], 1 }

</bundles_post_ra>
